<compile_context>
chip_gen: v7x
topology: tpu7x:2x2x1
jax: 0.10.0
libtpu: 0.0.40
codegen_flags: <defaults>
</compile_context>

<pallas_src>
import functools

import jax
import jax.numpy as jnp
from jax.experimental import pallas as pl
from jax.experimental.pallas import tpu as pltpu


# ---------------------------------------------------------------------------
# helpers
# ---------------------------------------------------------------------------
def _round_up(x, m):
    return (x + m - 1) // m * m


def _pick_tile(dim, pref):
    """Use `pref` if it divides `dim`, else fall back to the full dim."""
    t = min(pref, dim)
    return t if dim % t == 0 else dim


# ---------------------------------------------------------------------------
# Kernel 1: fused attribute branch (encoder 2 layers + decoder 2 layers)
# ---------------------------------------------------------------------------
def _attr_branch_kernel(x_ref, we1, be1, we2, be2, wd1, bd1, wd2, bd2,
                        ha_ref, xr_ref):
    x = x_ref[...]
    h1 = jnp.maximum(
        jnp.dot(x, we1[...], preferred_element_type=jnp.float32) + be1[...], 0.0)
    ha = jnp.dot(h1, we2[...], preferred_element_type=jnp.float32) + be2[...]
    d1 = jnp.maximum(
        jnp.dot(ha, wd1[...], preferred_element_type=jnp.float32) + bd1[...], 0.0)
    xr = jnp.dot(d1, wd2[...], preferred_element_type=jnp.float32) + bd2[...]
    ha_ref[...] = ha.astype(ha_ref.dtype)
    xr_ref[...] = xr.astype(xr_ref.dtype)


def attr_branch(x, enc, dec, *, tm=256):
    """Returns (h_a, x_) for the attribute branch in a single pallas_call."""
    n, x_dim = x.shape
    hid = enc[0][0].shape[1]
    tm = _pick_tile(n, tm)
    (we1, be1), (we2, be2) = enc
    (wd1, bd1), (wd2, bd2) = dec
    full = lambda a: pl.BlockSpec(a.shape, lambda i: (0, 0))
    return pl.pallas_call(
        _attr_branch_kernel,
        out_shape=(jax.ShapeDtypeStruct((n, hid), jnp.float32),
                   jax.ShapeDtypeStruct((n, x_dim), jnp.float32)),
        grid=(n // tm,),
        in_specs=[pl.BlockSpec((tm, x_dim), lambda i: (i, 0)),
                  full(we1), full(be1), full(we2), full(be2),
                  full(wd1), full(bd1), full(wd2), full(bd2)],
        out_specs=(pl.BlockSpec((tm, hid), lambda i: (i, 0)),
                   pl.BlockSpec((tm, x_dim), lambda i: (i, 0))),
        compiler_params=pltpu.CompilerParams(dimension_semantics=("parallel",)),
    )(x, we1, be1, we2, be2, wd1, bd1, wd2, bd2)


# ---------------------------------------------------------------------------
# Kernel 2: struct encoder (K-tiled first layer) fused with encoder layer 2
#           and decoder layer 1 (hidden->hidden)
# ---------------------------------------------------------------------------
def _struct_enc_kernel(s_ref, we1_ref, be1, we2, be2, wd1, bd1,
                       hs_ref, hd1_ref, acc_ref):
    k = pl.program_id(1)

    @pl.when(k == 0)
    def _():
        acc_ref[...] = jnp.zeros_like(acc_ref)

    # bf16 MXU operands (pre-cast in HBM), f32 accumulation.
    acc_ref[...] += jnp.dot(s_ref[...], we1_ref[...],
                            preferred_element_type=jnp.float32)

    @pl.when(k == pl.num_programs(1) - 1)
    def _():
        h1 = jnp.maximum(acc_ref[...] + be1[...], 0.0)
        hs = jnp.dot(h1, we2[...], preferred_element_type=jnp.float32) + be2[...]
        hd1 = jnp.maximum(
            jnp.dot(hs, wd1[...], preferred_element_type=jnp.float32) + bd1[...],
            0.0)
        hs_ref[...] = hs.astype(hs_ref.dtype)
        hd1_ref[...] = hd1.astype(hd1_ref.dtype)


def struct_encode(s, enc, dec_l1, *, tm=256, tk=256):
    n, s_dim = s.shape
    hid = enc[0][0].shape[1]
    tm = _pick_tile(n, tm)
    tk = _pick_tile(s_dim, tk)
    (we1, be1), (we2, be2) = enc
    wd1, bd1 = dec_l1
    # Pre-cast the big first-layer operands to bf16 in HBM: identical numerics
    # to the in-kernel bf16 MXU cast, but half the DMA bytes.
    s_bf = s.astype(jnp.bfloat16)
    we1_bf = we1.astype(jnp.bfloat16)
    full = lambda a: pl.BlockSpec(a.shape, lambda i, k: (0, 0))
    cost = pl.CostEstimate(flops=2 * n * s_dim * hid + 4 * n * hid * hid,
                           transcendentals=0,
                           bytes_accessed=n * s_dim * 2 + s_dim * hid * 2
                           + 2 * n * hid * 4)
    return pl.pallas_call(
        _struct_enc_kernel,
        out_shape=(jax.ShapeDtypeStruct((n, hid), jnp.float32),
                   jax.ShapeDtypeStruct((n, hid), jnp.float32)),
        grid=(n // tm, s_dim // tk),
        in_specs=[pl.BlockSpec((tm, tk), lambda i, k: (i, k)),
                  pl.BlockSpec((tk, hid), lambda i, k: (k, 0)),
                  full(be1), full(we2), full(be2), full(wd1), full(bd1)],
        out_specs=(pl.BlockSpec((tm, hid), lambda i, k: (i, 0)),
                   pl.BlockSpec((tm, hid), lambda i, k: (i, 0))),
        scratch_shapes=[pltpu.VMEM((tm, hid), jnp.float32)],
        compiler_params=pltpu.CompilerParams(
            dimension_semantics=("parallel", "arbitrary")),
        cost_estimate=cost,
    )(s_bf, we1_bf, be1, we2, be2, wd1, bd1)


# ---------------------------------------------------------------------------
# Kernel 3: struct decoder output layer, tiled over (rows, output columns)
# ---------------------------------------------------------------------------
def _struct_dec_kernel(hd1_ref, wd2_ref, bd2_ref, o_ref):
    o_ref[...] = (jnp.dot(hd1_ref[...], wd2_ref[...],
                          preferred_element_type=jnp.float32)
                  + bd2_ref[...]).astype(o_ref.dtype)


def struct_decode_out(hd1, dec_l2, *, tm=256, tn=256):
    n, hid = hd1.shape
    wd2, bd2 = dec_l2
    s_dim = wd2.shape[1]
    tm = _pick_tile(n, tm)
    tn = _pick_tile(s_dim, tn)
    return pl.pallas_call(
        _struct_dec_kernel,
        out_shape=jax.ShapeDtypeStruct((n, s_dim), jnp.float32),
        grid=(n // tm, s_dim // tn),
        in_specs=[pl.BlockSpec((tm, hid), lambda i, j: (i, 0)),
                  pl.BlockSpec((hid, tn), lambda i, j: (0, j)),
                  pl.BlockSpec((1, tn), lambda i, j: (0, j))],
        out_specs=pl.BlockSpec((tm, tn), lambda i, j: (i, j)),
        compiler_params=pltpu.CompilerParams(
            dimension_semantics=("parallel", "parallel")),
    )(hd1, wd2, bd2)


# ---------------------------------------------------------------------------
# Kernel 4: fused NeighDiff for both branches (no [N,N] temporaries)
# ---------------------------------------------------------------------------
def _neigh_diff_kernel(adj_ref, rhs_k_ref, rhs_row_ref, dna_ref, dns_ref,
                       acc_ref, *, hid):
    k = pl.program_id(1)

    @pl.when(k == 0)
    def _():
        acc_ref[...] = jnp.zeros_like(acc_ref)

    # adj and rhs K-stream are bf16 (adj 0/1 exact); f32 MXU accumulation.
    acc_ref[...] += jnp.dot(adj_ref[...], rhs_k_ref[...],
                            preferred_element_type=jnp.float32)

    @pl.when(k == pl.num_programs(1) - 1)
    def _():
        acc = acc_ref[...]           # [adj@h_a | adj@h_s | adj@sq_a | adj@sq_s | deg]
        row = rhs_row_ref[...]       # [h_a     | h_s     | sq_a     | sq_s     | 1  ]
        h_a, h_s = row[:, :hid], row[:, hid:2 * hid]
        sq_a = row[:, 2 * hid:2 * hid + 1]
        sq_s = row[:, 2 * hid + 1:2 * hid + 2]
        ah_a, ah_s = acc[:, :hid], acc[:, hid:2 * hid]
        asq_a = acc[:, 2 * hid:2 * hid + 1]
        asq_s = acc[:, 2 * hid + 1:2 * hid + 2]
        deg = acc[:, 2 * hid + 2:2 * hid + 3]

        num_a = deg * sq_a + asq_a - 2.0 * jnp.sum(h_a * ah_a, axis=1,
                                                   keepdims=True)
        num_s = deg * sq_s + asq_s - 2.0 * jnp.sum(h_s * ah_s, axis=1,
                                                   keepdims=True)
        inv_deg = 1.0 / jnp.maximum(deg, 1.0)      # mean; 0 for isolated nodes
        dna_ref[...] = jnp.maximum(num_a, 0.0) * inv_deg
        dns_ref[...] = jnp.maximum(num_s, 0.0) * inv_deg


def neigh_diff_fused(h_a, h_s, adj_bf16, *, tm=256, tk=256):
    """Mean over incoming edges of ||h_i - h_j||^2, for both h_a and h_s,
    streaming each adjacency tile exactly once."""
    n, hid = h_a.shape
    tm = _pick_tile(n, tm)
    tk = _pick_tile(n, tk)
    f = 2 * hid + 3
    fp = _round_up(f, 128)
    sq_a = jnp.sum(h_a * h_a, axis=1, keepdims=True)
    sq_s = jnp.sum(h_s * h_s, axis=1, keepdims=True)
    rhs = jnp.concatenate(
        [h_a, h_s, sq_a, sq_s,
         jnp.ones((n, 1), jnp.float32),
         jnp.zeros((n, fp - f), jnp.float32)], axis=1)
    rhs_bf = rhs.astype(jnp.bfloat16)   # K-stream: half the restreamed DMA bytes

    kernel = functools.partial(_neigh_diff_kernel, hid=hid)
    cost = pl.CostEstimate(
        flops=2 * n * n * fp, transcendentals=0,
        bytes_accessed=n * n * 2 + (n // tm) * n * fp * 2 + n * fp * 4 + 2 * n * 4)
    dna, dns = pl.pallas_call(
        kernel,
        out_shape=(jax.ShapeDtypeStruct((n, 1), jnp.float32),
                   jax.ShapeDtypeStruct((n, 1), jnp.float32)),
        grid=(n // tm, n // tk),
        in_specs=[pl.BlockSpec((tm, tk), lambda i, k: (i, k)),   # adj rows x cols
                  pl.BlockSpec((tk, fp), lambda i, k: (k, 0)),   # rhs (bf16), K view
                  pl.BlockSpec((tm, fp), lambda i, k: (i, 0))],  # rhs (f32), row view
        out_specs=(pl.BlockSpec((tm, 1), lambda i, k: (i, 0)),
                   pl.BlockSpec((tm, 1), lambda i, k: (i, 0))),
        scratch_shapes=[pltpu.VMEM((tm, fp), jnp.float32)],
        compiler_params=pltpu.CompilerParams(
            dimension_semantics=("parallel", "arbitrary")),
        cost_estimate=cost,
    )(adj_bf16, rhs_bf, rhs)
    return dna.reshape(-1), dns.reshape(-1)   # matches .squeeze()


# ---------------------------------------------------------------------------
# Model glue (plain JAX): parameter setup + forward composition
# ---------------------------------------------------------------------------
def init_mlp(key, dims):
    params = []
    for i in range(len(dims) - 1):
        key, k = jax.random.split(key)
        w = 0.1 * jax.random.normal(k, (dims[i], dims[i + 1]), jnp.float32)
        b = jnp.zeros((1, dims[i + 1]), jnp.float32)
        params.append((w, b))
    return key, params


def init_done_base(key, x_dim, s_dim, hid_dim, num_layers):
    decoder_layers = num_layers // 2
    encoder_layers = num_layers - decoder_layers
    # TODO(synk): fused kernels assume 2-layer encoders/decoders (num_layers=4,
    # the pygod default); other depths would need a generic tiled-linear path.
    assert encoder_layers == 2 and decoder_layers == 2

    def channels(cin, chid, cout, nl):
        return [cin] + [chid] * (nl - 1) + [cout]

    key, attr_enc = init_mlp(key, channels(x_dim, hid_dim, hid_dim, encoder_layers))
    key, attr_dec = init_mlp(key, channels(hid_dim, hid_dim, x_dim, decoder_layers))
    key, struct_enc = init_mlp(key, channels(s_dim, hid_dim, hid_dim, encoder_layers))
    key, struct_dec = init_mlp(key, channels(hid_dim, hid_dim, s_dim, decoder_layers))
    return dict(attr_enc=attr_enc, attr_dec=attr_dec,
                struct_enc=struct_enc, struct_dec=struct_dec)


def edge_index_to_adj(edge_index, n):
    # adj[target, source] = 1  (flow = source_to_target)
    # Note: .set() deduplicates repeated edges (multigraphs would differ).
    src, dst = edge_index[0], edge_index[1]
    adj = jnp.zeros((n, n), jnp.float32)
    return adj.at[dst, src].set(1.0)


def done_base_forward(params, x, s, edge_index, *, tile_m=256, tile_k=256,
                      tile_n=256):
    n = x.shape[0]
    adj = edge_index_to_adj(edge_index, n).astype(jnp.bfloat16)  # 0/1 exact

    h_a, x_ = attr_branch(x, params['attr_enc'], params['attr_dec'], tm=tile_m)
    h_s, h_d1 = struct_encode(s, params['struct_enc'], params['struct_dec'][0],
                              tm=tile_m, tk=tile_k)
    s_ = struct_decode_out(h_d1, params['struct_dec'][1], tm=tile_m, tn=tile_n)
    dna, dns = neigh_diff_fused(h_a, h_s, adj, tm=tile_m, tk=tile_k)
    return x_, s_, h_a, h_s, dna, dns


# ---------------------------------------------------------------------------
# Pure-JAX reference (matches kernel precision choices where bf16 is used)
# ---------------------------------------------------------------------------
def done_base_reference(params, x, s, edge_index):
    hi = jax.lax.Precision.HIGHEST

    def mlp2(h, layers):
        (w1, b1), (w2, b2) = layers
        h1 = jnp.maximum(jnp.dot(h, w1, precision=hi) + b1, 0.0)
        return jnp.dot(h1, w2, precision=hi) + b2

    n = x.shape[0]
    adj = edge_index_to_adj(edge_index, n)
    h_a = mlp2(x, params['attr_enc'])
    x_ = mlp2(h_a, params['attr_dec'])
    (w1, b1), (w2, b2) = params['struct_enc']
    h1 = jnp.maximum(
        jnp.dot(s.astype(jnp.bfloat16), w1.astype(jnp.bfloat16),
                preferred_element_type=jnp.float32) + b1, 0.0)
    h_s = jnp.dot(h1, w2, precision=hi) + b2
    s_ = mlp2(h_s, params['struct_dec'])

    deg = adj.sum(axis=1, keepdims=True)

    def neigh_diff(h):
        diff = h[:, None, :] - h[None, :, :]
        d2 = jnp.sum(diff * diff, axis=-1)
        num = jnp.sum(adj * d2, axis=1, keepdims=True)
        return (num / jnp.maximum(deg, 1.0)).reshape(-1)

    return x_, s_, h_a, h_s, neigh_diff(h_a), neigh_diff(h_s)


def _relerr(a, b):
    return float(jnp.max(jnp.abs(a - b)) / (jnp.max(jnp.abs(b)) + 1e-6))


# ---------------------------------------------------------------------------
if __name__ == "__main__":
    N = 256          # number of nodes
    X_DIM = 128      # attribute dim (lane-dense: multiple of 128)
    S_DIM = N        # structure dim (dense per-node structure vector)
    HID = 128        # hidden dim (lane-dense: multiple of 128)
    NUM_LAYERS = 4   # -> 2 encoder layers, 2 decoder layers per branch
    TILE = 128       # exercises multi-tile grids at this small N

    key = jax.random.PRNGKey(0)
    k_x, k_s, k_p = jax.random.split(key, 3)

    x = jax.random.normal(k_x, (N, X_DIM), jnp.float32)
    s = jax.random.normal(k_s, (N, S_DIM), jnp.float32)

    # deterministic ring graph: i -> i+1 and i+1 -> i
    idx = jnp.arange(N)
    src = jnp.concatenate([idx, (idx + 1) % N])
    dst = jnp.concatenate([(idx + 1) % N, idx])
    edge_index = jnp.stack([src, dst], axis=0)   # [2, 2N]

    params = init_done_base(k_p, X_DIM, S_DIM, HID, NUM_LAYERS)

    fwd = jax.jit(functools.partial(done_base_forward,
                                    tile_m=TILE, tile_k=TILE, tile_n=TILE))
    outs = jax.block_until_ready(fwd(params, x, s, edge_index))
    x_, s_, h_a, h_s, dna, dns = outs

    assert x_.shape == (N, X_DIM)
    assert s_.shape == (N, S_DIM)
    assert h_a.shape == (N, HID)
    assert h_s.shape == (N, HID)
    assert dna.shape == (N,)
    assert dns.shape == (N,)
    for o in outs:
        assert bool(jnp.all(jnp.isfinite(o)))

    # numerical check vs. pure-JAX reference (loose tolerance: bf16 MXU paths)
    refs = jax.block_until_ready(jax.jit(done_base_reference)(params, x, s,
                                                              edge_index))
    names = ("x_", "s_", "h_a", "h_s", "dna", "dns")
    for name, got, ref in zip(names, outs, refs):
        err = _relerr(got, ref)
        assert err < 5e-2, f"{name}: rel err {err}"

    print("KERNEL_OK")
</pallas_src>

<mosaic_0001>
module attributes {stable_mosaic.version = 11 : i64} {
  func.func @_struct_enc_kernel(%arg0: i32, %arg1: i32, %arg2: memref<128x128xbf16, #tpu.memory_space<vmem>>, %arg3: memref<128x128xbf16, #tpu.memory_space<vmem>>, %arg4: memref<1x128xf32, #tpu.memory_space<vmem>>, %arg5: memref<128x128xf32, #tpu.memory_space<vmem>>, %arg6: memref<1x128xf32, #tpu.memory_space<vmem>>, %arg7: memref<128x128xf32, #tpu.memory_space<vmem>>, %arg8: memref<1x128xf32, #tpu.memory_space<vmem>>, %arg9: memref<128x128xf32, #tpu.memory_space<vmem>>, %arg10: memref<128x128xf32, #tpu.memory_space<vmem>>, %arg11: memref<128x128xf32, #tpu.memory_space<vmem>>) attributes {dimension_semantics = [#tpu.dimension_semantics<parallel>, #tpu.dimension_semantics<arbitrary>], iteration_bounds = array<i64: 2, 2>, scalar_prefetch = 0 : i64, scratch_operands = 1 : i64, tpu.core_type = #tpu.core_type<tc>, window_params = [{transform_indices = @transform_0, window_bounds = array<i64: 128, 128>}, {transform_indices = @transform_1, window_bounds = array<i64: 128, 128>}, {pipeline_mode = #tpu.pipeline_mode<synchronous>, transform_indices = @transform_2, window_bounds = array<i64: 1, 128>}, {pipeline_mode = #tpu.pipeline_mode<synchronous>, transform_indices = @transform_3, window_bounds = array<i64: 128, 128>}, {pipeline_mode = #tpu.pipeline_mode<synchronous>, transform_indices = @transform_4, window_bounds = array<i64: 1, 128>}, {pipeline_mode = #tpu.pipeline_mode<synchronous>, transform_indices = @transform_5, window_bounds = array<i64: 128, 128>}, {pipeline_mode = #tpu.pipeline_mode<synchronous>, transform_indices = @transform_6, window_bounds = array<i64: 1, 128>}, {transform_indices = @transform_7, window_bounds = array<i64: 128, 128>}, {transform_indices = @transform_8, window_bounds = array<i64: 128, 128>}]} {
    %c0_i32 = arith.constant 0 : i32
    %0 = arith.cmpi eq, %arg1, %c0_i32 : i32
    %1 = arith.extui %0 : i1 to i32
    %c0_i32_0 = arith.constant 0 : i32
    %2 = arith.cmpi ne, %1, %c0_i32_0 : i32
    scf.if %2 {
      %cst_9 = arith.constant 0.000000e+00 : f32
      %12 = vector.broadcast %cst_9 : f32 to vector<128x128xf32>
      %c0_10 = arith.constant 0 : index
      %c0_11 = arith.constant 0 : index
      %13 = vector.load %arg11[%c0_10, %c0_11] : memref<128x128xf32, #tpu.memory_space<vmem>>, vector<128x128xf32>
      tpu.vector_store %arg11[%c0_10, %c0_11], %12 {strides = array<i32>} : memref<128x128xf32, #tpu.memory_space<vmem>>, vector<128x128xf32>,
    } else {
    }
    %c0 = arith.constant 0 : index
    %c0_1 = arith.constant 0 : index
    %3 = vector.load %arg11[%c0, %c0_1] : memref<128x128xf32, #tpu.memory_space<vmem>>, vector<128x128xf32>
    %c0_2 = arith.constant 0 : index
    %c0_3 = arith.constant 0 : index
    %4 = vector.load %arg2[%c0_2, %c0_3] : memref<128x128xbf16, #tpu.memory_space<vmem>>, vector<128x128xbf16>
    %c0_4 = arith.constant 0 : index
    %c0_5 = arith.constant 0 : index
    %5 = vector.load %arg3[%c0_4, %c0_5] : memref<128x128xbf16, #tpu.memory_space<vmem>>, vector<128x128xbf16>
    %cst = arith.constant dense<0.000000e+00> : vector<128x128xf32>
    %6 = tpu.matmul %4, %5, %cst {dimension_numbers = #tpu.dot_dimension_numbers<[1], [0], [0], [1], [0, 0, 1, 1], [], []>} : vector<128x128xbf16>, vector<128x128xbf16>, vector<128x128xf32> -> vector<128x128xf32>
    %7 = arith.addf %3, %6 : vector<128x128xf32>
    %c0_6 = arith.constant 0 : index
    %c0_7 = arith.constant 0 : index
    %8 = vector.load %arg11[%c0_6, %c0_7] : memref<128x128xf32, #tpu.memory_space<vmem>>, vector<128x128xf32>
    tpu.vector_store %arg11[%c0_6, %c0_7], %7 {strides = array<i32>} : memref<128x128xf32, #tpu.memory_space<vmem>>, vector<128x128xf32>,
    %c1_i32 = arith.constant 1 : i32
    %9 = arith.cmpi eq, %arg1, %c1_i32 : i32
    %10 = arith.extui %9 : i1 to i32
    %c0_i32_8 = arith.constant 0 : i32
    %11 = arith.cmpi ne, %10, %c0_i32_8 : i32
    scf.if %11 {
      %c0_9 = arith.constant 0 : index
      %c0_10 = arith.constant 0 : index
      %12 = vector.load %arg11[%c0_9, %c0_10] : memref<128x128xf32, #tpu.memory_space<vmem>>, vector<128x128xf32>
      %c0_11 = arith.constant 0 : index
      %c0_12 = arith.constant 0 : index
      %13 = vector.load %arg4[%c0_11, %c0_12] : memref<1x128xf32, #tpu.memory_space<vmem>>, vector<1x128xf32>
      %14 = vector.broadcast %13 : vector<1x128xf32> to vector<128x128xf32>
      %15 = arith.addf %12, %14 : vector<128x128xf32>
      %cst_13 = arith.constant 0.000000e+00 : f32
      %16 = vector.broadcast %cst_13 : f32 to vector<128x128xf32>
      %17 = arith.maximumf %15, %16 : vector<128x128xf32>
      %c0_14 = arith.constant 0 : index
      %c0_15 = arith.constant 0 : index
      %18 = vector.load %arg5[%c0_14, %c0_15] : memref<128x128xf32, #tpu.memory_space<vmem>>, vector<128x128xf32>
      %cst_16 = arith.constant dense<0.000000e+00> : vector<128x128xf32>
      %19 = tpu.matmul %17, %18, %cst_16 {dimension_numbers = #tpu.dot_dimension_numbers<[1], [0], [0], [1], [0, 0, 1, 1], [], []>} : vector<128x128xf32>, vector<128x128xf32>, vector<128x128xf32> -> vector<128x128xf32>
      %c0_17 = arith.constant 0 : index
      %c0_18 = arith.constant 0 : index
      %20 = vector.load %arg6[%c0_17, %c0_18] : memref<1x128xf32, #tpu.memory_space<vmem>>, vector<1x128xf32>
      %21 = vector.broadcast %20 : vector<1x128xf32> to vector<128x128xf32>
      %22 = arith.addf %19, %21 : vector<128x128xf32>
      %c0_19 = arith.constant 0 : index
      %c0_20 = arith.constant 0 : index
      %23 = vector.load %arg7[%c0_19, %c0_20] : memref<128x128xf32, #tpu.memory_space<vmem>>, vector<128x128xf32>
      %cst_21 = arith.constant dense<0.000000e+00> : vector<128x128xf32>
      %24 = tpu.matmul %22, %23, %cst_21 {dimension_numbers = #tpu.dot_dimension_numbers<[1], [0], [0], [1], [0, 0, 1, 1], [], []>} : vector<128x128xf32>, vector<128x128xf32>, vector<128x128xf32> -> vector<128x128xf32>
      %c0_22 = arith.constant 0 : index
      %c0_23 = arith.constant 0 : index
      %25 = vector.load %arg8[%c0_22, %c0_23] : memref<1x128xf32, #tpu.memory_space<vmem>>, vector<1x128xf32>
      %26 = vector.broadcast %25 : vector<1x128xf32> to vector<128x128xf32>
      %27 = arith.addf %24, %26 : vector<128x128xf32>
      %cst_24 = arith.constant 0.000000e+00 : f32
      %28 = vector.broadcast %cst_24 : f32 to vector<128x128xf32>
      %29 = arith.maximumf %27, %28 : vector<128x128xf32>
      %c0_25 = arith.constant 0 : index
      %c0_26 = arith.constant 0 : index
      %30 = vector.load %arg9[%c0_25, %c0_26] : memref<128x128xf32, #tpu.memory_space<vmem>>, vector<128x128xf32>
      tpu.vector_store %arg9[%c0_25, %c0_26], %22 {strides = array<i32>} : memref<128x128xf32, #tpu.memory_space<vmem>>, vector<128x128xf32>,
      %c0_27 = arith.constant 0 : index
      %c0_28 = arith.constant 0 : index
      %31 = vector.load %arg10[%c0_27, %c0_28] : memref<128x128xf32, #tpu.memory_space<vmem>>, vector<128x128xf32>
      tpu.vector_store %arg10[%c0_27, %c0_28], %29 {strides = array<i32>} : memref<128x128xf32, #tpu.memory_space<vmem>>, vector<128x128xf32>,
    } else {
    }
    return
  }
  func.func @transform_0(%arg0: i32, %arg1: i32) -> (i32, i32) {
    %c0_i32 = arith.constant 0 : i32
    return %arg0, %arg1 : i32, i32
  }
  func.func @transform_1(%arg0: i32, %arg1: i32) -> (i32, i32) {
    %c0_i32 = arith.constant 0 : i32
    %c0_i32_0 = arith.constant 0 : i32
    return %arg1, %c0_i32 : i32, i32
  }
  func.func @transform_2(%arg0: i32, %arg1: i32) -> (i32, i32) {
    %c0_i32 = arith.constant 0 : i32
    %c0_i32_0 = arith.constant 0 : i32
    %c0_i32_1 = arith.constant 0 : i32
    return %c0_i32, %c0_i32_0 : i32, i32
  }
  func.func @transform_3(%arg0: i32, %arg1: i32) -> (i32, i32) {
    %c0_i32 = arith.constant 0 : i32
    %c0_i32_0 = arith.constant 0 : i32
    %c0_i32_1 = arith.constant 0 : i32
    return %c0_i32, %c0_i32_0 : i32, i32
  }
  func.func @transform_4(%arg0: i32, %arg1: i32) -> (i32, i32) {
    %c0_i32 = arith.constant 0 : i32
    %c0_i32_0 = arith.constant 0 : i32
    %c0_i32_1 = arith.constant 0 : i32
    return %c0_i32, %c0_i32_0 : i32, i32
  }
  func.func @transform_5(%arg0: i32, %arg1: i32) -> (i32, i32) {
    %c0_i32 = arith.constant 0 : i32
    %c0_i32_0 = arith.constant 0 : i32
    %c0_i32_1 = arith.constant 0 : i32
    return %c0_i32, %c0_i32_0 : i32, i32
  }
  func.func @transform_6(%arg0: i32, %arg1: i32) -> (i32, i32) {
    %c0_i32 = arith.constant 0 : i32
    %c0_i32_0 = arith.constant 0 : i32
    %c0_i32_1 = arith.constant 0 : i32
    return %c0_i32, %c0_i32_0 : i32, i32
  }
  func.func @transform_7(%arg0: i32, %arg1: i32) -> (i32, i32) {
    %c0_i32 = arith.constant 0 : i32
    %c0_i32_0 = arith.constant 0 : i32
    return %arg0, %c0_i32 : i32, i32
  }
  func.func @transform_8(%arg0: i32, %arg1: i32) -> (i32, i32) {
    %c0_i32 = arith.constant 0 : i32
    %c0_i32_0 = arith.constant 0 : i32
    return %arg0, %c0_i32 : i32, i32
  }
}

module attributes {stable_mosaic.version = 11 : i64} {
  func.func @_attr_branch_kernel(%arg0: i32, %arg1: memref<128x128xf32, #tpu.memory_space<vmem>>, %arg2: memref<128x128xf32, #tpu.memory_space<vmem>>, %arg3: memref<1x128xf32, #tpu.memory_space<vmem>>, %arg4: memref<128x128xf32, #tpu.memory_space<vmem>>, %arg5: memref<1x128xf32, #tpu.memory_space<vmem>>, %arg6: memref<128x128xf32, #tpu.memory_space<vmem>>, %arg7: memref<1x128xf32, #tpu.memory_space<vmem>>, %arg8: memref<128x128xf32, #tpu.memory_space<vmem>>, %arg9: memref<1x128xf32, #tpu.memory_space<vmem>>, %arg10: memref<128x128xf32, #tpu.memory_space<vmem>>, %arg11: memref<128x128xf32, #tpu.memory_space<vmem>>) attributes {dimension_semantics = [#tpu.dimension_semantics<parallel>], iteration_bounds = array<i64: 2>, scalar_prefetch = 0 : i64, scratch_operands = 0 : i64, tpu.core_type = #tpu.core_type<tc>, window_params = [{transform_indices = @transform_0, window_bounds = array<i64: 128, 128>}, {pipeline_mode = #tpu.pipeline_mode<synchronous>, transform_indices = @transform_1, window_bounds = array<i64: 128, 128>}, {pipeline_mode = #tpu.pipeline_mode<synchronous>, transform_indices = @transform_2, window_bounds = array<i64: 1, 128>}, {pipeline_mode = #tpu.pipeline_mode<synchronous>, transform_indices = @transform_3, window_bounds = array<i64: 128, 128>}, {pipeline_mode = #tpu.pipeline_mode<synchronous>, transform_indices = @transform_4, window_bounds = array<i64: 1, 128>}, {pipeline_mode = #tpu.pipeline_mode<synchronous>, transform_indices = @transform_5, window_bounds = array<i64: 128, 128>}, {pipeline_mode = #tpu.pipeline_mode<synchronous>, transform_indices = @transform_6, window_bounds = array<i64: 1, 128>}, {pipeline_mode = #tpu.pipeline_mode<synchronous>, transform_indices = @transform_7, window_bounds = array<i64: 128, 128>}, {pipeline_mode = #tpu.pipeline_mode<synchronous>, transform_indices = @transform_8, window_bounds = array<i64: 1, 128>}, {transform_indices = @transform_9, window_bounds = array<i64: 128, 128>}, {transform_indices = @transform_10, window_bounds = array<i64: 128, 128>}]} {
    %c0 = arith.constant 0 : index
    %c0_0 = arith.constant 0 : index
    %0 = vector.load %arg1[%c0, %c0_0] : memref<128x128xf32, #tpu.memory_space<vmem>>, vector<128x128xf32>
    %c0_1 = arith.constant 0 : index
    %c0_2 = arith.constant 0 : index
    %1 = vector.load %arg2[%c0_1, %c0_2] : memref<128x128xf32, #tpu.memory_space<vmem>>, vector<128x128xf32>
    %cst = arith.constant dense<0.000000e+00> : vector<128x128xf32>
    %2 = tpu.matmul %0, %1, %cst {dimension_numbers = #tpu.dot_dimension_numbers<[1], [0], [0], [1], [0, 0, 1, 1], [], []>} : vector<128x128xf32>, vector<128x128xf32>, vector<128x128xf32> -> vector<128x128xf32>
    %c0_3 = arith.constant 0 : index
    %c0_4 = arith.constant 0 : index
    %3 = vector.load %arg3[%c0_3, %c0_4] : memref<1x128xf32, #tpu.memory_space<vmem>>, vector<1x128xf32>
    %4 = vector.broadcast %3 : vector<1x128xf32> to vector<128x128xf32>
    %5 = arith.addf %2, %4 : vector<128x128xf32>
    %cst_5 = arith.constant 0.000000e+00 : f32
    %6 = vector.broadcast %cst_5 : f32 to vector<128x128xf32>
    %7 = arith.maximumf %5, %6 : vector<128x128xf32>
    %c0_6 = arith.constant 0 : index
    %c0_7 = arith.constant 0 : index
    %8 = vector.load %arg4[%c0_6, %c0_7] : memref<128x128xf32, #tpu.memory_space<vmem>>, vector<128x128xf32>
    %cst_8 = arith.constant dense<0.000000e+00> : vector<128x128xf32>
    %9 = tpu.matmul %7, %8, %cst_8 {dimension_numbers = #tpu.dot_dimension_numbers<[1], [0], [0], [1], [0, 0, 1, 1], [], []>} : vector<128x128xf32>, vector<128x128xf32>, vector<128x128xf32> -> vector<128x128xf32>
    %c0_9 = arith.constant 0 : index
    %c0_10 = arith.constant 0 : index
    %10 = vector.load %arg5[%c0_9, %c0_10] : memref<1x128xf32, #tpu.memory_space<vmem>>, vector<1x128xf32>
    %11 = vector.broadcast %10 : vector<1x128xf32> to vector<128x128xf32>
    %12 = arith.addf %9, %11 : vector<128x128xf32>
    %c0_11 = arith.constant 0 : index
    %c0_12 = arith.constant 0 : index
    %13 = vector.load %arg6[%c0_11, %c0_12] : memref<128x128xf32, #tpu.memory_space<vmem>>, vector<128x128xf32>
    %cst_13 = arith.constant dense<0.000000e+00> : vector<128x128xf32>
    %14 = tpu.matmul %12, %13, %cst_13 {dimension_numbers = #tpu.dot_dimension_numbers<[1], [0], [0], [1], [0, 0, 1, 1], [], []>} : vector<128x128xf32>, vector<128x128xf32>, vector<128x128xf32> -> vector<128x128xf32>
    %c0_14 = arith.constant 0 : index
    %c0_15 = arith.constant 0 : index
    %15 = vector.load %arg7[%c0_14, %c0_15] : memref<1x128xf32, #tpu.memory_space<vmem>>, vector<1x128xf32>
    %16 = vector.broadcast %15 : vector<1x128xf32> to vector<128x128xf32>
    %17 = arith.addf %14, %16 : vector<128x128xf32>
    %cst_16 = arith.constant 0.000000e+00 : f32
    %18 = vector.broadcast %cst_16 : f32 to vector<128x128xf32>
    %19 = arith.maximumf %17, %18 : vector<128x128xf32>
    %c0_17 = arith.constant 0 : index
    %c0_18 = arith.constant 0 : index
    %20 = vector.load %arg8[%c0_17, %c0_18] : memref<128x128xf32, #tpu.memory_space<vmem>>, vector<128x128xf32>
    %cst_19 = arith.constant dense<0.000000e+00> : vector<128x128xf32>
    %21 = tpu.matmul %19, %20, %cst_19 {dimension_numbers = #tpu.dot_dimension_numbers<[1], [0], [0], [1], [0, 0, 1, 1], [], []>} : vector<128x128xf32>, vector<128x128xf32>, vector<128x128xf32> -> vector<128x128xf32>
    %c0_20 = arith.constant 0 : index
    %c0_21 = arith.constant 0 : index
    %22 = vector.load %arg9[%c0_20, %c0_21] : memref<1x128xf32, #tpu.memory_space<vmem>>, vector<1x128xf32>
    %23 = vector.broadcast %22 : vector<1x128xf32> to vector<128x128xf32>
    %24 = arith.addf %21, %23 : vector<128x128xf32>
    %c0_22 = arith.constant 0 : index
    %c0_23 = arith.constant 0 : index
    %25 = vector.load %arg10[%c0_22, %c0_23] : memref<128x128xf32, #tpu.memory_space<vmem>>, vector<128x128xf32>
    tpu.vector_store %arg10[%c0_22, %c0_23], %12 {strides = array<i32>} : memref<128x128xf32, #tpu.memory_space<vmem>>, vector<128x128xf32>,
    %c0_24 = arith.constant 0 : index
    %c0_25 = arith.constant 0 : index
    %26 = vector.load %arg11[%c0_24, %c0_25] : memref<128x128xf32, #tpu.memory_space<vmem>>, vector<128x128xf32>
    tpu.vector_store %arg11[%c0_24, %c0_25], %24 {strides = array<i32>} : memref<128x128xf32, #tpu.memory_space<vmem>>, vector<128x128xf32>,
    return
  }
  func.func @transform_0(%arg0: i32) -> (i32, i32) {
    %c0_i32 = arith.constant 0 : i32
    %c0_i32_0 = arith.constant 0 : i32
    return %arg0, %c0_i32 : i32, i32
  }
  func.func @transform_1(%arg0: i32) -> (i32, i32) {
    %c0_i32 = arith.constant 0 : i32
    %c0_i32_0 = arith.constant 0 : i32
    %c0_i32_1 = arith.constant 0 : i32
    return %c0_i32, %c0_i32_0 : i32, i32
  }
  func.func @transform_2(%arg0: i32) -> (i32, i32) {
    %c0_i32 = arith.constant 0 : i32
    %c0_i32_0 = arith.constant 0 : i32
    %c0_i32_1 = arith.constant 0 : i32
    return %c0_i32, %c0_i32_0 : i32, i32
  }
  func.func @transform_3(%arg0: i32) -> (i32, i32) {
    %c0_i32 = arith.constant 0 : i32
    %c0_i32_0 = arith.constant 0 : i32
    %c0_i32_1 = arith.constant 0 : i32
    return %c0_i32, %c0_i32_0 : i32, i32
  }
  func.func @transform_4(%arg0: i32) -> (i32, i32) {
    %c0_i32 = arith.constant 0 : i32
    %c0_i32_0 = arith.constant 0 : i32
    %c0_i32_1 = arith.constant 0 : i32
    return %c0_i32, %c0_i32_0 : i32, i32
  }
  func.func @transform_5(%arg0: i32) -> (i32, i32) {
    %c0_i32 = arith.constant 0 : i32
    %c0_i32_0 = arith.constant 0 : i32
    %c0_i32_1 = arith.constant 0 : i32
    return %c0_i32, %c0_i32_0 : i32, i32
  }
  func.func @transform_6(%arg0: i32) -> (i32, i32) {
    %c0_i32 = arith.constant 0 : i32
    %c0_i32_0 = arith.constant 0 : i32
    %c0_i32_1 = arith.constant 0 : i32
    return %c0_i32, %c0_i32_0 : i32, i32
  }
  func.func @transform_7(%arg0: i32) -> (i32, i32) {
    %c0_i32 = arith.constant 0 : i32
    %c0_i32_0 = arith.constant 0 : i32
    %c0_i32_1 = arith.constant 0 : i32
    return %c0_i32, %c0_i32_0 : i32, i32
  }
  func.func @transform_8(%arg0: i32) -> (i32, i32) {
    %c0_i32 = arith.constant 0 : i32
    %c0_i32_0 = arith.constant 0 : i32
    %c0_i32_1 = arith.constant 0 : i32
    return %c0_i32, %c0_i32_0 : i32, i32
  }
  func.func @transform_9(%arg0: i32) -> (i32, i32) {
    %c0_i32 = arith.constant 0 : i32
    %c0_i32_0 = arith.constant 0 : i32
    return %arg0, %c0_i32 : i32, i32
  }
  func.func @transform_10(%arg0: i32) -> (i32, i32) {
    %c0_i32 = arith.constant 0 : i32
    %c0_i32_0 = arith.constant 0 : i32
    return %arg0, %c0_i32 : i32, i32
  }
}

module attributes {stable_mosaic.version = 11 : i64} {
  func.func @_neigh_diff_kernel(%arg0: i32, %arg1: i32, %arg2: memref<128x128xbf16, #tpu.memory_space<vmem>>, %arg3: memref<128x384xbf16, #tpu.memory_space<vmem>>, %arg4: memref<128x384xf32, #tpu.memory_space<vmem>>, %arg5: memref<128x1xf32, #tpu.memory_space<vmem>>, %arg6: memref<128x1xf32, #tpu.memory_space<vmem>>, %arg7: memref<128x384xf32, #tpu.memory_space<vmem>>) attributes {dimension_semantics = [#tpu.dimension_semantics<parallel>, #tpu.dimension_semantics<arbitrary>], iteration_bounds = array<i64: 2, 2>, scalar_prefetch = 0 : i64, scratch_operands = 1 : i64, tpu.core_type = #tpu.core_type<tc>, window_params = [{transform_indices = @transform_0, window_bounds = array<i64: 128, 128>}, {transform_indices = @transform_1, window_bounds = array<i64: 128, 384>}, {transform_indices = @transform_2, window_bounds = array<i64: 128, 384>}, {transform_indices = @transform_3, window_bounds = array<i64: 128, 1>}, {transform_indices = @transform_4, window_bounds = array<i64: 128, 1>}]} {
    %c0_i32 = arith.constant 0 : i32
    %0 = arith.cmpi eq, %arg1, %c0_i32 : i32
    %1 = arith.extui %0 : i1 to i32
    %c0_i32_0 = arith.constant 0 : i32
    %2 = arith.cmpi ne, %1, %c0_i32_0 : i32
    scf.if %2 {
      %cst_9 = arith.constant 0.000000e+00 : f32
      %12 = vector.broadcast %cst_9 : f32 to vector<128x384xf32>
      %c0_10 = arith.constant 0 : index
      %c0_11 = arith.constant 0 : index
      %13 = vector.load %arg7[%c0_10, %c0_11] : memref<128x384xf32, #tpu.memory_space<vmem>>, vector<128x384xf32>
      tpu.vector_store %arg7[%c0_10, %c0_11], %12 {strides = array<i32>} : memref<128x384xf32, #tpu.memory_space<vmem>>, vector<128x384xf32>,
    } else {
    }
    %c0 = arith.constant 0 : index
    %c0_1 = arith.constant 0 : index
    %3 = vector.load %arg7[%c0, %c0_1] : memref<128x384xf32, #tpu.memory_space<vmem>>, vector<128x384xf32>
    %c0_2 = arith.constant 0 : index
    %c0_3 = arith.constant 0 : index
    %4 = vector.load %arg2[%c0_2, %c0_3] : memref<128x128xbf16, #tpu.memory_space<vmem>>, vector<128x128xbf16>
    %c0_4 = arith.constant 0 : index
    %c0_5 = arith.constant 0 : index
    %5 = vector.load %arg3[%c0_4, %c0_5] : memref<128x384xbf16, #tpu.memory_space<vmem>>, vector<128x384xbf16>
    %cst = arith.constant dense<0.000000e+00> : vector<128x384xf32>
    %6 = tpu.matmul %4, %5, %cst {dimension_numbers = #tpu.dot_dimension_numbers<[1], [0], [0], [1], [0, 0, 1, 1], [], []>} : vector<128x128xbf16>, vector<128x384xbf16>, vector<128x384xf32> -> vector<128x384xf32>
    %7 = arith.addf %3, %6 : vector<128x384xf32>
    %c0_6 = arith.constant 0 : index
    %c0_7 = arith.constant 0 : index
    %8 = vector.load %arg7[%c0_6, %c0_7] : memref<128x384xf32, #tpu.memory_space<vmem>>, vector<128x384xf32>
    tpu.vector_store %arg7[%c0_6, %c0_7], %7 {strides = array<i32>} : memref<128x384xf32, #tpu.memory_space<vmem>>, vector<128x384xf32>,
    %c1_i32 = arith.constant 1 : i32
    %9 = arith.cmpi eq, %arg1, %c1_i32 : i32
    %10 = arith.extui %9 : i1 to i32
    %c0_i32_8 = arith.constant 0 : i32
    %11 = arith.cmpi ne, %10, %c0_i32_8 : i32
    scf.if %11 {
      %c0_9 = arith.constant 0 : index
      %c0_10 = arith.constant 0 : index
      %12 = vector.load %arg7[%c0_9, %c0_10] : memref<128x384xf32, #tpu.memory_space<vmem>>, vector<128x384xf32>
      %c0_11 = arith.constant 0 : index
      %c0_12 = arith.constant 0 : index
      %13 = vector.load %arg4[%c0_11, %c0_12] : memref<128x384xf32, #tpu.memory_space<vmem>>, vector<128x384xf32>
      %14 = vector.extract_strided_slice %13 {offsets = [0, 0], sizes = [128, 128], strides = [1, 1]} : vector<128x384xf32> to vector<128x128xf32>
      %15 = vector.extract_strided_slice %13 {offsets = [0, 128], sizes = [128, 128], strides = [1, 1]} : vector<128x384xf32> to vector<128x128xf32>
      %16 = vector.extract_strided_slice %13 {offsets = [0, 256], sizes = [128, 1], strides = [1, 1]} : vector<128x384xf32> to vector<128x1xf32>
      %17 = vector.extract_strided_slice %13 {offsets = [0, 257], sizes = [128, 1], strides = [1, 1]} : vector<128x384xf32> to vector<128x1xf32>
      %18 = vector.extract_strided_slice %12 {offsets = [0, 0], sizes = [128, 128], strides = [1, 1]} : vector<128x384xf32> to vector<128x128xf32>
      %19 = vector.extract_strided_slice %12 {offsets = [0, 128], sizes = [128, 128], strides = [1, 1]} : vector<128x384xf32> to vector<128x128xf32>
      %20 = vector.extract_strided_slice %12 {offsets = [0, 256], sizes = [128, 1], strides = [1, 1]} : vector<128x384xf32> to vector<128x1xf32>
      %21 = vector.extract_strided_slice %12 {offsets = [0, 257], sizes = [128, 1], strides = [1, 1]} : vector<128x384xf32> to vector<128x1xf32>
      %22 = vector.extract_strided_slice %12 {offsets = [0, 258], sizes = [128, 1], strides = [1, 1]} : vector<128x384xf32> to vector<128x1xf32>
      %23 = arith.mulf %22, %16 : vector<128x1xf32>
      %24 = arith.addf %23, %20 : vector<128x1xf32>
      %25 = arith.mulf %14, %18 : vector<128x128xf32>
      %cst_13 = arith.constant dense<0.000000e+00> : vector<128xf32>
      %26 = vector.multi_reduction <add>, %25, %cst_13 [1] : vector<128x128xf32> to vector<128xf32>
      %27 = vector.shape_cast %26 : vector<128xf32> to vector<128x1xf32>
      %cst_14 = arith.constant 2.000000e+00 : f32
      %28 = vector.broadcast %cst_14 : f32 to vector<128x1xf32>
      %29 = arith.mulf %28, %27 : vector<128x1xf32>
      %30 = arith.subf %24, %29 : vector<128x1xf32>
      %31 = arith.mulf %22, %17 : vector<128x1xf32>
      %32 = arith.addf %31, %21 : vector<128x1xf32>
      %33 = arith.mulf %15, %19 : vector<128x128xf32>
      %cst_15 = arith.constant dense<0.000000e+00> : vector<128xf32>
      %34 = vector.multi_reduction <add>, %33, %cst_15 [1] : vector<128x128xf32> to vector<128xf32>
      %35 = vector.shape_cast %34 : vector<128xf32> to vector<128x1xf32>
      %cst_16 = arith.constant 2.000000e+00 : f32
      %36 = vector.broadcast %cst_16 : f32 to vector<128x1xf32>
      %37 = arith.mulf %36, %35 : vector<128x1xf32>
      %38 = arith.subf %32, %37 : vector<128x1xf32>
      %cst_17 = arith.constant 1.000000e+00 : f32
      %39 = vector.broadcast %cst_17 : f32 to vector<128x1xf32>
      %40 = arith.maximumf %22, %39 : vector<128x1xf32>
      %cst_18 = arith.constant 1.000000e+00 : f32
      %41 = vector.broadcast %cst_18 : f32 to vector<128x1xf32>
      %42 = arith.divf %41, %40 : vector<128x1xf32>
      %cst_19 = arith.constant 0.000000e+00 : f32
      %43 = vector.broadcast %cst_19 : f32 to vector<128x1xf32>
      %44 = arith.maximumf %30, %43 : vector<128x1xf32>
      %45 = arith.mulf %44, %42 : vector<128x1xf32>
      %c0_20 = arith.constant 0 : index
      %c0_21 = arith.constant 0 : index
      %46 = vector.load %arg5[%c0_20, %c0_21] : memref<128x1xf32, #tpu.memory_space<vmem>>, vector<128x1xf32>
      tpu.vector_store %arg5[%c0_20, %c0_21], %45 {strides = array<i32>} : memref<128x1xf32, #tpu.memory_space<vmem>>, vector<128x1xf32>,
      %cst_22 = arith.constant 0.000000e+00 : f32
      %47 = vector.broadcast %cst_22 : f32 to vector<128x1xf32>
      %48 = arith.maximumf %38, %47 : vector<128x1xf32>
      %49 = arith.mulf %48, %42 : vector<128x1xf32>
      %c0_23 = arith.constant 0 : index
      %c0_24 = arith.constant 0 : index
      %50 = vector.load %arg6[%c0_23, %c0_24] : memref<128x1xf32, #tpu.memory_space<vmem>>, vector<128x1xf32>
      tpu.vector_store %arg6[%c0_23, %c0_24], %49 {strides = array<i32>} : memref<128x1xf32, #tpu.memory_space<vmem>>, vector<128x1xf32>,
    } else {
    }
    return
  }
  func.func @transform_0(%arg0: i32, %arg1: i32) -> (i32, i32) {
    %c0_i32 = arith.constant 0 : i32
    return %arg0, %arg1 : i32, i32
  }
  func.func @transform_1(%arg0: i32, %arg1: i32) -> (i32, i32) {
    %c0_i32 = arith.constant 0 : i32
    %c0_i32_0 = arith.constant 0 : i32
    return %arg1, %c0_i32 : i32, i32
  }
  func.func @transform_2(%arg0: i32, %arg1: i32) -> (i32, i32) {
    %c0_i32 = arith.constant 0 : i32
    %c0_i32_0 = arith.constant 0 : i32
    return %arg0, %c0_i32 : i32, i32
  }
  func.func @transform_3(%arg0: i32, %arg1: i32) -> (i32, i32) {
    %c0_i32 = arith.constant 0 : i32
    %c0_i32_0 = arith.constant 0 : i32
    return %arg0, %c0_i32 : i32, i32
  }
  func.func @transform_4(%arg0: i32, %arg1: i32) -> (i32, i32) {
    %c0_i32 = arith.constant 0 : i32
    %c0_i32_0 = arith.constant 0 : i32
    return %arg0, %c0_i32 : i32, i32
  }
}

module attributes {stable_mosaic.version = 11 : i64} {
  func.func @_struct_dec_kernel(%arg0: i32, %arg1: i32, %arg2: memref<128x128xf32, #tpu.memory_space<vmem>>, %arg3: memref<128x128xf32, #tpu.memory_space<vmem>>, %arg4: memref<1x128xf32, #tpu.memory_space<vmem>>, %arg5: memref<128x128xf32, #tpu.memory_space<vmem>>) attributes {dimension_semantics = [#tpu.dimension_semantics<parallel>, #tpu.dimension_semantics<parallel>], iteration_bounds = array<i64: 2, 2>, scalar_prefetch = 0 : i64, scratch_operands = 0 : i64, tpu.core_type = #tpu.core_type<tc>, window_params = [{transform_indices = @transform_0, window_bounds = array<i64: 128, 128>}, {transform_indices = @transform_1, window_bounds = array<i64: 128, 128>}, {transform_indices = @transform_2, window_bounds = array<i64: 1, 128>}, {transform_indices = @transform_3, window_bounds = array<i64: 128, 128>}]} {
    %c0 = arith.constant 0 : index
    %c0_0 = arith.constant 0 : index
    %0 = vector.load %arg2[%c0, %c0_0] : memref<128x128xf32, #tpu.memory_space<vmem>>, vector<128x128xf32>
    %c0_1 = arith.constant 0 : index
    %c0_2 = arith.constant 0 : index
    %1 = vector.load %arg3[%c0_1, %c0_2] : memref<128x128xf32, #tpu.memory_space<vmem>>, vector<128x128xf32>
    %cst = arith.constant dense<0.000000e+00> : vector<128x128xf32>
    %2 = tpu.matmul %0, %1, %cst {dimension_numbers = #tpu.dot_dimension_numbers<[1], [0], [0], [1], [0, 0, 1, 1], [], []>} : vector<128x128xf32>, vector<128x128xf32>, vector<128x128xf32> -> vector<128x128xf32>
    %c0_3 = arith.constant 0 : index
    %c0_4 = arith.constant 0 : index
    %3 = vector.load %arg4[%c0_3, %c0_4] : memref<1x128xf32, #tpu.memory_space<vmem>>, vector<1x128xf32>
    %4 = vector.broadcast %3 : vector<1x128xf32> to vector<128x128xf32>
    %5 = arith.addf %2, %4 : vector<128x128xf32>
    %c0_5 = arith.constant 0 : index
    %c0_6 = arith.constant 0 : index
    %6 = vector.load %arg5[%c0_5, %c0_6] : memref<128x128xf32, #tpu.memory_space<vmem>>, vector<128x128xf32>
    tpu.vector_store %arg5[%c0_5, %c0_6], %5 {strides = array<i32>} : memref<128x128xf32, #tpu.memory_space<vmem>>, vector<128x128xf32>,
    return
  }
  func.func @transform_0(%arg0: i32, %arg1: i32) -> (i32, i32) {
    %c0_i32 = arith.constant 0 : i32
    %c0_i32_0 = arith.constant 0 : i32
    return %arg0, %c0_i32 : i32, i32
  }
  func.func @transform_1(%arg0: i32, %arg1: i32) -> (i32, i32) {
    %c0_i32 = arith.constant 0 : i32
    %c0_i32_0 = arith.constant 0 : i32
    return %c0_i32, %arg1 : i32, i32
  }
  func.func @transform_2(%arg0: i32, %arg1: i32) -> (i32, i32) {
    %c0_i32 = arith.constant 0 : i32
    %c0_i32_0 = arith.constant 0 : i32
    return %c0_i32, %arg1 : i32, i32
  }
  func.func @transform_3(%arg0: i32, %arg1: i32) -> (i32, i32) {
    %c0_i32 = arith.constant 0 : i32
    return %arg0, %arg1 : i32, i32
  }
}

</mosaic_0001>

<bundles_post_ra>
// kernel: done_base_forward.4
= control target key start
LH: loop header
LB: loop body
LE: loop exit
PB: predicated region body
PF: predicated region fallthrough
CT: control target
= control target key end

     0   :  { %16 = vsyncpa [#allocation3], 0  ;;  %s2274_s0 = inlined_call_operand.vmem [shape: f32[256,128], index: 0, kind: input, shape index: {}]   ;;  %s2275_s1 = inlined_call_operand.vmem [shape: f32[128,128], index: 1, kind: input, shape index: {}]   ;;  %s2276_s2 = inlined_call_operand.vmem [shape: f32[1,128], index: 2, kind: input, shape index: {}]   ;;  %s2277_s3 = inlined_call_operand.vmem [shape: f32[128,128], index: 3, kind: input, shape index: {}]   ;;  %s2278_s4 = inlined_call_operand.vmem [shape: f32[1,128], index: 4, kind: input, shape index: {}]   ;;  %s2279_s5 = inlined_call_operand.vmem [shape: f32[128,128], index: 5, kind: input, shape index: {}]   ;;  %s2280_s6 = inlined_call_operand.vmem [shape: f32[1,128], index: 6, kind: input, shape index: {}]   ;;  %s2281_s7 = inlined_call_operand.vmem [shape: f32[128,128], index: 7, kind: input, shape index: {}]   ;;  %s2282_s8 = inlined_call_operand.vmem [shape: f32[1,128], index: 8, kind: input, shape index: {}]   ;;  %s2283_s9 = inlined_call_operand.vmem [shape: f32[256,128], index: 9, kind: output, shape index: {0}]   ;;  %s2284_s10 = inlined_call_operand.hbm [shape: f32[256,128], index: 10, kind: output, shape index: {1}]  }
   0x1   :  { %18 = vsyncpa [#allocation3 + $0x1], 0  ;;  %s1899_s13 = smov 0   ;;  %s1901_s14 = smov 0  }
   0x2   :  { %s1903_s15 = smov 0   ;;  %s1905_s16 = smov 0  }
   0x3 LB: > { %2286 = sst [smem:[#allocation5_spill]] %s1835_s15  ;;  %s1920_s17 = sadd.s32 4294967295, %s1839_s16   ;;  %s1839_s16 = sphi %s1905_s16, %s2294_s16   ;;  %s1835_s15 = sphi %s1903_s15, %s2291_s15   ;;  %s1831_s14 = sphi %s1901_s14, %s2293_s14   ;;  %s1827_s13 = sphi %s1899_s13, %s2292_s13  }
   0x4   : > { %s1237_s18 = sadd.s32 4294967294, %s1839_s16   ;;  %s1924_s19 = sadd.s32 1, %s1839_s16  }
   0x5   : > { %s251_s20 = sadd.s32 1, %s1835_s15  ;;  %s248_s21 = ssub.s32 %s1839_s16, %s1924_s19 }
   0x6   : > { %p261_p0 = scmp.ne.s32.totalorder %s1835_s15, %s1831_s14  ;;  %p249_p1 = scmp.eq.s32.totalorder %s248_s21, 0 }
   0x7   : > { %p262_p2 = scmp.eq.s32.totalorder %s1920_s17, 1  ;;  %p267_p3 = scmp.ne.s32.totalorder %s1831_s14, %s1827_s13 }
   0x8   : > { %p268_p4 = scmp.eq.s32.totalorder %s1237_s18, 1  ;;  %p1240_p7 = scmp.ge.s32.totalorder %s1839_s16, 1 }
   0x9   : > { %s1935_s22 = scalar_select %p249_p1, %s1835_s15, %s251_s20  }
   0xa   : > { %p1937_p5 = por %p262_p2, %p261_p0  ;;  %p1941_p6 = por %p268_p4, %p267_p3 }
   0xb   : > { %2287 = sst [smem:[#allocation6_spill]] %s1935_s22  ;;  %p319_p8 = scmp.lt.s32.totalorder %s1839_s16, 3 }
   0xd   : > { %p320_p9 = pnand %p1240_p7, %p319_p8 }
   0xe   : > { %v391_v0 = vld [vmem:[%s2275_s1] sm:$0xff] (!%p320_p9)  ;;  %v392_v1 = vld [vmem:[%s2275_s1 + $0x8] sm:$0xff] (!%p320_p9)  ;;  %v393_v2 = vld [vmem:[%s2275_s1 + $0x10] sm:$0xff] (!%p320_p9)  ;;  %s1242_s11 = sshll.u32 (!%p320_p9), %s1920_s17, 4  ;;  %s359_s25 = sand.u32 (!%p320_p9), 1, %s1831_s14  }
   0xf   : > { %323 = sbr.rel (%p320_p9) target bundleno = 959 (0x3bf), region = 56  ;;  %v1608_v3 = vpack.c.bf16 (!%p320_p9), %v392_v1, %v391_v0  ;;  %v394_v4 = vld [vmem:[%s2275_s1 + $0x18] sm:$0xff] (!%p320_p9)  ;;  %p363_p10 = scmp.lt.s32.totalorder (!%p320_p9), %s1242_s11, 31  ;;  %v395_v6 = vld [vmem:[%s2275_s1 + $0x20] sm:$0xff] (!%p320_p9)  ;;  %v396_v7 = vld [vmem:[%s2275_s1 + $0x28] sm:$0xff] (!%p320_p9) }
  0x10   : > { %v1612_v5 = vpack.c.bf16 (!%p320_p9), %v394_v4, %v393_v2  ;;  %v1616_v8 = vpack.c.bf16 (!%p320_p9), %v396_v7, %v395_v6  ;;  %v397_v9 = vld [vmem:[%s2275_s1 + $0x30] sm:$0xff] (!%p320_p9)  ;;  %v575_v10 = vld [vmem:[%s2277_s3] sm:$0xff] (!%p320_p9)  ;;  %v576_v11 = vld [vmem:[%s2277_s3 + $0x8] sm:$0xff] (!%p320_p9)  ;;  %s1241_s26 = sshll.u32 (!%p320_p9), %s359_s25, 7  ;;  %s1255_s12 = sshll.u32 (!%p320_p9), %s1920_s17, 11 }
  0x11   : > { %1609 = vmatprep.subr.bf16.mxu0 (!%p320_p9), %v1608_v3  ;;  %v398_v12 = vld [vmem:[%s2275_s1 + $0x38] sm:$0xff] (!%p320_p9)  ;;  %v1640_v13 = vpack.c.bf16 (!%p320_p9), %v576_v11, %v575_v10  ;;  %v577_v14 = vld [vmem:[%s2277_s3 + $0x10] sm:$0xff] (!%p320_p9)  ;;  %v399_v19 = vld [vmem:[%s2275_s1 + $0x40] sm:$0xff] (!%p320_p9)  ;;  %s2204_s30 = scalar_lea.vmem (!%p320_p9), [#allocation2], %s1241_s26  ;;  %s2225_s18 = scalar_lea.hbm (!%p320_p9), %s2284_s10, %s1255_s12 }
  0x12   : > { %1611 = vmatpush3.bf16.msra.mxu0 (!%p320_p9), %v1608_v3  ;;  %v578_v15 = vld [vmem:[%s2277_s3 + $0x18] sm:$0xff] (!%p320_p9)  ;;  %v1620_v18 = vpack.c.bf16 (!%p320_p9), %v398_v12, %v397_v9  ;;  %v400_v20 = vld [vmem:[%s2275_s1 + $0x48] sm:$0xff] (!%p320_p9)  ;;  %v579_v21 = vld [vmem:[%s2277_s3 + $0x20] sm:$0xff] (!%p320_p9)  ;;  %s2233_s17 = scalar_lea.sflag (!%p320_p9), [#allocation3], %s359_s25  ;;  %s1841_s21 = smov (!%p320_p9), [#allocation2]  }
  0x13   : > { %1613 = vmatprep.subr.bf16.mxu0 (!%p320_p9), %v1612_v5  ;;  %v1644_v17 = vpack.c.bf16 (!%p320_p9), %v578_v15, %v577_v14  ;;  %1641 = vmatprep.subr.bf16.mxu1 (!%p320_p9), %v1640_v13  ;;  %v580_v22 = vld [vmem:[%s2277_s3 + $0x28] sm:$0xff] (!%p320_p9)  ;;  %v581_v23 = vld [vmem:[%s2277_s3 + $0x30] sm:$0xff] (!%p320_p9)  ;;  %v1624_v24 = vpack.c.bf16 (!%p320_p9), %v400_v20, %v399_v19  ;;  %v582_v26 = vld [vmem:[%s2277_s3 + $0x38] sm:$0xff] (!%p320_p9) }
  0x14   : > { %1643 = vmatpush3.bf16.msra.mxu1 (!%p320_p9), %v1640_v13  ;;  %v1648_v25 = vpack.c.bf16 (!%p320_p9), %v580_v22, %v579_v21  ;;  %v401_v27 = vld [vmem:[%s2275_s1 + $0x50] sm:$0xff] (!%p320_p9)  ;;  %v402_v28 = vld [vmem:[%s2275_s1 + $0x58] sm:$0xff] (!%p320_p9)  ;;  %v1652_v29 = vpack.c.bf16 (!%p320_p9), %v582_v26, %v581_v23  ;;  %v583_v30 = vld [vmem:[%s2277_s3 + $0x40] sm:$0xff] (!%p320_p9) }
  0x15   : > { %1645 = vmatprep.subr.bf16.mxu1 (!%p320_p9), %v1644_v17  ;;  %v584_v31 = vld [vmem:[%s2277_s3 + $0x48] sm:$0xff] (!%p320_p9)  ;;  %v1628_v32 = vpack.c.bf16 (!%p320_p9), %v402_v28, %v401_v27  ;;  %v403_v33 = vld [vmem:[%s2275_s1 + $0x60] sm:$0xff] (!%p320_p9)  ;;  %v585_v36 = vld [vmem:[%s2277_s3 + $0x50] sm:$0xff] (!%p320_p9) }
  0x16   : > { %s2296_s11 = smov (!%p363_p10, %s1242_s11), 31  ;;  %1615 = vmatpush3.bf16.msra.mxu0 %v1612_v5  ;;  %v404_v34 = vld [vmem:[%s2275_s1 + $0x68] sm:$0xff]  ;;  %v1656_v35 = vpack.c.bf16 %v584_v31, %v583_v30  ;;  %v586_v37 = vld [vmem:[%s2277_s3 + $0x58] sm:$0xff]  ;;  %v405_v39 = vld [vmem:[%s2275_s1 + $0x70] sm:$0xff] }
  0x17   : > { %s1243_s29 = sshll.u32 %s2296_s11, 3  ;;  %1617 = vmatprep.subr.bf16.mxu0 %v1616_v8  ;;  %v1632_v38 = vpack.c.bf16 %v404_v34, %v403_v33  ;;  %v406_v40 = vld [vmem:[%s2275_s1 + $0x78] sm:$0xff]  ;;  %v1660_v41 = vpack.c.bf16 %v586_v37, %v585_v36  ;;  %v587_v42 = vld [vmem:[%s2277_s3 + $0x60] sm:$0xff]  ;;  %v588_v43 = vld [vmem:[%s2277_s3 + $0x68] sm:$0xff] }
  0x18   : > { %s1986_s15 = scalar_lea.vmem %s2274_s0, %s1243_s29  ;;  %1647 = vmatpush3.bf16.msra.mxu1 %v1644_v17  ;;  %v1636_v44 = vpack.c.bf16 %v406_v40, %v405_v39  ;;  %v1664_v45 = vpack.c.bf16 %v588_v43, %v587_v42  ;;  %v589_v61 = vld [vmem:[%s2277_s3 + $0x70] sm:$0xff]  ;;  %v590_v62 = vld [vmem:[%s2277_s3 + $0x78] sm:$0xff]  ;;  %v743_v0 = vld [vmem:[%s2279_s5] sm:$0xff]  ;;  %s2171_s22 = scalar_lea.vmem %s2283_s9, %s1243_s29 }
  0x19   : > { %v375_v16 = vld [vmem:[%s1986_s15] sm:$0xff]  ;;  %1649 = vmatprep.subr.bf16.mxu1 %v1648_v25  ;;  %v376_v46 = vld [vmem:[%s1986_s15 + $0x8] sm:$0xff]  ;;  %v377_v47 = vld [vmem:[%s1986_s15 + $0x10] sm:$0xff]  ;;  %v1668_v63 = vpack.c.bf16 %v590_v62, %v589_v61 }
  0x1a   : > { %1416 = vmatprep.mubr.f32.mxu0 %v375_v16  ;;  %1619 = vmatpush3.bf16.msra.mxu0 %v1616_v8  ;;  %v378_v48 = vld [vmem:[%s1986_s15 + $0x18] sm:$0xff]  ;;  %v379_v49 = vld [vmem:[%s1986_s15 + $0x20] sm:$0xff]  ;;  %v380_v50 = vld [vmem:[%s1986_s15 + $0x28] sm:$0xff] }
  0x1b   : > { %1621 = vmatprep.subr.bf16.mxu0 %v1620_v18  ;;  %v381_v51 = vld [vmem:[%s1986_s15 + $0x30] sm:$0xff]  ;;  %v382_v52 = vld [vmem:[%s1986_s15 + $0x38] sm:$0xff]  ;;  %v383_v53 = vld [vmem:[%s1986_s15 + $0x40] sm:$0xff] }
  0x1c   : > { %1651 = vmatpush3.bf16.msra.mxu1 %v1648_v25  ;;  %v384_v54 = vld [vmem:[%s1986_s15 + $0x48] sm:$0xff]  ;;  %v385_v55 = vld [vmem:[%s1986_s15 + $0x50] sm:$0xff]  ;;  %v386_v56 = vld [vmem:[%s1986_s15 + $0x58] sm:$0xff] }
  0x1d   : > { %1653 = vmatprep.subr.bf16.mxu1 %v1652_v29  ;;  %v387_v57 = vld [vmem:[%s1986_s15 + $0x60] sm:$0xff]  ;;  %v388_v58 = vld [vmem:[%s1986_s15 + $0x68] sm:$0xff]  ;;  %v389_v59 = vld [vmem:[%s1986_s15 + $0x70] sm:$0xff] }
  0x1e   : > { %1623 = vmatpush3.bf16.msra.mxu0 %v1620_v18  ;;  %v390_v60 = vld [vmem:[%s1986_s15 + $0x78] sm:$0xff]  ;;  %v744_v1 = vld [vmem:[%s2279_s5 + $0x8] sm:$0xff]  ;;  %v745_v2 = vld [vmem:[%s2279_s5 + $0x10] sm:$0xff]  ;;  %s1781_s15 = sshll.u32 %s1841_s21, 4  ;;  %s1782_s15 = int_to_ptr.vmem [resolvable:$false] %s1781_s15 }
  0x1f   : > { %1625 = vmatprep.subr.bf16.mxu0 %v1624_v24  ;;  %v1672_v3 = vpack.c.bf16 %v744_v1, %v743_v0  ;;  %v746_v4 = vld [vmem:[%s2279_s5 + $0x18] sm:$0xff]  ;;  %v747_v6 = vld [vmem:[%s2279_s5 + $0x20] sm:$0xff]  ;;  %v748_v7 = vld [vmem:[%s2279_s5 + $0x28] sm:$0xff]  ;;  %s1783_s26 = scalar_lea.vmem %s1782_s15, 4096 }
  0x20   : > { %1655 = vmatpush3.bf16.msra.mxu1 %v1652_v29  ;;  %v1676_v5 = vpack.c.bf16 %v746_v4, %v745_v2  ;;  %v1680_v8 = vpack.c.bf16 %v748_v7, %v747_v6  ;;  %v749_v9 = vld [vmem:[%s2279_s5 + $0x30] sm:$0xff]  ;;  %v750_v10 = vld [vmem:[%s2279_s5 + $0x38] sm:$0xff]  ;;  %v751_v12 = vld [vmem:[%s2279_s5 + $0x40] sm:$0xff] }
  0x21   : > { %1657 = vmatprep.subr.bf16.mxu1 %v1656_v35  ;;  %v1684_v11 = vpack.c.bf16 %v750_v10, %v749_v9  ;;  %v752_v13 = vld [vmem:[%s2279_s5 + $0x48] sm:$0xff]  ;;  %v753_v15 = vld [vmem:[%s2279_s5 + $0x50] sm:$0xff]  ;;  %v754_v16 = vld [vmem:[%s2279_s5 + $0x58] sm:$0xff] }
  0x22   : > { %1627 = vmatpush3.bf16.msra.mxu0 %v1624_v24  ;;  %v1688_v14 = vpack.c.bf16 %v752_v13, %v751_v12  ;;  %v1692_v17 = vpack.c.bf16 %v754_v16, %v753_v15  ;;  %v755_v18 = vld [vmem:[%s2279_s5 + $0x60] sm:$0xff]  ;;  %v756_v19 = vld [vmem:[%s2279_s5 + $0x68] sm:$0xff]  ;;  %v757_v6 = vld [vmem:[%s2279_s5 + $0x70] sm:$0xff] }
  0x23   : > { %1629 = vmatprep.subr.bf16.mxu0 %v1628_v32  ;;  %v1696_v20 = vpack.c.bf16 %v756_v19, %v755_v18  ;;  %v1246_v21 = vld [vmem:[%s2276_s2] ss:$0 sm:$0xff]  ;;  %v758_v7 = vld [vmem:[%s2279_s5 + $0x78] sm:$0xff]  ;;  %v928_v10 = vld [vmem:[%s2281_s7 + $0x8] sm:$0xff] }
  0x24   : > { %1659 = vmatpush3.bf16.msra.mxu1 %v1656_v35  ;;  %v927_v9 = vld [vmem:[%s2281_s7] sm:$0xff]  ;;  %v930_v13 = vld [vmem:[%s2281_s7 + $0x18] sm:$0xff]  ;;  %v932_v16 = vld [vmem:[%s2281_s7 + $0x28] sm:$0xff] }
  0x25   : > { %1661 = vmatprep.subr.bf16.mxu1 %v1660_v41  ;;  %v1704_v12 = vpack.c.bf16 %v928_v10, %v927_v9  ;;  %v931_v15 = vld [vmem:[%s2281_s7 + $0x20] sm:$0xff]  ;;  %v933_v18 = vld [vmem:[%s2281_s7 + $0x30] sm:$0xff]  ;;  %v934_v19 = vld [vmem:[%s2281_s7 + $0x38] sm:$0xff] }
  0x26   : > { %1631 = vmatpush3.bf16.msra.mxu0 %v1628_v32 }
  0x27   : > { %1633 = vmatprep.subr.bf16.mxu0 %v1632_v38 }
  0x28   : > { %1663 = vmatpush3.bf16.msra.mxu1 %v1660_v41 }
  0x29   : > { %1665 = vmatprep.subr.bf16.mxu1 %v1664_v45 }
  0x2a   : > { %1635 = vmatpush3.bf16.msra.mxu0 %v1632_v38 }
  0x2b   : > { %1637 = vmatprep.subr.bf16.mxu0 %v1636_v44 }
  0x2c   : > { %1667 = vmatpush3.bf16.msra.mxu1 %v1664_v45 }
  0x2d   : > { %1669 = vmatprep.subr.bf16.mxu1 %v1668_v63 }
  0x2e   : > { %1639 = vmatpush3.bf16.msra.mxu0 %v1636_v44 }
  0x2f   : > { %1673 = vmatprep.subr.bf16.mxu0 %v1672_v3 }
  0x30   : > { %1671 = vmatpush3.bf16.msra.mxu1 %v1668_v63 }
  0x31   : > { %1417 = vmatmul.mubr.f32.vlgmr.msra.gmra.mrb[0].mxu0 %v376_v46  ;;  %1705 = vmatprep.subr.bf16.mxu1 %v1704_v12 }
  0x32   : > { %1419 = vmatprep.mubr.f32.mxu0 %v377_v47  ;;  %1675 = vmatpush3.bf16.msra.mxu0 %v1672_v3 }
  0x33   : > { %1677 = vmatprep.subr.bf16.mxu0 %v1676_v5 }
  0x35   : > { %1420 = vmatmul.mubr.f32.gmra.mrb[2].mxu0 %v378_v48 }
  0x36   : > { %1422 = vmatprep.mubr.f32.mxu0 %v379_v49  ;;  %1679 = vmatpush3.bf16.msra.mxu0 %v1676_v5 }
  0x37   : > { %1681 = vmatprep.subr.bf16.mxu0 %v1680_v8 }
  0x39   : > { %1423 = vmatmul.mubr.f32.gmra.mrb[4].mxu0 %v380_v50 }
  0x3a   : > { %1425 = vmatprep.mubr.f32.mxu0 %v381_v51  ;;  %1683 = vmatpush3.bf16.msra.mxu0 %v1680_v8  ;;  %v1700_v8 = vpack.c.bf16 %v758_v7, %v757_v6 }
  0x3b   : > { %1685 = vmatprep.subr.bf16.mxu0 %v1684_v11 }
  0x3d   : > { %1426 = vmatmul.mubr.f32.gmra.mrb[6].mxu0 %v382_v52 }
  0x3e   : > { %1428 = vmatprep.mubr.f32.mxu0 %v383_v53  ;;  %1687 = vmatpush3.bf16.msra.mxu0 %v1684_v11  ;;  %v929_v11 = vld [vmem:[%s2281_s7 + $0x10] sm:$0xff] }
  0x3f   : > { %1689 = vmatprep.subr.bf16.mxu0 %v1688_v14 }
  0x41   : > { %1429 = vmatmul.mubr.f32.gmra.mrb[8].mxu0 %v384_v54 }
  0x42   : > { %1431 = vmatprep.mubr.f32.mxu0 %v385_v55  ;;  %1691 = vmatpush3.bf16.msra.mxu0 %v1688_v14  ;;  %v1708_v14 = vpack.c.bf16 %v930_v13, %v929_v11 }
  0x43   : > { %1693 = vmatprep.subr.bf16.mxu0 %v1692_v17 }
  0x45   : > { %1432 = vmatmul.mubr.f32.gmra.mrb[10].mxu0 %v386_v56 }
  0x46   : > { %1434 = vmatprep.mubr.f32.mxu0 %v387_v57  ;;  %1695 = vmatpush3.bf16.msra.mxu0 %v1692_v17  ;;  %v1712_v17 = vpack.c.bf16 %v932_v16, %v931_v15 }
  0x47   : > { %1697 = vmatprep.subr.bf16.mxu0 %v1696_v20 }
  0x49   : > { %1435 = vmatmul.mubr.f32.gmra.mrb[12].mxu0 %v388_v58 }
  0x4a   : > { %1437 = vmatprep.mubr.f32.mxu0 %v389_v59  ;;  %1699 = vmatpush3.bf16.msra.mxu0 %v1696_v20  ;;  %v1716_v20 = vpack.c.bf16 %v934_v19, %v933_v18 }
  0x4b   : > { %1701 = vmatprep.subr.bf16.mxu0 %v1700_v8 }
  0x4d   : > { %1438 = vmatmul.mubr.f32.gmra.mrb[14].mxu0 %v390_v60 }
  0x4e   : > { %1703 = vmatpush3.bf16.msra.mxu0 %v1700_v8 }
 0x104   : > { %v1418_v22 = vpop.f32.mrb[0].mxu0 }
 0x105   : > { %v486_v23 = vadd.f32 %v1418_v22, %v1246_v21  ;;  %v480_v24 = vpop.f32.mrb[1].mxu0  ;;  %v936_v22 = vld [vmem:[%s2281_s7 + $0x48] sm:$0xff] }
 0x106   : > { %v481_v25 = vadd.f32 %v1246_v21, %v480_v24  ;;  %v937_v24 = vld [vmem:[%s2281_s7 + $0x50] sm:$0xff] }
 0x107   : > { %v560_v28 = vmax.f32 %v486_v23, 0.0 }
 0x108   : > { %v1421_v26 = vpop.f32.mrb[2].mxu0  ;;  %v559_v27 = vmax.f32 %v481_v25, 0.0  ;;  %v938_v25 = vld [vmem:[%s2281_s7 + $0x58] sm:$0xff] }
 0x109   : > { %v496_v29 = vadd.f32 %v1421_v26, %v1246_v21  ;;  %v490_v30 = vpop.f32.mrb[3].mxu0  ;;  %v1724_v26 = vpack.c.bf16 %v938_v25, %v937_v24 }
 0x10a   : > { %v491_v31 = vadd.f32 %v1246_v21, %v490_v30  ;;  %1472 = vmatprep.mubr.f32.mxu1 %v559_v27  ;;  %v939_v27 = vld [vmem:[%s2281_s7 + $0x60] sm:$0xff] }
 0x10b   : > { %1473 = vmatmul.mubr.f32.vlgmr.msra.gmra.mrb[0].mxu1 %v560_v28  ;;  %v562_v34 = vmax.f32 %v496_v29, 0.0  ;;  %v940_v28 = vld [vmem:[%s2281_s7 + $0x68] sm:$0xff]  ;;  %v1247_v30 = vld [vmem:[%s2278_s4] ss:$0 sm:$0xff] }
 0x10c   : > { %v561_v32 = vmax.f32 %v491_v31, 0.0  ;;  %v1424_v33 = vpop.f32.mrb[4].mxu0  ;;  %1707 = vmatpush3.bf16.msra.mxu1 %v1704_v12  ;;  %v1728_v29 = vpack.c.bf16 %v940_v28, %v939_v27 }
 0x10d   : > { %v506_v35 = vadd.f32 %v1424_v33, %v1246_v21  ;;  %v500_v36 = vpop.f32.mrb[5].mxu0  ;;  %1709 = vmatprep.subr.bf16.mxu1 %v1708_v14 }
 0x10e   : > { %v501_v37 = vadd.f32 %v1246_v21, %v500_v36  ;;  %1475 = vmatprep.mubr.f32.mxu1 %v561_v32 }
 0x10f   : > { %1476 = vmatmul.mubr.f32.gmra.mrb[2].mxu1 %v562_v34  ;;  %v564_v40 = vmax.f32 %v506_v35, 0.0 }
 0x110   : > { %v563_v38 = vmax.f32 %v501_v37, 0.0  ;;  %v1427_v39 = vpop.f32.mrb[6].mxu0  ;;  %1711 = vmatpush3.bf16.msra.mxu1 %v1708_v14 }
 0x111   : > { %v516_v41 = vadd.f32 %v1427_v39, %v1246_v21  ;;  %v510_v42 = vpop.f32.mrb[7].mxu0  ;;  %1713 = vmatprep.subr.bf16.mxu1 %v1712_v17 }
 0x112   : > { %v511_v43 = vadd.f32 %v1246_v21, %v510_v42  ;;  %1478 = vmatprep.mubr.f32.mxu1 %v563_v38 }
 0x113   : > { %1479 = vmatmul.mubr.f32.gmra.mrb[4].mxu1 %v564_v40  ;;  %v566_v46 = vmax.f32 %v516_v41, 0.0 }
 0x114   : > { %v565_v44 = vmax.f32 %v511_v43, 0.0  ;;  %v1430_v45 = vpop.f32.mrb[8].mxu0  ;;  %1715 = vmatpush3.bf16.msra.mxu1 %v1712_v17 }
 0x115   : > { %v526_v47 = vadd.f32 %v1430_v45, %v1246_v21  ;;  %v520_v48 = vpop.f32.mrb[9].mxu0  ;;  %1717 = vmatprep.subr.bf16.mxu1 %v1716_v20 }
 0x116   : > { %v521_v49 = vadd.f32 %v1246_v21, %v520_v48  ;;  %1481 = vmatprep.mubr.f32.mxu1 %v565_v44 }
 0x117   : > { %1482 = vmatmul.mubr.f32.gmra.mrb[6].mxu1 %v566_v46  ;;  %v568_v52 = vmax.f32 %v526_v47, 0.0 }
 0x118   : > { %v567_v50 = vmax.f32 %v521_v49, 0.0  ;;  %v1433_v51 = vpop.f32.mrb[10].mxu0  ;;  %1719 = vmatpush3.bf16.msra.mxu1 %v1716_v20 }
 0x119   : > { %v536_v53 = vadd.f32 %v1433_v51, %v1246_v21  ;;  %v530_v54 = vpop.f32.mrb[11].mxu0 }
 0x11a   : > { %v531_v55 = vadd.f32 %v1246_v21, %v530_v54  ;;  %1484 = vmatprep.mubr.f32.mxu1 %v567_v50 }
 0x11b   : > { %1485 = vmatmul.mubr.f32.gmra.mrb[8].mxu1 %v568_v52  ;;  %v570_v58 = vmax.f32 %v536_v53, 0.0 }
 0x11c   : > { %v569_v56 = vmax.f32 %v531_v55, 0.0  ;;  %v1436_v57 = vpop.f32.mrb[12].mxu0 }
 0x11d   : > { %v546_v59 = vadd.f32 %v1436_v57, %v1246_v21  ;;  %v540_v60 = vpop.f32.mrb[13].mxu0 }
 0x11e   : > { %v541_v61 = vadd.f32 %v1246_v21, %v540_v60  ;;  %1487 = vmatprep.mubr.f32.mxu1 %v569_v56 }
 0x11f   : > { %1488 = vmatmul.mubr.f32.gmra.mrb[10].mxu1 %v570_v58  ;;  %v572_v0 = vmax.f32 %v546_v59, 0.0 }
 0x120   : > { %v571_v62 = vmax.f32 %v541_v61, 0.0  ;;  %v1439_v63 = vpop.f32.mrb[14].mxu0 }
 0x121   : > { %v556_v1 = vadd.f32 %v1439_v63, %v1246_v21  ;;  %v550_v2 = vpop.f32.mrb[15].mxu0  ;;  %v941_v63 = vld [vmem:[%s2281_s7 + $0x70] sm:$0xff] }
 0x122   : > { %v551_v3 = vadd.f32 %v1246_v21, %v550_v2  ;;  %1490 = vmatprep.mubr.f32.mxu1 %v571_v62  ;;  %v935_v21 = vld [vmem:[%s2281_s7 + $0x40] sm:$0xff] }
 0x123   : > { %1491 = vmatmul.mubr.f32.gmra.mrb[12].mxu1 %v572_v0  ;;  %v574_v5 = vmax.f32 %v556_v1, 0.0  ;;  %v1720_v23 = vpack.c.bf16 %v936_v22, %v935_v21  ;;  %v942_v0 = vld [vmem:[%s2281_s7 + $0x78] sm:$0xff]  ;;  %v1248_v2 = vld [vmem:[%s2280_s6] ss:$0 sm:$0xff] }
 0x124   : > { %v573_v4 = vmax.f32 %v551_v3, 0.0  ;;  %v1732_v1 = vpack.c.bf16 %v942_v0, %v941_v63 }
 0x125   : > { %1721 = vmatprep.subr.bf16.mxu1 %v1720_v23 }
 0x126   : > { %1493 = vmatprep.mubr.f32.mxu1 %v573_v4  ;;  %1723 = vmatpush3.bf16.msra.mxu1 %v1720_v23 }
 0x127   : > { %1494 = vmatmul.mubr.f32.gmra.mrb[14].mxu1 %v574_v5  ;;  %1725 = vmatprep.subr.bf16.mxu1 %v1724_v26 }
 0x12a   : > { %1727 = vmatpush3.bf16.msra.mxu1 %v1724_v26 }
 0x12b   : > { %1729 = vmatprep.subr.bf16.mxu1 %v1728_v29 }
 0x12e   : > { %1731 = vmatpush3.bf16.msra.mxu1 %v1728_v29 }
 0x12f   : > { %1733 = vmatprep.subr.bf16.mxu1 %v1732_v1 }
 0x132   : > { %1735 = vmatpush3.bf16.msra.mxu1 %v1732_v1 }
 0x1de   : > { %v1474_v31 = vpop.f32.mrb[0].mxu1 }
 0x1df   : > { %v670_v32 = vadd.f32 %v1474_v31, %v1247_v30  ;;  %v664_v33 = vpop.f32.mrb[1].mxu1 }
 0x1e0   : > { %v665_v34 = vadd.f32 %v1247_v30, %v664_v33 }
 0x1e1   : > { %1096 = vst [vmem:[%s2171_s22 + $0x8] sm:$0xff] %v670_v32 }
 0x1e2   : > { %1095 = vst [vmem:[%s2171_s22] sm:$0xff] %v665_v34  ;;  %v1477_v35 = vpop.f32.mrb[2].mxu1  ;;  %1528 = vmatprep.mubr.f32.mxu0 %v665_v34 }
 0x1e3   : > { %v680_v36 = vadd.f32 %v1477_v35, %v1247_v30  ;;  %v674_v37 = vpop.f32.mrb[3].mxu1  ;;  %1529 = vmatmul.mubr.f32.vlgmr.msra.gmra.mrb[16].mxu0 %v670_v32 }
 0x1e4   : > { %v675_v38 = vadd.f32 %v1247_v30, %v674_v37 }
 0x1e5   : > { %1098 = vst [vmem:[%s2171_s22 + $0x18] sm:$0xff] %v680_v36 }
 0x1e6   : > { %1097 = vst [vmem:[%s2171_s22 + $0x10] sm:$0xff] %v675_v38  ;;  %v1480_v39 = vpop.f32.mrb[4].mxu1  ;;  %1531 = vmatprep.mubr.f32.mxu0 %v675_v38 }
 0x1e7   : > { %v690_v40 = vadd.f32 %v1480_v39, %v1247_v30  ;;  %v684_v41 = vpop.f32.mrb[5].mxu1  ;;  %1532 = vmatmul.mubr.f32.gmra.mrb[18].mxu0 %v680_v36 }
 0x1e8   : > { %v685_v42 = vadd.f32 %v1247_v30, %v684_v41 }
 0x1e9   : > { %1100 = vst [vmem:[%s2171_s22 + $0x28] sm:$0xff] %v690_v40 }
 0x1ea   : > { %1099 = vst [vmem:[%s2171_s22 + $0x20] sm:$0xff] %v685_v42  ;;  %v1483_v43 = vpop.f32.mrb[6].mxu1  ;;  %1534 = vmatprep.mubr.f32.mxu0 %v685_v42 }
 0x1eb   : > { %v700_v44 = vadd.f32 %v1483_v43, %v1247_v30  ;;  %v694_v45 = vpop.f32.mrb[7].mxu1  ;;  %1535 = vmatmul.mubr.f32.gmra.mrb[20].mxu0 %v690_v40 }
 0x1ec   : > { %v695_v46 = vadd.f32 %v1247_v30, %v694_v45 }
 0x1ed   : > { %1102 = vst [vmem:[%s2171_s22 + $0x38] sm:$0xff] %v700_v44 }
 0x1ee   : > { %1101 = vst [vmem:[%s2171_s22 + $0x30] sm:$0xff] %v695_v46  ;;  %v1486_v47 = vpop.f32.mrb[8].mxu1  ;;  %1537 = vmatprep.mubr.f32.mxu0 %v695_v46 }
 0x1ef   : > { %v710_v48 = vadd.f32 %v1486_v47, %v1247_v30  ;;  %v704_v49 = vpop.f32.mrb[9].mxu1  ;;  %1538 = vmatmul.mubr.f32.gmra.mrb[22].mxu0 %v700_v44 }
 0x1f0   : > { %v705_v50 = vadd.f32 %v1247_v30, %v704_v49 }
 0x1f1   : > { %1104 = vst [vmem:[%s2171_s22 + $0x48] sm:$0xff] %v710_v48 }
 0x1f2   : > { %1103 = vst [vmem:[%s2171_s22 + $0x40] sm:$0xff] %v705_v50  ;;  %v1489_v51 = vpop.f32.mrb[10].mxu1  ;;  %1540 = vmatprep.mubr.f32.mxu0 %v705_v50 }
 0x1f3   : > { %v720_v52 = vadd.f32 %v1489_v51, %v1247_v30  ;;  %v714_v53 = vpop.f32.mrb[11].mxu1  ;;  %1541 = vmatmul.mubr.f32.gmra.mrb[24].mxu0 %v710_v48  ;;  %v1249_v51 = vld [vmem:[%s2282_s8] ss:$0 sm:$0xff] }
 0x1f4   : > { %v715_v54 = vadd.f32 %v1247_v30, %v714_v53 }
 0x1f5   : > { %1106 = vst [vmem:[%s2171_s22 + $0x58] sm:$0xff] %v720_v52 }
 0x1f6   : > { %1105 = vst [vmem:[%s2171_s22 + $0x50] sm:$0xff] %v715_v54  ;;  %v1492_v55 = vpop.f32.mrb[12].mxu1  ;;  %1543 = vmatprep.mubr.f32.mxu0 %v715_v54 }
 0x1f7   : > { %v730_v56 = vadd.f32 %v1492_v55, %v1247_v30  ;;  %v724_v57 = vpop.f32.mrb[13].mxu1  ;;  %1544 = vmatmul.mubr.f32.gmra.mrb[26].mxu0 %v720_v52 }
 0x1f8   : > { %v725_v58 = vadd.f32 %v1247_v30, %v724_v57 }
 0x1f9   : > { %1108 = vst [vmem:[%s2171_s22 + $0x68] sm:$0xff] %v730_v56 }
 0x1fa   : > { %1107 = vst [vmem:[%s2171_s22 + $0x60] sm:$0xff] %v725_v58  ;;  %v1495_v59 = vpop.f32.mrb[14].mxu1  ;;  %1546 = vmatprep.mubr.f32.mxu0 %v725_v58 }
 0x1fb   : > { %v740_v60 = vadd.f32 %v1495_v59, %v1247_v30  ;;  %v734_v61 = vpop.f32.mrb[15].mxu1  ;;  %1547 = vmatmul.mubr.f32.gmra.mrb[28].mxu0 %v730_v56 }
 0x1fc   : > { %v735_v62 = vadd.f32 %v1247_v30, %v734_v61 }
 0x1fd   : > { %1110 = vst [vmem:[%s2171_s22 + $0x78] sm:$0xff] %v740_v60 }
 0x1fe   : > { %1109 = vst [vmem:[%s2171_s22 + $0x70] sm:$0xff] %v735_v62  ;;  %1549 = vmatprep.mubr.f32.mxu0 %v735_v62  ;;  %s1150_s22 = sshll.u32 %s2204_s30, 4  ;;  %s2227_s22 = int_to_ptr.vmem [resolvable:$true] %s1150_s22 }
 0x1ff   : > { %1550 = vmatmul.mubr.f32.gmra.mrb[30].mxu0 %v740_v60  ;;  %s1777_s20 = scalar_lea.vmem %s2227_s22, 2048  ;;  %p1784_p0 = scmp.lt.s32.totalorder %s2227_s22, %s1782_s15 }
 0x200   : > { %p1778_p11 = scmp.ne.s32.totalorder %s2227_s22, %s1777_s20  ;;  %p1785_p1 = scmp.lt.s32.totalorder %s1783_s26, %s1777_s20 }
 0x202   : > { %p1779_p12 = pnand %p1778_p11, %p1937_p5  ;;  %p1786_p2 = por %p1785_p1, %p1784_p0 }
 0x204   : > { %p1780_p13 = pneg %p1779_p12 }
 0x206   : > { %p1787_p3 = pnand %p1786_p2, %p1780_p13 }
 0x2b6   : > { %v1530_v3 = vpop.f32.mrb[16].mxu0 }
 0x2b7   : > { %v838_v4 = vadd.f32 %v1530_v3, %v1248_v2  ;;  %v832_v5 = vpop.f32.mrb[17].mxu0 }
 0x2b8   : > { %v833_v6 = vadd.f32 %v1248_v2, %v832_v5 }
 0x2b9   : > { %v912_v9 = vmax.f32 %v838_v4, 0.0 }
 0x2ba   : > { %v911_v7 = vmax.f32 %v833_v6, 0.0  ;;  %v1533_v8 = vpop.f32.mrb[18].mxu0 }
 0x2bb   : > { %v848_v10 = vadd.f32 %v1533_v8, %v1248_v2  ;;  %v842_v11 = vpop.f32.mrb[19].mxu0 }
 0x2bc   : > { %v843_v12 = vadd.f32 %v1248_v2, %v842_v11  ;;  %1584 = vmatprep.mubr.f32.mxu1 %v911_v7 }
 0x2bd   : > { %1585 = vmatmul.mubr.f32.vlgmr.msra.gmra.mrb[16].mxu1 %v912_v9  ;;  %v914_v15 = vmax.f32 %v848_v10, 0.0 }
 0x2be   : > { %v913_v13 = vmax.f32 %v843_v12, 0.0  ;;  %v1536_v14 = vpop.f32.mrb[20].mxu0 }
 0x2bf   : > { %v858_v16 = vadd.f32 %v1536_v14, %v1248_v2  ;;  %v852_v17 = vpop.f32.mrb[21].mxu0 }
 0x2c0   : > { %v853_v18 = vadd.f32 %v1248_v2, %v852_v17  ;;  %1587 = vmatprep.mubr.f32.mxu1 %v913_v13 }
 0x2c1   : > { %1588 = vmatmul.mubr.f32.gmra.mrb[18].mxu1 %v914_v15  ;;  %v916_v21 = vmax.f32 %v858_v16, 0.0 }
 0x2c2   : > { %v915_v19 = vmax.f32 %v853_v18, 0.0  ;;  %v1539_v20 = vpop.f32.mrb[22].mxu0 }
 0x2c3   : > { %v868_v22 = vadd.f32 %v1539_v20, %v1248_v2  ;;  %v862_v23 = vpop.f32.mrb[23].mxu0 }
 0x2c4   : > { %v863_v24 = vadd.f32 %v1248_v2, %v862_v23  ;;  %1590 = vmatprep.mubr.f32.mxu1 %v915_v19 }
 0x2c5   : > { %1591 = vmatmul.mubr.f32.gmra.mrb[20].mxu1 %v916_v21  ;;  %v918_v27 = vmax.f32 %v868_v22, 0.0 }
 0x2c6   : > { %v917_v25 = vmax.f32 %v863_v24, 0.0  ;;  %v1542_v26 = vpop.f32.mrb[24].mxu0 }
 0x2c7   : > { %v878_v28 = vadd.f32 %v1542_v26, %v1248_v2  ;;  %v872_v29 = vpop.f32.mrb[25].mxu0 }
 0x2c8   : > { %v873_v30 = vadd.f32 %v1248_v2, %v872_v29  ;;  %1593 = vmatprep.mubr.f32.mxu1 %v917_v25 }
 0x2c9   : > { %1594 = vmatmul.mubr.f32.gmra.mrb[22].mxu1 %v918_v27  ;;  %v920_v33 = vmax.f32 %v878_v28, 0.0 }
 0x2ca   : > { %v919_v31 = vmax.f32 %v873_v30, 0.0  ;;  %v1545_v32 = vpop.f32.mrb[26].mxu0 }
 0x2cb   : > { %v888_v34 = vadd.f32 %v1545_v32, %v1248_v2  ;;  %v882_v35 = vpop.f32.mrb[27].mxu0 }
 0x2cc   : > { %v883_v36 = vadd.f32 %v1248_v2, %v882_v35  ;;  %1596 = vmatprep.mubr.f32.mxu1 %v919_v31 }
 0x2cd   : > { %1597 = vmatmul.mubr.f32.gmra.mrb[24].mxu1 %v920_v33  ;;  %v922_v39 = vmax.f32 %v888_v34, 0.0 }
 0x2ce   : > { %v921_v37 = vmax.f32 %v883_v36, 0.0  ;;  %v1548_v38 = vpop.f32.mrb[28].mxu0 }
 0x2cf   : > { %v898_v40 = vadd.f32 %v1548_v38, %v1248_v2  ;;  %v892_v41 = vpop.f32.mrb[29].mxu0 }
 0x2d0   : > { %v893_v42 = vadd.f32 %v1248_v2, %v892_v41  ;;  %1599 = vmatprep.mubr.f32.mxu1 %v921_v37 }
 0x2d1   : > { %1600 = vmatmul.mubr.f32.gmra.mrb[26].mxu1 %v922_v39  ;;  %v924_v45 = vmax.f32 %v898_v40, 0.0 }
 0x2d2   : > { %v923_v43 = vmax.f32 %v893_v42, 0.0  ;;  %v1551_v44 = vpop.f32.mrb[30].mxu0 }
 0x2d3   : > { %v908_v46 = vadd.f32 %v1551_v44, %v1248_v2  ;;  %v902_v47 = vpop.f32.mrb[31].mxu0 }
 0x2d4   : > { %v903_v48 = vadd.f32 %v1248_v2, %v902_v47  ;;  %1602 = vmatprep.mubr.f32.mxu1 %v923_v43 }
 0x2d5   : > { %1603 = vmatmul.mubr.f32.gmra.mrb[28].mxu1 %v924_v45  ;;  %v926_v50 = vmax.f32 %v908_v46, 0.0 }
 0x2d6   : > { %v925_v49 = vmax.f32 %v903_v48, 0.0 }
 0x2d8   : > { %1605 = vmatprep.mubr.f32.mxu1 %v925_v49 }
 0x2d9   : > { %1606 = vmatmul.mubr.f32.gmra.mrb[30].mxu1 %v926_v50 }
 0x390   : > { %v1586_v52 = vpop.f32.mrb[16].mxu1 }
 0x391   : > { %v1022_v53 = vadd.f32 %v1586_v52, %v1249_v51  ;;  %v1016_v54 = vpop.f32.mrb[17].mxu1 }
 0x392   : > { %v1017_v55 = vadd.f32 %v1249_v51, %v1016_v54 }
 0x393   : > { %1112 = vst [vmem:[%s2204_s30 + $0x8] sm:$0xff] %v1022_v53 }
 0x394   : > { %1111 = vst [vmem:[%s2204_s30] sm:$0xff] %v1017_v55  ;;  %v1589_v56 = vpop.f32.mrb[18].mxu1 }
 0x395   : > { %v1032_v57 = vadd.f32 %v1589_v56, %v1249_v51  ;;  %v1026_v58 = vpop.f32.mrb[19].mxu1 }
 0x396   : > { %v1027_v59 = vadd.f32 %v1249_v51, %v1026_v58 }
 0x397   : > { %1114 = vst [vmem:[%s2204_s30 + $0x18] sm:$0xff] %v1032_v57 }
 0x398   : > { %1113 = vst [vmem:[%s2204_s30 + $0x10] sm:$0xff] %v1027_v59  ;;  %v1592_v60 = vpop.f32.mrb[20].mxu1 }
 0x399   : > { %v1042_v61 = vadd.f32 %v1592_v60, %v1249_v51  ;;  %v1036_v62 = vpop.f32.mrb[21].mxu1 }
 0x39a   : > { %v1037_v63 = vadd.f32 %v1249_v51, %v1036_v62 }
 0x39b   : > { %1116 = vst [vmem:[%s2204_s30 + $0x28] sm:$0xff] %v1042_v61 }
 0x39c   : > { %1115 = vst [vmem:[%s2204_s30 + $0x20] sm:$0xff] %v1037_v63  ;;  %v1595_v0 = vpop.f32.mrb[22].mxu1 }
 0x39d   : > { %v1052_v1 = vadd.f32 %v1595_v0, %v1249_v51  ;;  %v1046_v2 = vpop.f32.mrb[23].mxu1 }
 0x39e   : > { %v1047_v3 = vadd.f32 %v1249_v51, %v1046_v2 }
 0x39f   : > { %1118 = vst [vmem:[%s2204_s30 + $0x38] sm:$0xff] %v1052_v1 }
 0x3a0   : > { %1117 = vst [vmem:[%s2204_s30 + $0x30] sm:$0xff] %v1047_v3  ;;  %v1598_v4 = vpop.f32.mrb[24].mxu1 }
 0x3a1   : > { %v1062_v5 = vadd.f32 %v1598_v4, %v1249_v51  ;;  %v1056_v6 = vpop.f32.mrb[25].mxu1 }
 0x3a2   : > { %v1057_v7 = vadd.f32 %v1249_v51, %v1056_v6 }
 0x3a3   : > { %1120 = vst [vmem:[%s2204_s30 + $0x48] sm:$0xff] %v1062_v5 }
 0x3a4   : > { %1119 = vst [vmem:[%s2204_s30 + $0x40] sm:$0xff] %v1057_v7  ;;  %v1601_v8 = vpop.f32.mrb[26].mxu1 }
 0x3a5   : > { %v1072_v9 = vadd.f32 %v1601_v8, %v1249_v51  ;;  %v1066_v10 = vpop.f32.mrb[27].mxu1 }
 0x3a6   : > { %v1067_v11 = vadd.f32 %v1249_v51, %v1066_v10 }
 0x3a7   : > { %1122 = vst [vmem:[%s2204_s30 + $0x58] sm:$0xff] %v1072_v9 }
 0x3a8   : > { %1121 = vst [vmem:[%s2204_s30 + $0x50] sm:$0xff] %v1067_v11  ;;  %v1604_v12 = vpop.f32.mrb[28].mxu1 }
 0x3a9   : > { %v1082_v13 = vadd.f32 %v1604_v12, %v1249_v51  ;;  %v1076_v14 = vpop.f32.mrb[29].mxu1 }
 0x3aa   : > { %v1077_v15 = vadd.f32 %v1249_v51, %v1076_v14 }
 0x3ab   : > { %1124 = vst [vmem:[%s2204_s30 + $0x68] sm:$0xff] %v1082_v13 }
 0x3ac   : > { %1123 = vst [vmem:[%s2204_s30 + $0x60] sm:$0xff] %v1077_v15  ;;  %v1607_v16 = vpop.f32.mrb[30].mxu1 }
 0x3ad   : > { %v1092_v17 = vadd.f32 %v1607_v16, %v1249_v51  ;;  %v1086_v18 = vpop.f32.mrb[31].mxu1 }
 0x3ae   : > { %v1087_v19 = vadd.f32 %v1249_v51, %v1086_v18 }
 0x3af   : > { %1126 = vst [vmem:[%s2204_s30 + $0x78] sm:$0xff] %v1092_v17 }
 0x3b0   : > { %1125 = vst [vmem:[%s2204_s30 + $0x70] sm:$0xff] %v1087_v19 }
 0x3b1   : > { %1790 = shalt.err (!%p1787_p3)
}
 0x3b2   : > { %s1791_s25 = scalar_lea.hbm %s2225_s18, 2048  ;;  %s1795_s30 = scalar_lea.hbm %s2284_s10, 4096 }
 0x3b3   : > { %p1792_p4 = scmp.ne.s32.totalorder %s2225_s18, %s1791_s25  ;;  %p1796_p9 = scmp.lt.u32.totalorder %s2225_s18, %s2284_s10 }
 0x3b4   : > { %p1797_p10 = scmp.lt.u32.totalorder %s1795_s30, %s1791_s25  ;;  %p1799_p12 = scmp.lt.u32.totalorder %s1791_s25, %s2225_s18 }
 0x3b5   : > { %p1793_p7 = pnand %p1792_p4, %p1937_p5 }
 0x3b6   : > { %p1798_p11 = por %p1797_p10, %p1796_p9 }
 0x3b7   : > { %p1794_p8 = pneg %p1793_p7 }
 0x3b8   : > { %p1800_p13 = por %p1799_p12, %p1798_p11 }
 0x3ba   : > { %p1801_p0 = pnand %p1800_p13, %p1794_p8 }
 0x3bc   : > { %1804 = shalt.err (!%p1801_p0)
}
 0x3bd   : > { %s1842_s29 = smov 128   ;;  %s1843_s20 = smov 8  }
 0x3be   : > { %1736 = dma.vmem_to_hbm [thread:$0]  (%p1937_p5), %s2227_s22, 2048, %s2225_s18, %s2233_s17, %s1842_s29, %s1842_s29, %s1843_s20  }
 0x3bf PF: > { %p1742_p1 = scmp.ge.s32.totalorder %s1839_s16, 2  ;;  %s1173_s21 = sand.u32 1, %s1827_s13  }
 0x3c0   : > { %s1174_s15 = scalar_lea.sflag [#allocation3], %s1173_s21 }
 0x3c1   : > { %p1739_p2 = pnand %p1742_p1, %p1941_p6 }
 0x3c3   : > { %1822 = dma.done.wait (!%p1739_p2), %s1174_s15, 2048  }
 0x3c4   : > { %1824 = vsyncadd (!%p1739_p2), %s1174_s15, 4294965248  ;;  %s2290_s26 = sld [smem:[#allocation5_spill]]  ;;  %s2291_s15 = sld [smem:[#allocation6_spill]] }
 0x3c5   : > { %p21_p3 = scmp.ge.s32.totalorder %s1924_s19, 4   ;;  %s2292_s13 = smov %s1831_s14 }
 0x3c6   : > { %s2294_s16 = smov %s1924_s19 }
 0x3c7   :  { %23 = sbr.rel (!%p21_p3) target bundleno = 3 (0x3), region = 103 }
 0x3ca   : > { %s2293_s14 = smov %s2290_s26 }
 0x3ce   :  { %1179 = vsyncpa [#allocation3], 1 }
 0x3cf   :  { %1181 = vsyncpa [#allocation3 + $0x1], 1 }

// kernel: done_base_forward.5
= control target key start
LH: loop header
LB: loop body
LE: loop exit
PB: predicated region body
PF: predicated region fallthrough
CT: control target
= control target key end

     0   :  { %s2134_s0 = inlined_call_operand.vmem [shape: bf16[256,256], index: 0, kind: input, shape index: {}]   ;;  %s2135_s1 = inlined_call_operand.vmem [shape: bf16[256,128], index: 1, kind: input, shape index: {}]   ;;  %s2136_s2 = inlined_call_operand.vmem [shape: f32[1,128], index: 2, kind: input, shape index: {}]   ;;  %s2137_s3 = inlined_call_operand.vmem [shape: f32[128,128], index: 3, kind: input, shape index: {}]   ;;  %s2138_s4 = inlined_call_operand.vmem [shape: f32[1,128], index: 4, kind: input, shape index: {}]   ;;  %s2139_s5 = inlined_call_operand.vmem [shape: f32[128,128], index: 5, kind: input, shape index: {}]   ;;  %s2140_s6 = inlined_call_operand.vmem [shape: f32[1,128], index: 6, kind: input, shape index: {}]   ;;  %s2141_s7 = inlined_call_operand.vmem [shape: f32[256,128], index: 7, kind: output, shape index: {0}]   ;;  %s2142_s8 = inlined_call_operand.vmem [shape: f32[256,128], index: 8, kind: output, shape index: {1}]  }
   0x1   :  { %2143 = sst [smem:[#allocation4_spill]] %s2134_s0 }
   0x2   :  { %s1840_s27 = smov 0   ;;  %s1842_s28 = smov 0  }
   0x3   :  { %s1844_s29 = smov 0   ;;  %s1846_s30 = smov 0  }
   0x4   :  { %s1848_s9 = smov 0   ;;  %s1850_s10 = smov 0  }
   0x5   :  { %s1852_s11 = smov 0  }
   0x6 LB: > { %s28_s12 = sadd.s32 1, %s1784_s9  ;;  %s31_s13 = sadd.s32 1, %s1788_s10  ;;  %s1792_s11 = sphi %s1852_s11, %s19_s11   ;;  %s1788_s10 = sphi %s1850_s10, %s2150_s10   ;;  %s1784_s9 = sphi %s1848_s9, %s2149_s9   ;;  %s1780_s30 = sphi %s1846_s30, %s2148_s30   ;;  %s1776_s29 = sphi %s1844_s29, %s2147_s29   ;;  %s1772_s28 = sphi %s1842_s28, %s2146_s28   ;;  %s1768_s27 = sphi %s1840_s27, %s2145_s27  }
   0x7   : > { %p29_p0 = scmp.ge.s32.totalorder %s28_s12, 2  ;;  %p47_p1 = scmp.ne.s32.totalorder %s1772_s28, %s1768_s27 }
   0x8   : > { %p48_p2 = scmp.eq.s32.totalorder %s1792_s11, 0  ;;  %s40_s17 = sadd.s32 1, %s1772_s28 }
   0x9   : > { %s2152_s12 = smov (%p29_p0, %s28_s12), 0  ;;  %s2154_s13 = smov (!%p29_p0, %s31_s13), %s1788_s10 }
   0xa   : > { %p49_p3 = por %p48_p2, %p47_p1  ;;  %p33_p4 = scmp.ge.s32.totalorder %s2154_s13, 2 }
   0xb   : > { %s36_s14 = ssub.s32 %s1784_s9, %s2152_s12  ;;  %p1324_p6 = scmp.ge.s32.totalorder %s1792_s11, 4 }
   0xc   : > { %s2156_s13 = smov (%p33_p4, %s2154_s13), 0 }
   0xd   : > { %s35_s15 = ssub.s32 %s1788_s10, %s2156_s13  ;;  %271 = sbr.rel (%p1324_p6) target bundleno = 40 (0x28), region = 36 }
   0xe   : > { %s37_s16 = sor.u32 %s36_s14, %s35_s15 }
   0xf   : > { %p38_p5 = scmp.eq.s32.totalorder %s37_s16, 0 }
  0x11   : > { %s1891_s18 = scalar_select %p38_p5, %s1772_s28, %s40_s17  }
  0x14   : > { %274 = sbr.rel (!%p49_p3) target bundleno = 40 (0x28), region = 40  ;;  %s276_s19 = sand.u32 (%p49_p3), 1, %s1772_s28  }
  0x15   : > { %s1360_s20 = sshll.u32 (%p49_p3), %s1788_s10, 5  ;;  %s1325_s21 = sshll.u32 (%p49_p3), %s276_s19, 6 }
  0x16   : > { %s281_s22 = sadd.s32 (%p49_p3), %s1784_s9, %s1360_s20  ;;  %s2144_s0 = sld [smem:[#allocation4_spill]] (%p49_p3) }
  0x17   : > { %s1328_s23 = sshll.u32 (%p49_p3), %s281_s22, 2  ;;  %s278_s14 = scalar_lea.vmem (%p49_p3), [#allocation3], %s1325_s21 }
  0x1c   : > { %s1900_s26 = scalar_lea.vmem %s2144_s0, %s1328_s23 }
  0x1d   : > { %v299_v0 = vld [vmem:[%s1900_s26] sm:$0xf]  ;;  %v301_v1 = vld [vmem:[%s1900_s26 + $0x8] sm:$0xf]  ;;  %v303_v2 = vld [vmem:[%s1900_s26 + $0x10] sm:$0xf] }
  0x1e   : > { %300 = vst [vmem:[%s278_s14] sm:$0xf] %v299_v0  ;;  %302 = vst [vmem:[%s278_s14 + $0x4] sm:$0xf] %v301_v1  ;;  %v305_v3 = vld [vmem:[%s1900_s26 + $0x18] sm:$0xf] }
  0x1f   : > { %304 = vst [vmem:[%s278_s14 + $0x8] sm:$0xf] %v303_v2  ;;  %v307_v4 = vld [vmem:[%s1900_s26 + $0x20] sm:$0xf]  ;;  %v309_v5 = vld [vmem:[%s1900_s26 + $0x28] sm:$0xf] }
  0x20   : > { %306 = vst [vmem:[%s278_s14 + $0xc] sm:$0xf] %v305_v3  ;;  %308 = vst [vmem:[%s278_s14 + $0x10] sm:$0xf] %v307_v4  ;;  %v311_v6 = vld [vmem:[%s1900_s26 + $0x30] sm:$0xf] }
  0x21   : > { %310 = vst [vmem:[%s278_s14 + $0x14] sm:$0xf] %v309_v5  ;;  %v313_v7 = vld [vmem:[%s1900_s26 + $0x38] sm:$0xf]  ;;  %v315_v8 = vld [vmem:[%s1900_s26 + $0x40] sm:$0xf] }
  0x22   : > { %312 = vst [vmem:[%s278_s14 + $0x18] sm:$0xf] %v311_v6  ;;  %314 = vst [vmem:[%s278_s14 + $0x1c] sm:$0xf] %v313_v7  ;;  %v317_v9 = vld [vmem:[%s1900_s26 + $0x48] sm:$0xf] }
  0x23   : > { %316 = vst [vmem:[%s278_s14 + $0x20] sm:$0xf] %v315_v8  ;;  %v319_v10 = vld [vmem:[%s1900_s26 + $0x50] sm:$0xf]  ;;  %v321_v11 = vld [vmem:[%s1900_s26 + $0x58] sm:$0xf] }
  0x24   : > { %318 = vst [vmem:[%s278_s14 + $0x24] sm:$0xf] %v317_v9  ;;  %320 = vst [vmem:[%s278_s14 + $0x28] sm:$0xf] %v319_v10  ;;  %v323_v12 = vld [vmem:[%s1900_s26 + $0x60] sm:$0xf] }
  0x25   : > { %322 = vst [vmem:[%s278_s14 + $0x2c] sm:$0xf] %v321_v11  ;;  %v325_v13 = vld [vmem:[%s1900_s26 + $0x68] sm:$0xf]  ;;  %v327_v14 = vld [vmem:[%s1900_s26 + $0x70] sm:$0xf] }
  0x26   : > { %324 = vst [vmem:[%s278_s14 + $0x30] sm:$0xf] %v323_v12  ;;  %326 = vst [vmem:[%s278_s14 + $0x34] sm:$0xf] %v325_v13  ;;  %v329_v15 = vld [vmem:[%s1900_s26 + $0x78] sm:$0xf] }
  0x27   : > { %328 = vst [vmem:[%s278_s14 + $0x38] sm:$0xf] %v327_v14  ;;  %330 = vst [vmem:[%s278_s14 + $0x3c] sm:$0xf] %v329_v15 }
  0x28 PF: > { %p1329_p7 = scmp.ge.s32.totalorder %s1792_s11, 1  ;;  %p393_p8 = scmp.lt.s32.totalorder %s1792_s11, 5 }
  0x2a   : > { %p394_p9 = pnand %p1329_p7, %p393_p8 }
  0x2b   : > { %s400_s15 = sand.u32 (!%p394_p9), 1, %s1768_s27   ;;  %s1331_s16 = sshll.u32 (!%p394_p9), %s1776_s29, 4 }
  0x2c   : > { %397 = sbr.rel (%p394_p9) target bundleno = 788 (0x314), region = 85  ;;  %s1330_s17 = sshll.u32 (!%p394_p9), %s400_s15, 6 }
  0x2d   : > { %p445_p10 = scmp.lt.s32.totalorder (!%p394_p9), %s1331_s16, 31  ;;  %s1333_s19 = sshll.u32 (!%p394_p9), %s1780_s30, 4 }
  0x2e   : > { %p451_p11 = scmp.lt.s32.totalorder (!%p394_p9), %s1333_s19, 31  ;;  %s1938_s30 = scalar_lea.vmem (!%p394_p9), [#allocation3], %s1330_s17 }
  0x2f   : > { %p1337_p12 = scmp.ne.s32.totalorder (!%p394_p9), %s1776_s29, 0 }
  0x33   : > { %s2158_s16 = smov (!%p445_p10, %s1331_s16), 31  ;;  %s2160_s19 = smov (!%p451_p11, %s1333_s19), 31 }
  0x34   : > { %s1332_s20 = sshll.u32 %s2158_s16, 2  ;;  %s1334_s24 = sshll.u32 %s2160_s19, 3  ;;  %v1794_v16 = vmov (!%p1337_p12), 0.0  }
  0x35   : > { %s1926_s23 = scalar_lea.vmem %s2135_s1, %s1332_s20  ;;  %s1931_s14 = scalar_lea.vmem %s2141_s7, %s1334_s24  ;;  %467 = vst [vmem:[#allocation2] sm:$0xff] (!%p1337_p12), %v1794_v16  ;;  %468 = vst [vmem:[#allocation2 + $0x8] sm:$0xff] (!%p1337_p12), %v1794_v16 }
  0x36   : > { %s1936_s15 = scalar_lea.vmem %s2142_s8, %s1334_s24  ;;  %466 = sbr.rel (%p1337_p12) target bundleno = 61 (0x3d), region = 93  ;;  %469 = vst [vmem:[#allocation2 + $0x10] sm:$0xff] (!%p1337_p12), %v1794_v16  ;;  %470 = vst [vmem:[#allocation2 + $0x18] sm:$0xff] (!%p1337_p12), %v1794_v16 }
  0x37   : > { %471 = vst [vmem:[#allocation2 + $0x20] sm:$0xff] (!%p1337_p12), %v1794_v16  ;;  %472 = vst [vmem:[#allocation2 + $0x28] sm:$0xff] (!%p1337_p12), %v1794_v16 }
  0x38   : > { %473 = vst [vmem:[#allocation2 + $0x30] sm:$0xff] (!%p1337_p12), %v1794_v16  ;;  %474 = vst [vmem:[#allocation2 + $0x38] sm:$0xff] (!%p1337_p12), %v1794_v16 }
  0x39   : > { %475 = vst [vmem:[#allocation2 + $0x40] sm:$0xff] (!%p1337_p12), %v1794_v16  ;;  %476 = vst [vmem:[#allocation2 + $0x48] sm:$0xff] (!%p1337_p12), %v1794_v16 }
  0x3a   : > { %477 = vst [vmem:[#allocation2 + $0x50] sm:$0xff] (!%p1337_p12), %v1794_v16  ;;  %478 = vst [vmem:[#allocation2 + $0x58] sm:$0xff] (!%p1337_p12), %v1794_v16 }
  0x3b   : > { %479 = vst [vmem:[#allocation2 + $0x60] sm:$0xff] (!%p1337_p12), %v1794_v16  ;;  %480 = vst [vmem:[#allocation2 + $0x68] sm:$0xff] (!%p1337_p12), %v1794_v16 }
  0x3c   : > { %481 = vst [vmem:[#allocation2 + $0x70] sm:$0xff] (!%p1337_p12), %v1794_v16  ;;  %482 = vst [vmem:[#allocation2 + $0x78] sm:$0xff] (!%p1337_p12), %v1794_v16 }
  0x3d PF: > { %v1722_v17 = vld [vmem:[%s1926_s23] sm:$0xff]   ;;  %v1723_v18 = vld [vmem:[%s1926_s23 + $0x8] sm:$0xff]   ;;  %v1724_v19 = vld [vmem:[%s1926_s23 + $0x10] sm:$0xff]   ;;  %p1354_p13 = scmp.ne.s32.totalorder %s1776_s29, 1 }
  0x3e   : > { %1441 = vmatprep.subr.bf16.mxu0 %v1722_v17  ;;  %1649 = vmatprep.subr.bf16.mxu1 %v1722_v17  ;;  %v1725_v20 = vld [vmem:[%s1926_s23 + $0x18] sm:$0xff]   ;;  %v1730_v21 = vld [vmem:[%s1938_s30] sm:$0xff]   ;;  %v1727_v24 = vld [vmem:[%s1926_s23 + $0x28] sm:$0xff]  }
  0x3f   : > { %1442 = vmatpush3.bf16.msra.mxu0 %v1722_v17  ;;  %1657 = vmatpush3.bf16.msra.mxu1 %v1722_v17  ;;  %v1731_v22 = vld [vmem:[%s1938_s30 + $0x20] sm:$0xff]   ;;  %v1728_v25 = vld [vmem:[%s1926_s23 + $0x30] sm:$0xff]   ;;  %v1729_v26 = vld [vmem:[%s1926_s23 + $0x38] sm:$0xff]  }
  0x40   : > { %1443 = vmatprep.subr.bf16.mxu0 %v1723_v18  ;;  %1650 = vmatprep.subr.bf16.mxu1 %v1723_v18  ;;  %v1726_v23 = vld [vmem:[%s1926_s23 + $0x20] sm:$0xff]   ;;  %v1732_v27 = vld [vmem:[%s1938_s30 + $0x8] sm:$0xff]   ;;  %v1734_v29 = vld [vmem:[%s1938_s30 + $0x10] sm:$0xff]  }
  0x41   : > { %1457 = vmatprep.mubr.bf16.mxu0 %v1730_v21  ;;  %1465 = vmatprep.mubr.bf16.mxu1 %v1731_v22  ;;  %v1733_v28 = vld [vmem:[%s1938_s30 + $0x28] sm:$0xff]   ;;  %v1735_v30 = vld [vmem:[%s1938_s30 + $0x30] sm:$0xff]   ;;  %v1736_v31 = vld [vmem:[%s1938_s30 + $0x18] sm:$0xff]  }
  0x42   : > { %v1737_v32 = vld [vmem:[%s1938_s30 + $0x38] sm:$0xff]   ;;  %v485_v33 = vld [vmem:[#allocation2 + $0x10] sm:$0xff]  ;;  %v483_v35 = vld [vmem:[#allocation2] sm:$0xff] }
  0x43   : > { %1444 = vmatpush3.bf16.msra.mxu0 %v1723_v18  ;;  %1658 = vmatpush3.bf16.msra.mxu1 %v1723_v18  ;;  %v493_v34 = vld [vmem:[#allocation2 + $0x50] sm:$0xff]  ;;  %v491_v36 = vld [vmem:[#allocation2 + $0x40] sm:$0xff]  ;;  %v486_v39 = vld [vmem:[#allocation2 + $0x18] sm:$0xff] }
  0x44   : > { %1445 = vmatprep.subr.bf16.mxu0 %v1724_v19  ;;  %1651 = vmatprep.subr.bf16.mxu1 %v1724_v19  ;;  %v494_v40 = vld [vmem:[#allocation2 + $0x58] sm:$0xff]  ;;  %v484_v45 = vld [vmem:[#allocation2 + $0x8] sm:$0xff]  ;;  %v489_v57 = vld [vmem:[#allocation2 + $0x30] sm:$0xff] }
  0x45   : > { %v492_v46 = vld [vmem:[#allocation2 + $0x48] sm:$0xff]  ;;  %v497_v58 = vld [vmem:[#allocation2 + $0x70] sm:$0xff]  ;;  %v487_v59 = vld [vmem:[#allocation2 + $0x20] sm:$0xff] }
  0x46   : > { %v495_v60 = vld [vmem:[#allocation2 + $0x60] sm:$0xff]  ;;  %v490_v63 = vld [vmem:[#allocation2 + $0x38] sm:$0xff]  ;;  %v488_v5 = vld [vmem:[#allocation2 + $0x28] sm:$0xff] }
  0x47   : > { %1446 = vmatpush3.bf16.msra.mxu0 %v1724_v19  ;;  %1659 = vmatpush3.bf16.msra.mxu1 %v1724_v19  ;;  %v498_v0 = vld [vmem:[#allocation2 + $0x78] sm:$0xff]  ;;  %v496_v6 = vld [vmem:[#allocation2 + $0x68] sm:$0xff]  ;;  %v815_v17 = vld [vmem:[%s2137_s3] sm:$0xff] (!%p1354_p13) }
  0x48   : > { %1447 = vmatprep.subr.bf16.mxu0 %v1725_v20  ;;  %1652 = vmatprep.subr.bf16.mxu1 %v1725_v20  ;;  %v816_v18 = vld [vmem:[%s2137_s3 + $0x8] sm:$0xff] (!%p1354_p13)  ;;  %v817_v19 = vld [vmem:[%s2137_s3 + $0x10] sm:$0xff] (!%p1354_p13)  ;;  %v818_v21 = vld [vmem:[%s2137_s3 + $0x18] sm:$0xff] (!%p1354_p13) }
  0x49   : > { %v1589_v22 = vpack.c.bf16 (!%p1354_p13), %v818_v21, %v817_v19 }
  0x4b   : > { %1448 = vmatpush3.bf16.msra.mxu0 %v1725_v20  ;;  %1660 = vmatpush3.bf16.msra.mxu1 %v1725_v20  ;;  %v1585_v20 = vpack.c.bf16 (!%p1354_p13), %v816_v18, %v815_v17 }
  0x4c   : > { %1449 = vmatprep.subr.bf16.mxu0 %v1726_v23  ;;  %1653 = vmatprep.subr.bf16.mxu1 %v1726_v23 }
  0x4f   : > { %1450 = vmatpush3.bf16.msra.mxu0 %v1726_v23  ;;  %1661 = vmatpush3.bf16.msra.mxu1 %v1726_v23  ;;  %v819_v23 = vld [vmem:[%s2137_s3 + $0x20] sm:$0xff] (!%p1354_p13) }
  0x50   : > { %1451 = vmatprep.subr.bf16.mxu0 %v1727_v24  ;;  %1654 = vmatprep.subr.bf16.mxu1 %v1727_v24 }
  0x53   : > { %1452 = vmatpush3.bf16.msra.mxu0 %v1727_v24  ;;  %1662 = vmatpush3.bf16.msra.mxu1 %v1727_v24  ;;  %v820_v24 = vld [vmem:[%s2137_s3 + $0x28] sm:$0xff] (!%p1354_p13) }
  0x54   : > { %1453 = vmatprep.subr.bf16.mxu0 %v1728_v25  ;;  %1655 = vmatprep.subr.bf16.mxu1 %v1728_v25 }
  0x57   : > { %1454 = vmatpush3.bf16.msra.mxu0 %v1728_v25  ;;  %1663 = vmatpush3.bf16.msra.mxu1 %v1728_v25  ;;  %v1593_v25 = vpack.c.bf16 (!%p1354_p13), %v820_v24, %v819_v23 }
  0x58   : > { %1455 = vmatprep.subr.bf16.mxu0 %v1729_v26  ;;  %1656 = vmatprep.subr.bf16.mxu1 %v1729_v26 }
  0x5b   : > { %1456 = vmatpush3.bf16.msra.mxu0 %v1729_v26  ;;  %1664 = vmatpush3.bf16.msra.mxu1 %v1729_v26 }
  0x5c   : > { %1586 = vmatprep.subr.bf16.mxu0 (!%p1354_p13), %v1585_v20 }
  0x5e   : > { %1458 = vmatmul.mubr.bf16.vlgmr.msra.gmra.mrb[0].mxu0 %v1732_v27  ;;  %1466 = vmatmul.mubr.bf16.vlgmr.msra.gmra.mrb[0].mxu1 %v1733_v28  ;;  %v1979_v27 = vld [vmem:[%s2136_s2] ss:$0 sm:$0xff] (!%p1354_p13)  ;;  %v821_v28 = vld [vmem:[%s2137_s3 + $0x30] sm:$0xff] (!%p1354_p13) }
  0x5f   : > { %1461 = vmatprep.mubr.bf16.mxu0 %v1734_v29  ;;  %1469 = vmatprep.mubr.bf16.mxu1 %v1735_v30  ;;  %v822_v29 = vld [vmem:[%s2137_s3 + $0x38] sm:$0xff] (!%p1354_p13) }
  0x60   : > { %1588 = vmatpush3.bf16.msra.mxu0 (!%p1354_p13), %v1585_v20 }
  0x61   : > { %1590 = vmatprep.subr.bf16.mxu0 (!%p1354_p13), %v1589_v22 }
  0x64   : > { %1592 = vmatpush3.bf16.msra.mxu0 (!%p1354_p13), %v1589_v22 }
  0x65   : > { %1594 = vmatprep.subr.bf16.mxu0 (!%p1354_p13), %v1593_v25 }
  0x66   : > { %1462 = vmatmul.mubr.bf16.gmra.mrb[4].mxu0 %v1736_v31  ;;  %1470 = vmatmul.mubr.bf16.gmra.mrb[4].mxu1 %v1737_v32  ;;  %v1597_v32 = vpack.c.bf16 (!%p1354_p13), %v822_v29, %v821_v28 }
  0x68   : > { %1596 = vmatpush3.bf16.msra.mxu0 (!%p1354_p13), %v1593_v25 }
  0x69   : > { %1598 = vmatprep.subr.bf16.mxu0 (!%p1354_p13), %v1597_v32 }
  0x6c   : > { %1600 = vmatpush3.bf16.msra.mxu0 (!%p1354_p13), %v1597_v32 }
 0x131   : > { %v1459_v37 = vpop.f32.mrb[0].mxu0  ;;  %v1467_v38 = vpop.f32.mrb[0].mxu1 }
 0x132   : > { %v726_v41 = vadd.f32 %v1459_v37, %v485_v33  ;;  %v734_v42 = vadd.f32 %v1467_v38, %v493_v34  ;;  %v661_v43 = vpop.f32.mrb[1].mxu0  ;;  %v693_v44 = vpop.f32.mrb[1].mxu1  ;;  %v823_v33 = vld [vmem:[%s2137_s3 + $0x40] sm:$0xff] (!%p1354_p13)  ;;  %v824_v34 = vld [vmem:[%s2137_s3 + $0x48] sm:$0xff] (!%p1354_p13)  ;;  %v985_v37 = vld [vmem:[%s2139_s5 + $0x10] sm:$0xff] (!%p1354_p13) }
 0x133   : > { %v724_v47 = vadd.f32 %v661_v43, %v483_v35  ;;  %v732_v48 = vadd.f32 %v693_v44, %v491_v36  ;;  %v1460_v49 = vpop.f32.mrb[2].mxu0  ;;  %v1468_v50 = vpop.f32.mrb[2].mxu1  ;;  %v983_v35 = vld [vmem:[%s2139_s5] sm:$0xff] (!%p1354_p13)  ;;  %v984_v36 = vld [vmem:[%s2139_s5 + $0x8] sm:$0xff] (!%p1354_p13)  ;;  %v986_v38 = vld [vmem:[%s2139_s5 + $0x18] sm:$0xff] (!%p1354_p13) }
 0x134   : > { %742 = vst [vmem:[#allocation2 + $0x10] sm:$0xff] %v726_v41  ;;  %750 = vst [vmem:[#allocation2 + $0x50] sm:$0xff] %v734_v42  ;;  %v727_v51 = vadd.f32 %v1460_v49, %v486_v39  ;;  %v735_v52 = vadd.f32 %v1468_v50, %v494_v40  ;;  %v664_v53 = vpop.f32.mrb[3].mxu0  ;;  %v696_v54 = vpop.f32.mrb[3].mxu1  ;;  %v1601_v39 = vpack.c.bf16 (!%p1354_p13), %v824_v34, %v823_v33  ;;  %v825_v40 = vld [vmem:[%s2137_s3 + $0x50] sm:$0xff] (!%p1354_p13)  ;;  %v826_v41 = vld [vmem:[%s2137_s3 + $0x58] sm:$0xff] (!%p1354_p13) }
 0x135   : > { %740 = vst [vmem:[#allocation2] sm:$0xff] %v724_v47  ;;  %748 = vst [vmem:[#allocation2 + $0x40] sm:$0xff] %v732_v48  ;;  %v725_v55 = vadd.f32 %v664_v53, %v484_v45  ;;  %v733_v56 = vadd.f32 %v696_v54, %v492_v46  ;;  %v1617_v42 = vpack.c.bf16 (!%p1354_p13), %v984_v36, %v983_v35  ;;  %v987_v44 = vld [vmem:[%s2139_s5 + $0x20] sm:$0xff] (!%p1354_p13)  ;;  %v988_v45 = vld [vmem:[%s2139_s5 + $0x28] sm:$0xff] (!%p1354_p13) }
 0x136   : > { %743 = vst [vmem:[#allocation2 + $0x18] sm:$0xff] %v727_v51  ;;  %751 = vst [vmem:[#allocation2 + $0x58] sm:$0xff] %v735_v52  ;;  %v1621_v43 = vpack.c.bf16 (!%p1354_p13), %v986_v38, %v985_v37  ;;  %1602 = vmatprep.subr.bf16.mxu0 (!%p1354_p13), %v1601_v39  ;;  %v1605_v46 = vpack.c.bf16 (!%p1354_p13), %v826_v41, %v825_v40  ;;  %v827_v47 = vld [vmem:[%s2137_s3 + $0x60] sm:$0xff] (!%p1354_p13)  ;;  %v828_v48 = vld [vmem:[%s2137_s3 + $0x68] sm:$0xff] (!%p1354_p13)  ;;  %v1625_v49 = vpack.c.bf16 (!%p1354_p13), %v988_v45, %v987_v44 }
 0x137   : > { %741 = vst [vmem:[#allocation2 + $0x8] sm:$0xff] %v725_v55  ;;  %749 = vst [vmem:[#allocation2 + $0x48] sm:$0xff] %v733_v56  ;;  %1618 = vmatprep.subr.bf16.mxu1 (!%p1354_p13), %v1617_v42  ;;  %v989_v50 = vld [vmem:[%s2139_s5 + $0x30] sm:$0xff] (!%p1354_p13)  ;;  %v990_v51 = vld [vmem:[%s2139_s5 + $0x38] sm:$0xff] (!%p1354_p13)  ;;  %1604 = vmatpush3.bf16.msra.mxu0 (!%p1354_p13), %v1601_v39  ;;  %v1609_v52 = vpack.c.bf16 (!%p1354_p13), %v828_v48, %v827_v47 }
 0x138   : > { %1620 = vmatpush3.bf16.msra.mxu1 (!%p1354_p13), %v1617_v42  ;;  %1606 = vmatprep.subr.bf16.mxu0 (!%p1354_p13), %v1605_v46  ;;  %v829_v53 = vld [vmem:[%s2137_s3 + $0x70] sm:$0xff] (!%p1354_p13)  ;;  %v830_v54 = vld [vmem:[%s2137_s3 + $0x78] sm:$0xff] (!%p1354_p13)  ;;  %v1629_v55 = vpack.c.bf16 (!%p1354_p13), %v990_v51, %v989_v50  ;;  %v991_v56 = vld [vmem:[%s2139_s5 + $0x40] sm:$0xff] (!%p1354_p13) }
 0x139   : > { %v1463_v61 = vpop.f32.mrb[4].mxu0  ;;  %v1471_v62 = vpop.f32.mrb[4].mxu1  ;;  %759 = sbr.rel (%p1354_p13) target bundleno = 788 (0x314), region = 97  ;;  %1622 = vmatprep.subr.bf16.mxu1 (!%p1354_p13), %v1621_v43  ;;  %v997_v48 = vld [vmem:[%s2139_s5 + $0x70] sm:$0xff] (!%p1354_p13) }
 0x13a   : > { %v730_v1 = vadd.f32 %v1463_v61, %v489_v57  ;;  %v738_v2 = vadd.f32 %v1471_v62, %v497_v58  ;;  %v677_v3 = vpop.f32.mrb[5].mxu0  ;;  %v709_v4 = vpop.f32.mrb[5].mxu1  ;;  %v992_v57 = vld [vmem:[%s2139_s5 + $0x48] sm:$0xff] (!%p1354_p13) }
 0x13b   : > { %v728_v7 = vadd.f32 %v677_v3, %v487_v59  ;;  %v736_v8 = vadd.f32 %v709_v4, %v495_v60  ;;  %v1464_v9 = vpop.f32.mrb[6].mxu0  ;;  %v1472_v10 = vpop.f32.mrb[6].mxu1  ;;  %1608 = vmatpush3.bf16.msra.mxu0 (!%p1354_p13), %v1605_v46  ;;  %v1613_v59 = vpack.c.bf16 (!%p1354_p13), %v830_v54, %v829_v53  ;;  %v762_v60 = vld [vmem:[#allocation2 + $0x10] sm:$0xff] (!%p1354_p13)  ;;  %v1633_v61 = vpack.c.bf16 (!%p1354_p13), %v992_v57, %v991_v56 }
 0x13c   : > { %746 = vst [vmem:[#allocation2 + $0x30] sm:$0xff] %v730_v1  ;;  %754 = vst [vmem:[#allocation2 + $0x70] sm:$0xff] %v738_v2  ;;  %v731_v11 = vadd.f32 %v1464_v9, %v490_v63  ;;  %v739_v12 = vadd.f32 %v1472_v10, %v498_v0  ;;  %v680_v13 = vpop.f32.mrb[7].mxu0  ;;  %v712_v14 = vpop.f32.mrb[7].mxu1  ;;  %v760_v26 = vld [vmem:[#allocation2] sm:$0xff] (!%p1354_p13)  ;;  %1624 = vmatpush3.bf16.msra.mxu1 (!%p1354_p13), %v1621_v43  ;;  %1610 = vmatprep.subr.bf16.mxu0 (!%p1354_p13), %v1609_v52  ;;  %v993_v63 = vld [vmem:[%s2139_s5 + $0x50] sm:$0xff] (!%p1354_p13) }
 0x13d   : > { %744 = vst [vmem:[#allocation2 + $0x20] sm:$0xff] %v728_v7  ;;  %752 = vst [vmem:[#allocation2 + $0x60] sm:$0xff] %v736_v8  ;;  %v729_v15 = vadd.f32 %v680_v13, %v488_v5  ;;  %v737_v16 = vadd.f32 %v712_v14, %v496_v6  ;;  %v783_v30 = vadd.f32 (!%p1354_p13), %v1979_v27, %v760_v26  ;;  %1626 = vmatprep.subr.bf16.mxu1 (!%p1354_p13), %v1625_v49  ;;  %v994_v0 = vld [vmem:[%s2139_s5 + $0x58] sm:$0xff] (!%p1354_p13)  ;;  %v995_v7 = vld [vmem:[%s2139_s5 + $0x60] sm:$0xff] (!%p1354_p13) }
 0x13e   : > { %747 = vst [vmem:[#allocation2 + $0x38] sm:$0xff] %v731_v11  ;;  %755 = vst [vmem:[#allocation2 + $0x78] sm:$0xff] %v739_v12  ;;  %v761_v58 = vld [vmem:[#allocation2 + $0x8] sm:$0xff] (!%p1354_p13)  ;;  %v785_v1 = vadd.f32 (!%p1354_p13), %v1979_v27, %v762_v60  ;;  %v763_v2 = vld [vmem:[#allocation2 + $0x18] sm:$0xff] (!%p1354_p13)  ;;  %v1637_v4 = vpack.c.bf16 (!%p1354_p13), %v994_v0, %v993_v63 }
 0x13f   : > { %745 = vst [vmem:[#allocation2 + $0x28] sm:$0xff] %v729_v15  ;;  %753 = vst [vmem:[#allocation2 + $0x68] sm:$0xff] %v737_v16  ;;  %v799_v31 = vmax.f32 (!%p1354_p13), %v783_v30, 0.0  ;;  %v784_v62 = vadd.f32 (!%p1354_p13), %v1979_v27, %v761_v58  ;;  %1612 = vmatpush3.bf16.msra.mxu0 (!%p1354_p13), %v1609_v52  ;;  %v786_v6 = vadd.f32 (!%p1354_p13), %v1979_v27, %v763_v2  ;;  %v996_v8 = vld [vmem:[%s2139_s5 + $0x68] sm:$0xff] (!%p1354_p13)  ;;  %v768_v19 = vld [vmem:[#allocation2 + $0x40] sm:$0xff] (!%p1354_p13) }
 0x140   : > { %1628 = vmatpush3.bf16.msra.mxu1 %v1625_v49  ;;  %1614 = vmatprep.subr.bf16.mxu0 %v1613_v59  ;;  %v801_v9 = vmax.f32 %v785_v1, 0.0  ;;  %v1641_v13 = vpack.c.bf16 %v996_v8, %v995_v7  ;;  %v791_v23 = vadd.f32 %v1979_v27, %v768_v19  ;;  %v769_v24 = vld [vmem:[#allocation2 + $0x48] sm:$0xff]  ;;  %v770_v25 = vld [vmem:[#allocation2 + $0x50] sm:$0xff]  ;;  %v998_v49 = vld [vmem:[%s2139_s5 + $0x78] sm:$0xff] }
 0x141   : > { %1505 = vmatprep.mubr.f32.mxu0 %v799_v31  ;;  %1630 = vmatprep.subr.bf16.mxu1 %v1629_v55  ;;  %v800_v5 = vmax.f32 %v784_v62, 0.0  ;;  %v802_v14 = vmax.f32 %v786_v6, 0.0  ;;  %v792_v28 = vadd.f32 %v1979_v27, %v769_v24  ;;  %v793_v30 = vadd.f32 %v1979_v27, %v770_v25  ;;  %v771_v31 = vld [vmem:[#allocation2 + $0x58] sm:$0xff]  ;;  %v1357_v19 = vld [vmem:[%s2140_s6] ss:$0 sm:$0xff] }
 0x142   : > { %v807_v29 = vmax.f32 %v791_v23, 0.0  ;;  %v794_v34 = vadd.f32 %v1979_v27, %v771_v31  ;;  %v1645_v50 = vpack.c.bf16 %v998_v49, %v997_v48 }
 0x143   : > { %1616 = vmatpush3.bf16.msra.mxu0 %v1613_v59  ;;  %v766_v12 = vld [vmem:[#allocation2 + $0x30] sm:$0xff]  ;;  %v808_v33 = vmax.f32 %v792_v28, 0.0  ;;  %v809_v35 = vmax.f32 %v793_v30, 0.0 }
 0x144   : > { %v764_v3 = vld [vmem:[#allocation2 + $0x20] sm:$0xff]  ;;  %1632 = vmatpush3.bf16.msra.mxu1 %v1629_v55  ;;  %v789_v17 = vadd.f32 %v1979_v27, %v766_v12  ;;  %v774_v38 = vld [vmem:[#allocation2 + $0x70] sm:$0xff]  ;;  %v810_v39 = vmax.f32 %v794_v34, 0.0 }
 0x145   : > { %1634 = vmatprep.subr.bf16.mxu1 %v1633_v61  ;;  %v787_v10 = vadd.f32 %v1979_v27, %v764_v3  ;;  %v767_v18 = vld [vmem:[#allocation2 + $0x38] sm:$0xff]  ;;  %v772_v32 = vld [vmem:[#allocation2 + $0x60] sm:$0xff]  ;;  %v797_v42 = vadd.f32 %v1979_v27, %v774_v38 }
 0x146   : > { %v765_v11 = vld [vmem:[#allocation2 + $0x28] sm:$0xff]  ;;  %1506 = vmatmul.mubr.f32.vlgmr.msra.gmra.mrb[0].mxu0 %v800_v5  ;;  %v790_v21 = vadd.f32 %v1979_v27, %v767_v18  ;;  %v805_v22 = vmax.f32 %v789_v17, 0.0  ;;  %v795_v36 = vadd.f32 %v1979_v27, %v772_v32  ;;  %v775_v43 = vld [vmem:[#allocation2 + $0x78] sm:$0xff] }
 0x147   : > { %v788_v15 = vadd.f32 %v1979_v27, %v765_v11  ;;  %1508 = vmatprep.mubr.f32.mxu0 %v801_v9  ;;  %v803_v16 = vmax.f32 %v787_v10, 0.0  ;;  %v773_v37 = vld [vmem:[#allocation2 + $0x68] sm:$0xff]  ;;  %v798_v45 = vadd.f32 %v1979_v27, %v775_v43  ;;  %v813_v46 = vmax.f32 %v797_v42, 0.0 }
 0x148   : > { %1636 = vmatpush3.bf16.msra.mxu1 %v1633_v61  ;;  %v806_v26 = vmax.f32 %v790_v21, 0.0  ;;  %v796_v40 = vadd.f32 %v1979_v27, %v773_v37  ;;  %v811_v41 = vmax.f32 %v795_v36, 0.0  ;;  %v1356_v27 = vld [vmem:[%s2138_s4] ss:$0 sm:$0xff] }
 0x149   : > { %1638 = vmatprep.subr.bf16.mxu1 %v1637_v4  ;;  %v804_v20 = vmax.f32 %v788_v15, 0.0  ;;  %v814_v47 = vmax.f32 %v798_v45, 0.0 }
 0x14a   : > { %1509 = vmatmul.mubr.f32.gmra.mrb[2].mxu0 %v802_v14  ;;  %v812_v44 = vmax.f32 %v796_v40, 0.0 }
 0x14b   : > { %1511 = vmatprep.mubr.f32.mxu0 %v803_v16 }
 0x14c   : > { %1640 = vmatpush3.bf16.msra.mxu1 %v1637_v4 }
 0x14d   : > { %1642 = vmatprep.subr.bf16.mxu1 %v1641_v13 }
 0x14e   : > { %1512 = vmatmul.mubr.f32.gmra.mrb[4].mxu0 %v804_v20 }
 0x14f   : > { %1514 = vmatprep.mubr.f32.mxu0 %v805_v22 }
 0x150   : > { %1644 = vmatpush3.bf16.msra.mxu1 %v1641_v13 }
 0x151   : > { %1646 = vmatprep.subr.bf16.mxu1 %v1645_v50 }
 0x152   : > { %1515 = vmatmul.mubr.f32.gmra.mrb[6].mxu0 %v806_v26 }
 0x153   : > { %1517 = vmatprep.mubr.f32.mxu0 %v807_v29 }
 0x154   : > { %1648 = vmatpush3.bf16.msra.mxu1 %v1645_v50 }
 0x156   : > { %1518 = vmatmul.mubr.f32.gmra.mrb[8].mxu0 %v808_v33 }
 0x157   : > { %1520 = vmatprep.mubr.f32.mxu0 %v809_v35 }
 0x15a   : > { %1521 = vmatmul.mubr.f32.gmra.mrb[10].mxu0 %v810_v39 }
 0x15b   : > { %1523 = vmatprep.mubr.f32.mxu0 %v811_v41 }
 0x15e   : > { %1524 = vmatmul.mubr.f32.gmra.mrb[12].mxu0 %v812_v44 }
 0x15f   : > { %1526 = vmatprep.mubr.f32.mxu0 %v813_v46 }
 0x162   : > { %1527 = vmatmul.mubr.f32.gmra.mrb[14].mxu0 %v814_v47 }
 0x219   : > { %v1507_v51 = vpop.f32.mrb[0].mxu0 }
 0x21a   : > { %v910_v52 = vadd.f32 %v1507_v51, %v1356_v27  ;;  %v904_v53 = vpop.f32.mrb[1].mxu0 }
 0x21b   : > { %v905_v54 = vadd.f32 %v1356_v27, %v904_v53 }
 0x21c   : > { %1168 = vst [vmem:[%s1931_s14 + $0x8] sm:$0xff] %v910_v52 }
 0x21d   : > { %1167 = vst [vmem:[%s1931_s14] sm:$0xff] %v905_v54  ;;  %v1510_v55 = vpop.f32.mrb[2].mxu0  ;;  %1561 = vmatprep.mubr.f32.mxu1 %v905_v54 }
 0x21e   : > { %v920_v56 = vadd.f32 %v1510_v55, %v1356_v27  ;;  %v914_v57 = vpop.f32.mrb[3].mxu0  ;;  %1562 = vmatmul.mubr.f32.vlgmr.msra.gmra.mrb[0].mxu1 %v910_v52 }
 0x21f   : > { %v915_v58 = vadd.f32 %v1356_v27, %v914_v57 }
 0x220   : > { %1170 = vst [vmem:[%s1931_s14 + $0x18] sm:$0xff] %v920_v56 }
 0x221   : > { %1169 = vst [vmem:[%s1931_s14 + $0x10] sm:$0xff] %v915_v58  ;;  %v1513_v59 = vpop.f32.mrb[4].mxu0  ;;  %1564 = vmatprep.mubr.f32.mxu1 %v915_v58 }
 0x222   : > { %v930_v60 = vadd.f32 %v1513_v59, %v1356_v27  ;;  %v924_v61 = vpop.f32.mrb[5].mxu0  ;;  %1565 = vmatmul.mubr.f32.gmra.mrb[2].mxu1 %v920_v56 }
 0x223   : > { %v925_v62 = vadd.f32 %v1356_v27, %v924_v61 }
 0x224   : > { %1172 = vst [vmem:[%s1931_s14 + $0x28] sm:$0xff] %v930_v60 }
 0x225   : > { %1171 = vst [vmem:[%s1931_s14 + $0x20] sm:$0xff] %v925_v62  ;;  %v1516_v63 = vpop.f32.mrb[6].mxu0  ;;  %1567 = vmatprep.mubr.f32.mxu1 %v925_v62 }
 0x226   : > { %v940_v0 = vadd.f32 %v1516_v63, %v1356_v27  ;;  %v934_v1 = vpop.f32.mrb[7].mxu0  ;;  %1568 = vmatmul.mubr.f32.gmra.mrb[4].mxu1 %v930_v60 }
 0x227   : > { %v935_v2 = vadd.f32 %v1356_v27, %v934_v1 }
 0x228   : > { %1174 = vst [vmem:[%s1931_s14 + $0x38] sm:$0xff] %v940_v0 }
 0x229   : > { %1173 = vst [vmem:[%s1931_s14 + $0x30] sm:$0xff] %v935_v2  ;;  %v1519_v3 = vpop.f32.mrb[8].mxu0  ;;  %1570 = vmatprep.mubr.f32.mxu1 %v935_v2 }
 0x22a   : > { %v950_v4 = vadd.f32 %v1519_v3, %v1356_v27  ;;  %v944_v5 = vpop.f32.mrb[9].mxu0  ;;  %1571 = vmatmul.mubr.f32.gmra.mrb[6].mxu1 %v940_v0 }
 0x22b   : > { %v945_v6 = vadd.f32 %v1356_v27, %v944_v5 }
 0x22c   : > { %1176 = vst [vmem:[%s1931_s14 + $0x48] sm:$0xff] %v950_v4 }
 0x22d   : > { %1175 = vst [vmem:[%s1931_s14 + $0x40] sm:$0xff] %v945_v6  ;;  %v1522_v7 = vpop.f32.mrb[10].mxu0  ;;  %1573 = vmatprep.mubr.f32.mxu1 %v945_v6 }
 0x22e   : > { %v960_v8 = vadd.f32 %v1522_v7, %v1356_v27  ;;  %v954_v9 = vpop.f32.mrb[11].mxu0  ;;  %1574 = vmatmul.mubr.f32.gmra.mrb[8].mxu1 %v950_v4 }
 0x22f   : > { %v955_v10 = vadd.f32 %v1356_v27, %v954_v9 }
 0x230   : > { %1178 = vst [vmem:[%s1931_s14 + $0x58] sm:$0xff] %v960_v8 }
 0x231   : > { %1177 = vst [vmem:[%s1931_s14 + $0x50] sm:$0xff] %v955_v10  ;;  %v1525_v11 = vpop.f32.mrb[12].mxu0  ;;  %1576 = vmatprep.mubr.f32.mxu1 %v955_v10 }
 0x232   : > { %v970_v12 = vadd.f32 %v1525_v11, %v1356_v27  ;;  %v964_v13 = vpop.f32.mrb[13].mxu0  ;;  %1577 = vmatmul.mubr.f32.gmra.mrb[10].mxu1 %v960_v8 }
 0x233   : > { %v965_v14 = vadd.f32 %v1356_v27, %v964_v13 }
 0x234   : > { %1180 = vst [vmem:[%s1931_s14 + $0x68] sm:$0xff] %v970_v12 }
 0x235   : > { %1179 = vst [vmem:[%s1931_s14 + $0x60] sm:$0xff] %v965_v14  ;;  %v1528_v15 = vpop.f32.mrb[14].mxu0  ;;  %1579 = vmatprep.mubr.f32.mxu1 %v965_v14 }
 0x236   : > { %v980_v16 = vadd.f32 %v1528_v15, %v1356_v27  ;;  %v974_v17 = vpop.f32.mrb[15].mxu0  ;;  %1580 = vmatmul.mubr.f32.gmra.mrb[12].mxu1 %v970_v12 }
 0x237   : > { %v975_v18 = vadd.f32 %v1356_v27, %v974_v17 }
 0x238   : > { %1182 = vst [vmem:[%s1931_s14 + $0x78] sm:$0xff] %v980_v16 }
 0x239   : > { %1181 = vst [vmem:[%s1931_s14 + $0x70] sm:$0xff] %v975_v18  ;;  %1582 = vmatprep.mubr.f32.mxu1 %v975_v18 }
 0x23a   : > { %1583 = vmatmul.mubr.f32.gmra.mrb[14].mxu1 %v980_v16 }
 0x2f1   : > { %v1563_v20 = vpop.f32.mrb[0].mxu1 }
 0x2f2   : > { %v1078_v21 = vadd.f32 %v1563_v20, %v1357_v19  ;;  %v1072_v22 = vpop.f32.mrb[1].mxu1 }
 0x2f3   : > { %v1073_v23 = vadd.f32 %v1357_v19, %v1072_v22 }
 0x2f4   : > { %v1152_v24 = vmax.f32 %v1078_v21, 0.0 }
 0x2f5   : > { %v1151_v25 = vmax.f32 %v1073_v23, 0.0  ;;  %v1566_v26 = vpop.f32.mrb[2].mxu1 }
 0x2f6   : > { %1184 = vst [vmem:[%s1936_s15 + $0x8] sm:$0xff] %v1152_v24  ;;  %v1088_v28 = vadd.f32 %v1566_v26, %v1357_v19  ;;  %v1082_v29 = vpop.f32.mrb[3].mxu1 }
 0x2f7   : > { %1183 = vst [vmem:[%s1936_s15] sm:$0xff] %v1151_v25  ;;  %v1083_v30 = vadd.f32 %v1357_v19, %v1082_v29 }
 0x2f8   : > { %v1154_v31 = vmax.f32 %v1088_v28, 0.0 }
 0x2f9   : > { %v1153_v32 = vmax.f32 %v1083_v30, 0.0  ;;  %v1569_v33 = vpop.f32.mrb[4].mxu1 }
 0x2fa   : > { %1186 = vst [vmem:[%s1936_s15 + $0x18] sm:$0xff] %v1154_v31  ;;  %v1098_v34 = vadd.f32 %v1569_v33, %v1357_v19  ;;  %v1092_v35 = vpop.f32.mrb[5].mxu1 }
 0x2fb   : > { %1185 = vst [vmem:[%s1936_s15 + $0x10] sm:$0xff] %v1153_v32  ;;  %v1093_v36 = vadd.f32 %v1357_v19, %v1092_v35 }
 0x2fc   : > { %v1156_v37 = vmax.f32 %v1098_v34, 0.0 }
 0x2fd   : > { %v1155_v38 = vmax.f32 %v1093_v36, 0.0  ;;  %v1572_v39 = vpop.f32.mrb[6].mxu1 }
 0x2fe   : > { %1188 = vst [vmem:[%s1936_s15 + $0x28] sm:$0xff] %v1156_v37  ;;  %v1108_v40 = vadd.f32 %v1572_v39, %v1357_v19  ;;  %v1102_v41 = vpop.f32.mrb[7].mxu1 }
 0x2ff   : > { %1187 = vst [vmem:[%s1936_s15 + $0x20] sm:$0xff] %v1155_v38  ;;  %v1103_v42 = vadd.f32 %v1357_v19, %v1102_v41 }
 0x300   : > { %v1158_v43 = vmax.f32 %v1108_v40, 0.0 }
 0x301   : > { %v1157_v44 = vmax.f32 %v1103_v42, 0.0  ;;  %v1575_v45 = vpop.f32.mrb[8].mxu1 }
 0x302   : > { %1190 = vst [vmem:[%s1936_s15 + $0x38] sm:$0xff] %v1158_v43  ;;  %v1118_v46 = vadd.f32 %v1575_v45, %v1357_v19  ;;  %v1112_v47 = vpop.f32.mrb[9].mxu1 }
 0x303   : > { %1189 = vst [vmem:[%s1936_s15 + $0x30] sm:$0xff] %v1157_v44  ;;  %v1113_v48 = vadd.f32 %v1357_v19, %v1112_v47 }
 0x304   : > { %v1160_v49 = vmax.f32 %v1118_v46, 0.0 }
 0x305   : > { %v1159_v50 = vmax.f32 %v1113_v48, 0.0  ;;  %v1578_v27 = vpop.f32.mrb[10].mxu1 }
 0x306   : > { %1192 = vst [vmem:[%s1936_s15 + $0x48] sm:$0xff] %v1160_v49  ;;  %v1128_v51 = vadd.f32 %v1578_v27, %v1357_v19  ;;  %v1122_v52 = vpop.f32.mrb[11].mxu1 }
 0x307   : > { %1191 = vst [vmem:[%s1936_s15 + $0x40] sm:$0xff] %v1159_v50  ;;  %v1123_v53 = vadd.f32 %v1357_v19, %v1122_v52 }
 0x308   : > { %v1162_v54 = vmax.f32 %v1128_v51, 0.0 }
 0x309   : > { %v1161_v55 = vmax.f32 %v1123_v53, 0.0  ;;  %v1581_v56 = vpop.f32.mrb[12].mxu1 }
 0x30a   : > { %1194 = vst [vmem:[%s1936_s15 + $0x58] sm:$0xff] %v1162_v54  ;;  %v1138_v57 = vadd.f32 %v1581_v56, %v1357_v19  ;;  %v1132_v58 = vpop.f32.mrb[13].mxu1 }
 0x30b   : > { %1193 = vst [vmem:[%s1936_s15 + $0x50] sm:$0xff] %v1161_v55  ;;  %v1133_v59 = vadd.f32 %v1357_v19, %v1132_v58 }
 0x30c   : > { %v1164_v60 = vmax.f32 %v1138_v57, 0.0 }
 0x30d   : > { %v1163_v61 = vmax.f32 %v1133_v59, 0.0  ;;  %v1584_v62 = vpop.f32.mrb[14].mxu1 }
 0x30e   : > { %1196 = vst [vmem:[%s1936_s15 + $0x68] sm:$0xff] %v1164_v60  ;;  %v1148_v63 = vadd.f32 %v1584_v62, %v1357_v19  ;;  %v1142_v0 = vpop.f32.mrb[15].mxu1 }
 0x30f   : > { %1195 = vst [vmem:[%s1936_s15 + $0x60] sm:$0xff] %v1163_v61  ;;  %v1143_v1 = vadd.f32 %v1357_v19, %v1142_v0 }
 0x310   : > { %v1166_v2 = vmax.f32 %v1148_v63, 0.0 }
 0x311   : > { %v1165_v3 = vmax.f32 %v1143_v1, 0.0 }
 0x312   : > { %1198 = vst [vmem:[%s1936_s15 + $0x78] sm:$0xff] %v1166_v2 }
 0x313   : > { %1197 = vst [vmem:[%s1936_s15 + $0x70] sm:$0xff] %v1165_v3 }
 0x314 PF: > { %s19_s11 = sadd.s32 1, %s1792_s11   ;;  %s2145_s27 = smov %s1772_s28 }
 0x315   : > { %p16_p0 = scmp.ge.s32.totalorder %s19_s11, 6   ;;  %s2146_s28 = smov %s1891_s18 }
 0x316   : > { %s2147_s29 = smov %s1784_s9  ;;  %s2148_s30 = smov %s1788_s10 }
 0x317   : > { %s2149_s9 = smov %s2152_s12  ;;  %s2150_s10 = smov %s2156_s13 }
 0x318   :  { %18 = sbr.rel (!%p16_p0) target bundleno = 6 (0x6), region = 147 }

// kernel: done_base_forward.6
= control target key start
LH: loop header
LB: loop body
LE: loop exit
PB: predicated region body
PF: predicated region fallthrough
CT: control target
= control target key end

     0   :  { %8 = vsyncpa [#allocation4], 0  ;;  %s1268_s0 = inlined_call_operand.vmem [shape: f32[256,128], index: 0, kind: input, shape index: {}]   ;;  %s1269_s1 = inlined_call_operand.vmem [shape: f32[128,256], index: 1, kind: input, shape index: {}]   ;;  %s1270_s2 = inlined_call_operand.vmem [shape: f32[1,256], index: 2, kind: input, shape index: {}]   ;;  %s1271_s3 = inlined_call_operand.hbm [shape: f32[256,256], index: 3, kind: output, shape index: {}]  }
   0x1   :  { %10 = vsyncpa [#allocation4 + $0x1], 0  ;;  %s1013_s12 = smov 0   ;;  %s1015_s13 = smov 0  }
   0x2   :  { %s1017_s14 = smov 0   ;;  %s1019_s15 = smov 0  }
   0x3   :  { %s1021_s16 = smov 0   ;;  %s1023_s17 = smov 0  }
   0x4   :  { %s1025_s18 = smov 0   ;;  %s1027_s19 = smov 0  }
   0x5   :  { %s1029_s20 = smov 0   ;;  %s1031_s21 = smov 0  }
   0x6 LB: > { %s632_s22 = sadd.s32 4294967295, %s987_s21   ;;  %s633_s23 = sadd.s32 4294967294, %s987_s21   ;;  %s987_s21 = sphi %s1031_s21, %s16_s21   ;;  %s983_s20 = sphi %s1029_s20, %s1283_s20   ;;  %s979_s19 = sphi %s1027_s19, %s1282_s19   ;;  %s975_s18 = sphi %s1025_s18, %s1281_s18   ;;  %s971_s17 = sphi %s1023_s17, %s1280_s17   ;;  %s967_s16 = sphi %s1021_s16, %s1279_s16   ;;  %s963_s15 = sphi %s1019_s15, %s1278_s15   ;;  %s959_s14 = sphi %s1017_s14, %s1277_s14   ;;  %s955_s13 = sphi %s1015_s13, %s1276_s13   ;;  %s951_s12 = sphi %s1013_s12, %s1275_s12  }
   0x7   : > { %s25_s24 = sadd.s32 1, %s979_s19  ;;  %s28_s25 = sadd.s32 1, %s983_s20 }
   0x8   : > { %p26_p0 = scmp.ge.s32.totalorder %s25_s24, 2  ;;  %s61_s26 = sadd.s32 1, %s967_s16 }
   0x9   : > { %p68_p1 = scmp.ne.s32.totalorder %s967_s16, %s963_s15  ;;  %p69_p2 = scmp.eq.s32.totalorder %s987_s21, 0 }
   0xa   : > { %s1285_s24 = smov (%p26_p0, %s25_s24), 0  ;;  %s1287_s25 = smov (!%p26_p0, %s28_s25), %s983_s20 }
   0xb   : > { %s58_s27 = ssub.s32 %s979_s19, %s1285_s24  ;;  %p1076_p3 = por %p69_p2, %p68_p1 }
   0xc   : > { %p30_p4 = scmp.ge.s32.totalorder %s1287_s25, 2  ;;  %p59_p5 = scmp.eq.s32.totalorder %s58_s27, 0 }
   0xd   : > { %s115_s29 = sadd.s32 1, %s959_s14  ;;  %p125_p6 = scmp.ne.s32.totalorder %s959_s14, %s955_s13 }
   0xe   : > { %s1289_s25 = smov (%p30_p4, %s1287_s25), 0  ;;  %p126_p7 = scmp.eq.s32.totalorder %s632_s22, 3 }
   0xf   : > { %s1086_s30 = scalar_select %p59_p5, %s967_s16, %s61_s26  }
  0x10   : > { %s110_s4 = ssub.s32 %s983_s20, %s1289_s25  ;;  %p131_p8 = scmp.ne.s32.totalorder %s955_s13, %s951_s12 }
  0x11   : > { %s112_s5 = sor.u32 %s110_s4, %s58_s27  ;;  %p1092_p10 = por %p126_p7, %p125_p6 }
  0x12   : > { %p113_p9 = scmp.eq.s32.totalorder %s112_s5, 0  ;;  %p132_p11 = scmp.eq.s32.totalorder %s633_s23, 3 }
  0x13   : > { %p635_p13 = scmp.ge.s32.totalorder %s987_s21, 4 }
  0x14   : > { %s1097_s7 = scalar_select %p113_p9, %s959_s14, %s115_s29  }
  0x15   : > { %p1099_p12 = por %p132_p11, %p131_p8  ;;  %148 = sbr.rel (%p635_p13) target bundleno = 40 (0x28), region = 16 }
  0x1c   : > { %160 = sbr.rel (!%p1076_p3) target bundleno = 40 (0x28), region = 24  ;;  %s162_s9 = sand.u32 (%p1076_p3), 1, %s967_s16  }
  0x1d   : > { %s637_s10 = sshll.u32 (%p1076_p3), %s979_s19, 3  ;;  %s636_s11 = sshll.u32 (%p1076_p3), %s162_s9, 7 }
  0x1e   : > { %s1111_s23 = scalar_lea.vmem (%p1076_p3), %s1269_s1, %s637_s10  ;;  %s164_s27 = scalar_lea.vmem (%p1076_p3), [#allocation2], %s636_s11 }
  0x1f   : > { %v224_v0 = vld [vmem:[%s1111_s23] sm:$0xff] (%p1076_p3)  ;;  %v226_v1 = vld [vmem:[%s1111_s23 + $0x10] sm:$0xff] (%p1076_p3) }
  0x20   : > { %v228_v2 = vld [vmem:[%s1111_s23 + $0x20] sm:$0xff] (%p1076_p3)  ;;  %225 = vst [vmem:[%s164_s27] sm:$0xff] (%p1076_p3), %v224_v0  ;;  %227 = vst [vmem:[%s164_s27 + $0x8] sm:$0xff] (%p1076_p3), %v226_v1  ;;  %v230_v3 = vld [vmem:[%s1111_s23 + $0x30] sm:$0xff] (%p1076_p3) }
  0x21   : > { %229 = vst [vmem:[%s164_s27 + $0x10] sm:$0xff] (%p1076_p3), %v228_v2  ;;  %v232_v4 = vld [vmem:[%s1111_s23 + $0x40] sm:$0xff] (%p1076_p3)  ;;  %v234_v5 = vld [vmem:[%s1111_s23 + $0x50] sm:$0xff] (%p1076_p3)  ;;  %231 = vst [vmem:[%s164_s27 + $0x18] sm:$0xff] (%p1076_p3), %v230_v3 }
  0x22   : > { %233 = vst [vmem:[%s164_s27 + $0x20] sm:$0xff] (%p1076_p3), %v232_v4  ;;  %235 = vst [vmem:[%s164_s27 + $0x28] sm:$0xff] (%p1076_p3), %v234_v5  ;;  %v236_v6 = vld [vmem:[%s1111_s23 + $0x60] sm:$0xff] (%p1076_p3)  ;;  %v238_v7 = vld [vmem:[%s1111_s23 + $0x70] sm:$0xff] (%p1076_p3) }
  0x23   : > { %v240_v8 = vld [vmem:[%s1111_s23 + $0x80] sm:$0xff]  ;;  %237 = vst [vmem:[%s164_s27 + $0x30] sm:$0xff] %v236_v6  ;;  %239 = vst [vmem:[%s164_s27 + $0x38] sm:$0xff] %v238_v7  ;;  %v242_v9 = vld [vmem:[%s1111_s23 + $0x90] sm:$0xff] }
  0x24   : > { %241 = vst [vmem:[%s164_s27 + $0x40] sm:$0xff] %v240_v8  ;;  %v244_v10 = vld [vmem:[%s1111_s23 + $0xa0] sm:$0xff]  ;;  %v246_v11 = vld [vmem:[%s1111_s23 + $0xb0] sm:$0xff]  ;;  %243 = vst [vmem:[%s164_s27 + $0x48] sm:$0xff] %v242_v9 }
  0x25   : > { %245 = vst [vmem:[%s164_s27 + $0x50] sm:$0xff] %v244_v10  ;;  %247 = vst [vmem:[%s164_s27 + $0x58] sm:$0xff] %v246_v11  ;;  %v248_v12 = vld [vmem:[%s1111_s23 + $0xc0] sm:$0xff]  ;;  %v250_v13 = vld [vmem:[%s1111_s23 + $0xd0] sm:$0xff] }
  0x26   : > { %v252_v14 = vld [vmem:[%s1111_s23 + $0xe0] sm:$0xff]  ;;  %249 = vst [vmem:[%s164_s27 + $0x60] sm:$0xff] %v248_v12  ;;  %251 = vst [vmem:[%s164_s27 + $0x68] sm:$0xff] %v250_v13  ;;  %v254_v15 = vld [vmem:[%s1111_s23 + $0xf0] sm:$0xff] }
  0x27   : > { %253 = vst [vmem:[%s164_s27 + $0x70] sm:$0xff] %v252_v14  ;;  %255 = vst [vmem:[%s164_s27 + $0x78] sm:$0xff] %v254_v15 }
  0x28 PF: > { %p638_p0 = scmp.ge.s32.totalorder %s987_s21, 1  ;;  %p266_p1 = scmp.lt.s32.totalorder %s987_s21, 5 }
  0x2a   : > { %p267_p2 = pnand %p638_p0, %p266_p1 }
  0x2b   : > { %s273_s28 = sand.u32 (!%p267_p2), 1, %s963_s15   ;;  %s641_s29 = sshll.u32 (!%p267_p2), %s975_s18, 4 }
  0x2c   : > { %270 = sbr.rel (%p267_p2) target bundleno = 324 (0x144), region = 66  ;;  %s639_s4 = sshll.u32 (!%p267_p2), %s273_s28, 7 }
  0x2d   : > { %p305_p3 = scmp.lt.s32.totalorder (!%p267_p2), %s641_s29, 31  ;;  %s1133_s5 = scalar_lea.vmem (!%p267_p2), [#allocation2], %s639_s4 }
  0x2e   : > { %v330_v16 = vld [vmem:[%s1133_s5] sm:$0xff] (!%p267_p2)  ;;  %v331_v17 = vld [vmem:[%s1133_s5 + $0x8] sm:$0xff] (!%p267_p2)  ;;  %v332_v18 = vld [vmem:[%s1133_s5 + $0x10] sm:$0xff] (!%p267_p2)  ;;  %p310_p4 = scmp.lt.s32.totalorder (!%p267_p2), %s971_s17, 1  ;;  %s301_s26 = sand.u32 (!%p267_p2), 1, %s955_s13  }
  0x2f   : > { %v739_v19 = vpack.c.bf16 (!%p267_p2), %v331_v17, %v330_v16  ;;  %v333_v20 = vld [vmem:[%s1133_s5 + $0x18] sm:$0xff] (!%p267_p2)  ;;  %v334_v22 = vld [vmem:[%s1133_s5 + $0x20] sm:$0xff] (!%p267_p2)  ;;  %v335_v23 = vld [vmem:[%s1133_s5 + $0x28] sm:$0xff] (!%p267_p2)  ;;  %s989_s27 = smov (!%p267_p2), [#allocation3]  }
  0x30   : > { %v743_v21 = vpack.c.bf16 (!%p267_p2), %v333_v20, %v332_v18  ;;  %v747_v24 = vpack.c.bf16 (!%p267_p2), %v335_v23, %v334_v22  ;;  %v336_v27 = vld [vmem:[%s1133_s5 + $0x30] sm:$0xff] (!%p267_p2)  ;;  %v337_v28 = vld [vmem:[%s1133_s5 + $0x38] sm:$0xff] (!%p267_p2)  ;;  %v338_v30 = vld [vmem:[%s1133_s5 + $0x40] sm:$0xff] (!%p267_p2) }
  0x31   : > { %740 = vmatprep.subr.bf16.mxu0 (!%p267_p2), %v739_v19  ;;  %771 = vmatprep.subr.bf16.mxu1 (!%p267_p2), %v739_v19  ;;  %v751_v29 = vpack.c.bf16 (!%p267_p2), %v337_v28, %v336_v27  ;;  %v339_v31 = vld [vmem:[%s1133_s5 + $0x48] sm:$0xff] (!%p267_p2)  ;;  %v340_v33 = vld [vmem:[%s1133_s5 + $0x50] sm:$0xff] (!%p267_p2)  ;;  %v341_v34 = vld [vmem:[%s1133_s5 + $0x58] sm:$0xff] (!%p267_p2) }
  0x32   : > { %742 = vmatpush3.bf16.msra.mxu0 (!%p267_p2), %v739_v19  ;;  %779 = vmatpush3.bf16.msra.mxu1 (!%p267_p2), %v739_v19  ;;  %v755_v32 = vpack.c.bf16 (!%p267_p2), %v339_v31, %v338_v30  ;;  %v759_v35 = vpack.c.bf16 (!%p267_p2), %v341_v34, %v340_v33  ;;  %v342_v36 = vld [vmem:[%s1133_s5 + $0x60] sm:$0xff] (!%p267_p2)  ;;  %v343_v37 = vld [vmem:[%s1133_s5 + $0x68] sm:$0xff] (!%p267_p2)  ;;  %v344_v39 = vld [vmem:[%s1133_s5 + $0x70] sm:$0xff] (!%p267_p2) }
  0x33   : > { %s1291_s29 = smov (!%p305_p3, %s641_s29), 31  ;;  %744 = vmatprep.subr.bf16.mxu0 %v743_v21  ;;  %772 = vmatprep.subr.bf16.mxu1 %v743_v21  ;;  %v763_v38 = vpack.c.bf16 %v343_v37, %v342_v36  ;;  %v345_v40 = vld [vmem:[%s1133_s5 + $0x78] sm:$0xff]  ;;  %s650_s5 = sshll.u32 %s975_s18, 5 }
  0x34   : > { %s642_s15 = sshll.u32 %s1291_s29, 3  ;;  %v767_v41 = vpack.c.bf16 %v345_v40, %v344_v39  ;;  %s640_s29 = sshll.u32 %s301_s26, 7 }
  0x35   : > { %s1144_s11 = scalar_lea.vmem %s1268_s0, %s642_s15  ;;  %s1180_s4 = scalar_lea.vmem [#allocation3], %s640_s29 }
  0x36   : > { %v314_v25 = vld [vmem:[%s1144_s11] sm:$0xff]  ;;  %746 = vmatpush3.bf16.msra.mxu0 %v743_v21  ;;  %780 = vmatpush3.bf16.msra.mxu1 %v743_v21  ;;  %v315_v42 = vld [vmem:[%s1144_s11 + $0x8] sm:$0xff]  ;;  %v316_v44 = vld [vmem:[%s1144_s11 + $0x10] sm:$0xff]  ;;  %s311_s22 = scalar_select %p310_p4, %s971_s17, 1 }
  0x37   : > { %v322_v26 = vld [vmem:[%s1144_s11 + $0x40] sm:$0xff]  ;;  %715 = vmatprep.mubr.f32.mxu0 %v314_v25  ;;  %748 = vmatprep.subr.bf16.mxu0 %v747_v24  ;;  %v323_v43 = vld [vmem:[%s1144_s11 + $0x48] sm:$0xff]  ;;  %v324_v45 = vld [vmem:[%s1144_s11 + $0x50] sm:$0xff]  ;;  %s527_s15 = sadd.s32 %s971_s17, %s650_s5  ;;  %s530_s9 = sshll.u32 %s1180_s4, 4  ;;  %s1202_s9 = int_to_ptr.vmem [resolvable:$true] %s530_s9 }
  0x38   : > { %727 = vmatprep.mubr.f32.mxu1 %v322_v26  ;;  %773 = vmatprep.subr.bf16.mxu1 %v747_v24  ;;  %v317_v46 = vld [vmem:[%s1144_s11 + $0x18] sm:$0xff]  ;;  %v318_v48 = vld [vmem:[%s1144_s11 + $0x20] sm:$0xff]  ;;  %v319_v50 = vld [vmem:[%s1144_s11 + $0x28] sm:$0xff]  ;;  %s312_s28 = scalar_lea.vmem %s1270_s2, %s311_s22  ;;  %s647_s18 = sshll.u32 %s527_s15, 7 }
  0x39   : > { %v325_v47 = vld [vmem:[%s1144_s11 + $0x58] sm:$0xff]  ;;  %v326_v49 = vld [vmem:[%s1144_s11 + $0x60] sm:$0xff]  ;;  %v327_v51 = vld [vmem:[%s1144_s11 + $0x68] sm:$0xff]  ;;  %s1210_s22 = scalar_lea.sflag [#allocation4], %s301_s26  ;;  %s877_s23 = scalar_lea.vmem %s1202_s9, 2048 }
  0x3a   : > { %750 = vmatpush3.bf16.msra.mxu0 %v747_v24  ;;  %781 = vmatpush3.bf16.msra.mxu1 %v747_v24  ;;  %v320_v52 = vld [vmem:[%s1144_s11 + $0x30] sm:$0xff]  ;;  %v321_v54 = vld [vmem:[%s1144_s11 + $0x38] sm:$0xff]  ;;  %v643_v56 = vld [vmem:[%s312_s28] ss:$0 sm:$0xff]  ;;  %p878_p5 = scmp.ne.s32.totalorder %s1202_s9, %s877_s23  ;;  %s881_s28 = sshll.u32 %s989_s27, 4  ;;  %s882_s28 = int_to_ptr.vmem [resolvable:$false] %s881_s28 }
  0x3b   : > { %752 = vmatprep.subr.bf16.mxu0 %v751_v29  ;;  %774 = vmatprep.subr.bf16.mxu1 %v751_v29  ;;  %v328_v53 = vld [vmem:[%s1144_s11 + $0x70] sm:$0xff]  ;;  %v329_v55 = vld [vmem:[%s1144_s11 + $0x78] sm:$0xff]  ;;  %s1200_s11 = scalar_lea.hbm %s1271_s3, %s647_s18  ;;  %s883_s29 = scalar_lea.vmem %s882_s28, 4096 }
  0x3c   : > { %p879_p6 = pnand %p878_p5, %p1092_p10  ;;  %p884_p8 = scmp.lt.s32.totalorder %s1202_s9, %s882_s28 }
  0x3d   : > { %p885_p9 = scmp.lt.s32.totalorder %s883_s29, %s877_s23 }
  0x3e   : > { %754 = vmatpush3.bf16.msra.mxu0 %v751_v29  ;;  %782 = vmatpush3.bf16.msra.mxu1 %v751_v29  ;;  %p880_p7 = pneg %p879_p6 }
  0x3f   : > { %756 = vmatprep.subr.bf16.mxu0 %v755_v32  ;;  %775 = vmatprep.subr.bf16.mxu1 %v755_v32  ;;  %p886_p11 = por %p885_p9, %p884_p8 }
  0x41   : > { %p887_p13 = pnand %p886_p11, %p880_p7 }
  0x42   : > { %758 = vmatpush3.bf16.msra.mxu0 %v755_v32  ;;  %783 = vmatpush3.bf16.msra.mxu1 %v755_v32 }
  0x43   : > { %760 = vmatprep.subr.bf16.mxu0 %v759_v35  ;;  %776 = vmatprep.subr.bf16.mxu1 %v759_v35 }
  0x46   : > { %762 = vmatpush3.bf16.msra.mxu0 %v759_v35  ;;  %784 = vmatpush3.bf16.msra.mxu1 %v759_v35 }
  0x47   : > { %764 = vmatprep.subr.bf16.mxu0 %v763_v38  ;;  %777 = vmatprep.subr.bf16.mxu1 %v763_v38 }
  0x4a   : > { %766 = vmatpush3.bf16.msra.mxu0 %v763_v38  ;;  %785 = vmatpush3.bf16.msra.mxu1 %v763_v38 }
  0x4b   : > { %768 = vmatprep.subr.bf16.mxu0 %v767_v41  ;;  %778 = vmatprep.subr.bf16.mxu1 %v767_v41 }
  0x4e   : > { %770 = vmatpush3.bf16.msra.mxu0 %v767_v41  ;;  %786 = vmatpush3.bf16.msra.mxu1 %v767_v41 }
  0x51   : > { %716 = vmatmul.mubr.f32.vlgmr.msra.gmra.mrb[0].mxu0 %v315_v42  ;;  %728 = vmatmul.mubr.f32.vlgmr.msra.gmra.mrb[0].mxu1 %v323_v43 }
  0x52   : > { %718 = vmatprep.mubr.f32.mxu0 %v316_v44  ;;  %730 = vmatprep.mubr.f32.mxu1 %v324_v45 }
  0x55   : > { %719 = vmatmul.mubr.f32.gmra.mrb[2].mxu0 %v317_v46  ;;  %731 = vmatmul.mubr.f32.gmra.mrb[2].mxu1 %v325_v47 }
  0x56   : > { %721 = vmatprep.mubr.f32.mxu0 %v318_v48  ;;  %733 = vmatprep.mubr.f32.mxu1 %v326_v49 }
  0x59   : > { %722 = vmatmul.mubr.f32.gmra.mrb[4].mxu0 %v319_v50  ;;  %734 = vmatmul.mubr.f32.gmra.mrb[4].mxu1 %v327_v51 }
  0x5a   : > { %724 = vmatprep.mubr.f32.mxu0 %v320_v52  ;;  %736 = vmatprep.mubr.f32.mxu1 %v328_v53 }
  0x5d   : > { %725 = vmatmul.mubr.f32.gmra.mrb[6].mxu0 %v321_v54  ;;  %737 = vmatmul.mubr.f32.gmra.mrb[6].mxu1 %v329_v55 }
 0x124   : > { %v717_v57 = vpop.f32.mrb[0].mxu0  ;;  %v729_v58 = vpop.f32.mrb[0].mxu1 }
 0x125   : > { %v425_v59 = vadd.f32 %v717_v57, %v643_v56  ;;  %v465_v60 = vadd.f32 %v729_v58, %v643_v56  ;;  %v419_v61 = vpop.f32.mrb[1].mxu0  ;;  %v459_v62 = vpop.f32.mrb[1].mxu1 }
 0x126   : > { %v420_v63 = vadd.f32 %v643_v56, %v419_v61  ;;  %v460_v0 = vadd.f32 %v643_v56, %v459_v62 }
 0x127   : > { %499 = vst [vmem:[%s1180_s4 + $0x8] sm:$0xff] %v425_v59  ;;  %507 = vst [vmem:[%s1180_s4 + $0x48] sm:$0xff] %v465_v60 }
 0x128   : > { %498 = vst [vmem:[%s1180_s4] sm:$0xff] %v420_v63  ;;  %506 = vst [vmem:[%s1180_s4 + $0x40] sm:$0xff] %v460_v0  ;;  %v720_v1 = vpop.f32.mrb[2].mxu0  ;;  %v732_v2 = vpop.f32.mrb[2].mxu1 }
 0x129   : > { %v435_v3 = vadd.f32 %v720_v1, %v643_v56  ;;  %v475_v4 = vadd.f32 %v732_v2, %v643_v56  ;;  %v429_v5 = vpop.f32.mrb[3].mxu0  ;;  %v469_v6 = vpop.f32.mrb[3].mxu1 }
 0x12a   : > { %v430_v7 = vadd.f32 %v643_v56, %v429_v5  ;;  %v470_v8 = vadd.f32 %v643_v56, %v469_v6 }
 0x12b   : > { %501 = vst [vmem:[%s1180_s4 + $0x18] sm:$0xff] %v435_v3  ;;  %509 = vst [vmem:[%s1180_s4 + $0x58] sm:$0xff] %v475_v4 }
 0x12c   : > { %500 = vst [vmem:[%s1180_s4 + $0x10] sm:$0xff] %v430_v7  ;;  %508 = vst [vmem:[%s1180_s4 + $0x50] sm:$0xff] %v470_v8  ;;  %v723_v9 = vpop.f32.mrb[4].mxu0  ;;  %v735_v10 = vpop.f32.mrb[4].mxu1 }
 0x12d   : > { %v445_v11 = vadd.f32 %v723_v9, %v643_v56  ;;  %v485_v12 = vadd.f32 %v735_v10, %v643_v56  ;;  %v439_v13 = vpop.f32.mrb[5].mxu0  ;;  %v479_v14 = vpop.f32.mrb[5].mxu1 }
 0x12e   : > { %v440_v15 = vadd.f32 %v643_v56, %v439_v13  ;;  %v480_v16 = vadd.f32 %v643_v56, %v479_v14 }
 0x12f   : > { %503 = vst [vmem:[%s1180_s4 + $0x28] sm:$0xff] %v445_v11  ;;  %511 = vst [vmem:[%s1180_s4 + $0x68] sm:$0xff] %v485_v12 }
 0x130   : > { %502 = vst [vmem:[%s1180_s4 + $0x20] sm:$0xff] %v440_v15  ;;  %510 = vst [vmem:[%s1180_s4 + $0x60] sm:$0xff] %v480_v16  ;;  %v726_v17 = vpop.f32.mrb[6].mxu0  ;;  %v738_v18 = vpop.f32.mrb[6].mxu1 }
 0x131   : > { %v455_v19 = vadd.f32 %v726_v17, %v643_v56  ;;  %v495_v20 = vadd.f32 %v738_v18, %v643_v56  ;;  %v449_v21 = vpop.f32.mrb[7].mxu0  ;;  %v489_v22 = vpop.f32.mrb[7].mxu1 }
 0x132   : > { %v450_v23 = vadd.f32 %v643_v56, %v449_v21  ;;  %v490_v24 = vadd.f32 %v643_v56, %v489_v22 }
 0x133   : > { %505 = vst [vmem:[%s1180_s4 + $0x38] sm:$0xff] %v455_v19  ;;  %513 = vst [vmem:[%s1180_s4 + $0x78] sm:$0xff] %v495_v20 }
 0x134   : > { %504 = vst [vmem:[%s1180_s4 + $0x30] sm:$0xff] %v450_v23  ;;  %512 = vst [vmem:[%s1180_s4 + $0x70] sm:$0xff] %v490_v24 }
 0x135   : > { %890 = shalt.err (!%p887_p13)
}
 0x136   : > { %s891_s26 = scalar_lea.hbm %s1200_s11, 2048  ;;  %s895_s15 = scalar_lea.hbm %s1271_s3, 8192 }
 0x137   : > { %p892_p0 = scmp.ne.s32.totalorder %s1200_s11, %s891_s26  ;;  %p896_p3 = scmp.lt.u32.totalorder %s1200_s11, %s1271_s3 }
 0x138   : > { %p897_p4 = scmp.lt.u32.totalorder %s895_s15, %s891_s26  ;;  %p899_p6 = scmp.lt.u32.totalorder %s891_s26, %s1200_s11 }
 0x139   : > { %p893_p1 = pnand %p892_p0, %p1092_p10 }
 0x13a   : > { %p898_p5 = por %p897_p4, %p896_p3 }
 0x13b   : > { %p894_p2 = pneg %p893_p1 }
 0x13c   : > { %p900_p7 = por %p899_p6, %p898_p5 }
 0x13e   : > { %p901_p8 = pnand %p900_p7, %p894_p2 }
 0x140   : > { %904 = shalt.err (!%p901_p8)
}
 0x141   : > { %s990_s10 = smov 128   ;;  %s991_s23 = smov 256  }
 0x142   : > { %s992_s27 = smov 8  }
 0x143   : > { %787 = dma.vmem_to_hbm [thread:$0]  (%p1092_p10), %s1202_s9, 2048, %s1200_s11, %s1210_s22, %s990_s10, %s991_s23, %s992_s27  }
 0x144 PF: > { %p793_p9 = scmp.ge.s32.totalorder %s987_s21, 2  ;;  %s545_s28 = sand.u32 1, %s951_s12  }
 0x145   : > { %s546_s29 = scalar_lea.sflag [#allocation4], %s545_s28 }
 0x146   : > { %p790_p11 = pnand %p793_p9, %p1099_p12 }
 0x148   : > { %946 = dma.done.wait (!%p790_p11), %s546_s29, 2048  }
 0x149   : > { %948 = vsyncadd (!%p790_p11), %s546_s29, 4294965248  ;;  %s16_s21 = sadd.s32 1, %s987_s21   ;;  %s1275_s12 = smov %s955_s13 }
 0x14a   : > { %p13_p13 = scmp.ge.s32.totalorder %s16_s21, 6   ;;  %s1276_s13 = smov %s959_s14 }
 0x14b   : > { %s1277_s14 = smov %s1097_s7  ;;  %s1278_s15 = smov %s967_s16 }
 0x14c   : > { %s1279_s16 = smov %s1086_s30  ;;  %s1280_s17 = smov %s979_s19 }
 0x14d   : > { %s1281_s18 = smov %s983_s20  ;;  %s1282_s19 = smov %s1285_s24 }
 0x14e   : > { %s1283_s20 = smov %s1289_s25  ;;  %15 = sbr.rel (!%p13_p13) target bundleno = 6 (0x6), region = 116 }
 0x155   :  { %551 = vsyncpa [#allocation4], 1 }
 0x156   :  { %553 = vsyncpa [#allocation4 + $0x1], 1 }

// kernel: done_base_forward.7
= control target key start
LH: loop header
LB: loop body
LE: loop exit
PB: predicated region body
PF: predicated region fallthrough
CT: control target
= control target key end

     0   :  { %s2293_s15 = smov 0   ;;  %s2295_s16 = smov 0   ;;  %s3067_s0 = inlined_call_operand.vmem [shape: bf16[256,256], index: 0, kind: input, shape index: {}]   ;;  %s3068_s1 = inlined_call_operand.vmem [shape: bf16[256,384], index: 1, kind: input, shape index: {}]   ;;  %s3069_s2 = inlined_call_operand.vmem [shape: f32[256,384], index: 2, kind: input, shape index: {}]   ;;  %s3070_s3 = inlined_call_operand.vmem [shape: f32[256,1], index: 3, kind: output, shape index: {0}]   ;;  %s3071_s4 = inlined_call_operand.vmem [shape: f32[256,1], index: 4, kind: output, shape index: {1}]  }
   0x1   :  { %s2297_s17 = smov 0   ;;  %s2299_s18 = smov 0  }
   0x2   :  { %s2301_s19 = smov 0   ;;  %s2303_s20 = smov 0  }
   0x3   :  { %s2305_s21 = smov 0  }
   0x4 LB: > { %s24_s22 = sadd.s32 1, %s2253_s19  ;;  %s27_s23 = sadd.s32 1, %s2257_s20  ;;  %s2261_s21 = sphi %s2305_s21, %s15_s21   ;;  %s2257_s20 = sphi %s2303_s20, %s3104_s20   ;;  %s2253_s19 = sphi %s2301_s19, %s3103_s19   ;;  %s2249_s18 = sphi %s2299_s18, %s3102_s18   ;;  %s2245_s17 = sphi %s2297_s17, %s3101_s17   ;;  %s2241_s16 = sphi %s2295_s16, %s3100_s16   ;;  %s2237_s15 = sphi %s2293_s15, %s3099_s15  }
   0x5   : > { %p25_p0 = scmp.ge.s32.totalorder %s24_s22, 2  ;;  %p43_p1 = scmp.ne.s32.totalorder %s2241_s16, %s2237_s15 }
   0x6   : > { %p44_p2 = scmp.eq.s32.totalorder %s2261_s21, 0  ;;  %s36_s27 = sadd.s32 1, %s2241_s16 }
   0x7   : > { %s3106_s22 = smov (%p25_p0, %s24_s22), 0  ;;  %s3108_s23 = smov (!%p25_p0, %s27_s23), %s2257_s20 }
   0x8   : > { %p45_p3 = por %p44_p2, %p43_p1  ;;  %p29_p4 = scmp.ge.s32.totalorder %s3108_s23, 2 }
   0x9   : > { %s32_s24 = ssub.s32 %s2253_s19, %s3106_s22  ;;  %p1971_p6 = scmp.ge.s32.totalorder %s2261_s21, 4 }
   0xa   : > { %s3110_s23 = smov (%p29_p4, %s3108_s23), 0 }
   0xb   : > { %s31_s25 = ssub.s32 %s2257_s20, %s3110_s23  ;;  %173 = sbr.rel (%p1971_p6) target bundleno = 34 (0x22), region = 16 }
   0xc   : > { %s33_s26 = sor.u32 %s32_s24, %s31_s25 }
   0xd   : > { %p34_p5 = scmp.eq.s32.totalorder %s33_s26, 0 }
   0xf   : > { %s2344_s28 = scalar_select %p34_p5, %s2241_s16, %s36_s27  }
  0x12   : > { %176 = sbr.rel (!%p45_p3) target bundleno = 34 (0x22), region = 20  ;;  %s178_s29 = sand.u32 (%p45_p3), 1, %s2241_s16  }
  0x13   : > { %s2022_s30 = sshll.u32 (%p45_p3), %s2257_s20, 5  ;;  %s1972_s5 = sshll.u32 (%p45_p3), %s178_s29, 6 }
  0x14   : > { %s183_s6 = sadd.s32 (%p45_p3), %s2253_s19, %s2022_s30  ;;  %s180_s11 = scalar_lea.vmem (%p45_p3), [#allocation3], %s1972_s5 }
  0x15   : > { %s1975_s7 = sshll.u32 (%p45_p3), %s183_s6, 2 }
  0x16   : > { %s2353_s10 = scalar_lea.vmem (%p45_p3), %s3067_s0, %s1975_s7 }
  0x17   : > { %v201_v0 = vld [vmem:[%s2353_s10] sm:$0xf] (%p45_p3)  ;;  %v203_v1 = vld [vmem:[%s2353_s10 + $0x8] sm:$0xf] (%p45_p3)  ;;  %v205_v2 = vld [vmem:[%s2353_s10 + $0x10] sm:$0xf] (%p45_p3) }
  0x18   : > { %202 = vst [vmem:[%s180_s11] sm:$0xf] (%p45_p3), %v201_v0  ;;  %204 = vst [vmem:[%s180_s11 + $0x4] sm:$0xf] (%p45_p3), %v203_v1  ;;  %v207_v3 = vld [vmem:[%s2353_s10 + $0x18] sm:$0xf] (%p45_p3) }
  0x19   : > { %206 = vst [vmem:[%s180_s11 + $0x8] sm:$0xf] %v205_v2  ;;  %v209_v4 = vld [vmem:[%s2353_s10 + $0x20] sm:$0xf]  ;;  %v211_v5 = vld [vmem:[%s2353_s10 + $0x28] sm:$0xf] }
  0x1a   : > { %208 = vst [vmem:[%s180_s11 + $0xc] sm:$0xf] %v207_v3  ;;  %210 = vst [vmem:[%s180_s11 + $0x10] sm:$0xf] %v209_v4  ;;  %v213_v6 = vld [vmem:[%s2353_s10 + $0x30] sm:$0xf] }
  0x1b   : > { %212 = vst [vmem:[%s180_s11 + $0x14] sm:$0xf] %v211_v5  ;;  %v215_v7 = vld [vmem:[%s2353_s10 + $0x38] sm:$0xf]  ;;  %v217_v8 = vld [vmem:[%s2353_s10 + $0x40] sm:$0xf] }
  0x1c   : > { %214 = vst [vmem:[%s180_s11 + $0x18] sm:$0xf] %v213_v6  ;;  %216 = vst [vmem:[%s180_s11 + $0x1c] sm:$0xf] %v215_v7  ;;  %v219_v9 = vld [vmem:[%s2353_s10 + $0x48] sm:$0xf] }
  0x1d   : > { %218 = vst [vmem:[%s180_s11 + $0x20] sm:$0xf] %v217_v8  ;;  %v221_v10 = vld [vmem:[%s2353_s10 + $0x50] sm:$0xf]  ;;  %v223_v11 = vld [vmem:[%s2353_s10 + $0x58] sm:$0xf] }
  0x1e   : > { %220 = vst [vmem:[%s180_s11 + $0x24] sm:$0xf] %v219_v9  ;;  %222 = vst [vmem:[%s180_s11 + $0x28] sm:$0xf] %v221_v10  ;;  %v225_v12 = vld [vmem:[%s2353_s10 + $0x60] sm:$0xf] }
  0x1f   : > { %224 = vst [vmem:[%s180_s11 + $0x2c] sm:$0xf] %v223_v11  ;;  %v227_v13 = vld [vmem:[%s2353_s10 + $0x68] sm:$0xf]  ;;  %v229_v14 = vld [vmem:[%s2353_s10 + $0x70] sm:$0xf] }
  0x20   : > { %226 = vst [vmem:[%s180_s11 + $0x30] sm:$0xf] %v225_v12  ;;  %228 = vst [vmem:[%s180_s11 + $0x34] sm:$0xf] %v227_v13  ;;  %v231_v15 = vld [vmem:[%s2353_s10 + $0x78] sm:$0xf] }
  0x21   : > { %230 = vst [vmem:[%s180_s11 + $0x38] sm:$0xf] %v229_v14  ;;  %232 = vst [vmem:[%s180_s11 + $0x3c] sm:$0xf] %v231_v15 }
  0x22 PF: > { %p1976_p7 = scmp.ge.s32.totalorder %s2261_s21, 1  ;;  %p306_p8 = scmp.lt.s32.totalorder %s2261_s21, 5 }
  0x24   : > { %p307_p9 = pnand %p1976_p7, %p306_p8 }
  0x25   : > { %s313_s12 = sand.u32 (!%p307_p9), 1, %s2237_s15   ;;  %s1978_s13 = sshll.u32 (!%p307_p9), %s2245_s17, 4 }
  0x26   : > { %310 = sbr.rel (%p307_p9) target bundleno = 910 (0x38e), region = 69  ;;  %s1977_s14 = sshll.u32 (!%p307_p9), %s313_s12, 6 }
  0x27   : > { %p357_p10 = scmp.lt.s32.totalorder (!%p307_p9), %s1978_s13, 31  ;;  %s1980_s24 = sshll.u32 (!%p307_p9), %s2249_s18, 4 }
  0x28   : > { %p364_p11 = scmp.lt.s32.totalorder (!%p307_p9), %s1980_s24, 31  ;;  %p1986_p12 = scmp.ne.s32.totalorder (!%p307_p9), %s2245_s17, 0 }
  0x2d   : > { %s3112_s13 = smov (!%p357_p10, %s1978_s13), 31  ;;  %s3114_s24 = smov (!%p364_p11, %s1980_s24), 31 }
  0x2e   : > { %s2071_s25 = smul.u32 12, %s3112_s13  ;;  %s1983_s5 = sshll.u32 %s3114_s24, 3  ;;  %v2263_v16 = vmov (!%p1986_p12), 0.0  }
  0x2f   : > { %s2072_s30 = smul.u32 24, %s3114_s24  ;;  %s2384_s8 = scalar_lea.vmem %s3070_s3, %s1983_s5  ;;  %387 = vst [vmem:[#allocation2] sm:$0xff] (!%p1986_p12), %v2263_v16  ;;  %388 = vst [vmem:[#allocation2 + $0x8] sm:$0xff] (!%p1986_p12), %v2263_v16 }
  0x30   : > { %s2379_s29 = scalar_lea.vmem %s3068_s1, %s2071_s25  ;;  %s2389_s18 = scalar_lea.vmem %s3071_s4, %s1983_s5  ;;  %389 = vst [vmem:[#allocation2 + $0x10] sm:$0xff] (!%p1986_p12), %v2263_v16  ;;  %390 = vst [vmem:[#allocation2 + $0x18] sm:$0xff] (!%p1986_p12), %v2263_v16 }
  0x31   : > { %s2394_s12 = scalar_lea.vmem %s3069_s2, %s2072_s30  ;;  %s2396_s13 = scalar_lea.vmem [#allocation3], %s1977_s14  ;;  %391 = vst [vmem:[#allocation2 + $0x20] sm:$0xff] (!%p1986_p12), %v2263_v16  ;;  %392 = vst [vmem:[#allocation2 + $0x28] sm:$0xff] (!%p1986_p12), %v2263_v16 }
  0x32   : > { %386 = sbr.rel (%p1986_p12) target bundleno = 71 (0x47), region = 77  ;;  %393 = vst [vmem:[#allocation2 + $0x30] sm:$0xff] (!%p1986_p12), %v2263_v16  ;;  %394 = vst [vmem:[#allocation2 + $0x38] sm:$0xff] (!%p1986_p12), %v2263_v16 }
  0x33   : > { %395 = vst [vmem:[#allocation2 + $0x40] sm:$0xff] (!%p1986_p12), %v2263_v16  ;;  %396 = vst [vmem:[#allocation2 + $0x48] sm:$0xff] (!%p1986_p12), %v2263_v16 }
  0x34   : > { %397 = vst [vmem:[#allocation2 + $0x50] sm:$0xff] (!%p1986_p12), %v2263_v16  ;;  %398 = vst [vmem:[#allocation2 + $0x58] sm:$0xff] (!%p1986_p12), %v2263_v16 }
  0x35   : > { %399 = vst [vmem:[#allocation2 + $0x60] sm:$0xff] (!%p1986_p12), %v2263_v16  ;;  %400 = vst [vmem:[#allocation2 + $0x68] sm:$0xff] (!%p1986_p12), %v2263_v16 }
  0x36   : > { %401 = vst [vmem:[#allocation2 + $0x70] sm:$0xff] (!%p1986_p12), %v2263_v16  ;;  %402 = vst [vmem:[#allocation2 + $0x78] sm:$0xff] (!%p1986_p12), %v2263_v16 }
  0x37   : > { %403 = vst [vmem:[#allocation2 + $0x80] sm:$0xff] (!%p1986_p12), %v2263_v16  ;;  %404 = vst [vmem:[#allocation2 + $0x88] sm:$0xff] (!%p1986_p12), %v2263_v16 }
  0x38   : > { %405 = vst [vmem:[#allocation2 + $0x90] sm:$0xff] (!%p1986_p12), %v2263_v16  ;;  %406 = vst [vmem:[#allocation2 + $0x98] sm:$0xff] (!%p1986_p12), %v2263_v16 }
  0x39   : > { %407 = vst [vmem:[#allocation2 + $0xa0] sm:$0xff] %v2263_v16  ;;  %408 = vst [vmem:[#allocation2 + $0xa8] sm:$0xff] %v2263_v16 }
  0x3a   : > { %409 = vst [vmem:[#allocation2 + $0xb0] sm:$0xff] %v2263_v16  ;;  %410 = vst [vmem:[#allocation2 + $0xb8] sm:$0xff] %v2263_v16 }
  0x3b   : > { %411 = vst [vmem:[#allocation2 + $0xc0] sm:$0xff] %v2263_v16  ;;  %412 = vst [vmem:[#allocation2 + $0xc8] sm:$0xff] %v2263_v16 }
  0x3c   : > { %413 = vst [vmem:[#allocation2 + $0xd0] sm:$0xff] %v2263_v16  ;;  %414 = vst [vmem:[#allocation2 + $0xd8] sm:$0xff] %v2263_v16 }
  0x3d   : > { %415 = vst [vmem:[#allocation2 + $0xe0] sm:$0xff] %v2263_v16  ;;  %416 = vst [vmem:[#allocation2 + $0xe8] sm:$0xff] %v2263_v16 }
  0x3e   : > { %417 = vst [vmem:[#allocation2 + $0xf0] sm:$0xff] %v2263_v16  ;;  %418 = vst [vmem:[#allocation2 + $0xf8] sm:$0xff] %v2263_v16 }
  0x3f   : > { %419 = vst [vmem:[#allocation2 + $0x100] sm:$0xff] %v2263_v16  ;;  %420 = vst [vmem:[#allocation2 + $0x108] sm:$0xff] %v2263_v16 }
  0x40   : > { %421 = vst [vmem:[#allocation2 + $0x110] sm:$0xff] %v2263_v16  ;;  %422 = vst [vmem:[#allocation2 + $0x118] sm:$0xff] %v2263_v16 }
  0x41   : > { %423 = vst [vmem:[#allocation2 + $0x120] sm:$0xff] %v2263_v16  ;;  %424 = vst [vmem:[#allocation2 + $0x128] sm:$0xff] %v2263_v16 }
  0x42   : > { %425 = vst [vmem:[#allocation2 + $0x130] sm:$0xff] %v2263_v16  ;;  %426 = vst [vmem:[#allocation2 + $0x138] sm:$0xff] %v2263_v16 }
  0x43   : > { %427 = vst [vmem:[#allocation2 + $0x140] sm:$0xff] %v2263_v16  ;;  %428 = vst [vmem:[#allocation2 + $0x148] sm:$0xff] %v2263_v16 }
  0x44   : > { %429 = vst [vmem:[#allocation2 + $0x150] sm:$0xff] %v2263_v16  ;;  %430 = vst [vmem:[#allocation2 + $0x158] sm:$0xff] %v2263_v16 }
  0x45   : > { %431 = vst [vmem:[#allocation2 + $0x160] sm:$0xff] %v2263_v16  ;;  %432 = vst [vmem:[#allocation2 + $0x168] sm:$0xff] %v2263_v16 }
  0x46   : > { %433 = vst [vmem:[#allocation2 + $0x170] sm:$0xff] %v2263_v16  ;;  %434 = vst [vmem:[#allocation2 + $0x178] sm:$0xff] %v2263_v16 }
  0x47 PF: > { %v2134_v17 = vld [vmem:[%s2379_s29 + $0x4] ss:$12 sps:$4 sm:$0xff]   ;;  %v2136_v18 = vld [vmem:[%s2379_s29] ss:$12 sps:$4 sm:$0xff]   ;;  %v2264_v19 = vmov 0   ;;  %v2168_v45 = vld [vmem:[%s2396_s13 + $0x18] sm:$0xff]  }
  0x48   : > { %739 = vmatprep.mubr.bf16.mxu0 %v2264_v19  ;;  %707 = vmatprep.subr.bf16.mxu0 %v2134_v17  ;;  %v2137_v20 = vld [vmem:[%s2379_s29 + $0x1c] ss:$12 sps:$4 sm:$0xff]   ;;  %v2139_v21 = vld [vmem:[%s2379_s29 + $0x18] ss:$12 sps:$4 sm:$0xff]   ;;  %v2140_v22 = vld [vmem:[%s2379_s29 + $0x34] ss:$12 sps:$4 sm:$0xff]  }
  0x49   : > { %708 = vmatpush1.bf16.msra.mxu0 %v2136_v18  ;;  %v2142_v23 = vld [vmem:[%s2379_s29 + $0x30] ss:$12 sps:$4 sm:$0xff]   ;;  %v2143_v24 = vld [vmem:[%s2379_s29 + $0x4c] ss:$12 sps:$4 sm:$0xff]   ;;  %v2145_v25 = vld [vmem:[%s2379_s29 + $0x48] ss:$12 sps:$4 sm:$0xff]  }
  0x4a   : > { %709 = vmatprep.subr.bf16.mxu0 %v2137_v20  ;;  %v2146_v26 = vld [vmem:[%s2379_s29 + $0x64] ss:$12 sps:$4 sm:$0xff]   ;;  %v2158_v27 = vld [vmem:[%s2379_s29 + $0x8] ss:$12 sps:$4 sm:$0xff]   ;;  %v2160_v29 = vld [vmem:[%s2379_s29 + $0x20] ss:$12 sps:$4 sm:$0xff]  }
  0x4b   : > { %v2159_v28 = vld [vmem:[%s2396_s13] sm:$0xff]   ;;  %2039 = vmatprep.subr.bf16.mxu1 %v2158_v27  ;;  %v2149_v32 = vld [vmem:[%s2379_s29 + $0x7c] ss:$12 sps:$4 sm:$0xff]   ;;  %v2155_v38 = vld [vmem:[%s2379_s29 + $0xac] ss:$12 sps:$4 sm:$0xff]   ;;  %p2019_p13 = scmp.ne.s32.totalorder %s2245_s17, 1 }
  0x4c   : > { %v2148_v30 = vld [vmem:[%s2379_s29 + $0x60] ss:$12 sps:$4 sm:$0xff]   ;;  %2040 = vmatpush3.bf16.msra.mxu1 %v2158_v27  ;;  %2055 = vmatprep.mubr.bf16.mxu1 %v2159_v28  ;;  %v2161_v31 = vld [vmem:[%s2379_s29 + $0x38] ss:$12 sps:$4 sm:$0xff]   ;;  %v2163_v34 = vld [vmem:[%s2379_s29 + $0x50] ss:$12 sps:$4 sm:$0xff]  }
  0x4d   : > { %710 = vmatpush1.bf16.msra.mxu0 %v2139_v21  ;;  %2041 = vmatprep.subr.bf16.mxu1 %v2160_v29  ;;  %v2151_v33 = vld [vmem:[%s2379_s29 + $0x78] ss:$12 sps:$4 sm:$0xff]   ;;  %v2152_v35 = vld [vmem:[%s2379_s29 + $0x94] ss:$12 sps:$4 sm:$0xff]   ;;  %v2154_v36 = vld [vmem:[%s2379_s29 + $0x90] ss:$12 sps:$4 sm:$0xff]  }
  0x4e   : > { %711 = vmatprep.subr.bf16.mxu0 %v2140_v22  ;;  %v2164_v37 = vld [vmem:[%s2379_s29 + $0x68] ss:$12 sps:$4 sm:$0xff]   ;;  %v2166_v40 = vld [vmem:[%s2379_s29 + $0x80] ss:$12 sps:$4 sm:$0xff]   ;;  %v2167_v41 = vld [vmem:[%s2379_s29 + $0x98] ss:$12 sps:$4 sm:$0xff]  }
  0x4f   : > { %v2157_v39 = vld [vmem:[%s2379_s29 + $0xa8] ss:$12 sps:$4 sm:$0xff]   ;;  %v2169_v42 = vld [vmem:[%s2379_s29 + $0xb0] ss:$12 sps:$4 sm:$0xff]   ;;  %v2170_v46 = vld [vmem:[%s2396_s13 + $0x20] sm:$0xff]  }
  0x50   : > { %2042 = vmatpush3.bf16.msra.mxu1 %v2160_v29  ;;  %v2162_v43 = vld [vmem:[%s2396_s13 + $0x8] sm:$0xff]   ;;  %v2165_v44 = vld [vmem:[%s2396_s13 + $0x10] sm:$0xff]   ;;  %v2173_v49 = vld [vmem:[%s2396_s13 + $0x38] sm:$0xff]  }
  0x51   : > { %712 = vmatpush1.bf16.msra.mxu0 %v2142_v23  ;;  %2043 = vmatprep.subr.bf16.mxu1 %v2161_v31  ;;  %v2171_v47 = vld [vmem:[%s2396_s13 + $0x28] sm:$0xff]   ;;  %v2172_v48 = vld [vmem:[%s2396_s13 + $0x30] sm:$0xff]   ;;  %v435_v50 = vld [vmem:[#allocation2] sm:$0xff] }
  0x52   : > { %713 = vmatprep.subr.bf16.mxu0 %v2143_v24  ;;  %v436_v51 = vld [vmem:[#allocation2 + $0x8] sm:$0xff]  ;;  %v438_v53 = vld [vmem:[#allocation2 + $0x18] sm:$0xff]  ;;  %v439_v56 = vld [vmem:[#allocation2 + $0x20] sm:$0xff] }
  0x53   : > { %v441_v62 = vld [vmem:[#allocation2 + $0x30] sm:$0xff]  ;;  %v442_v63 = vld [vmem:[#allocation2 + $0x38] sm:$0xff]  ;;  %v444_v1 = vld [vmem:[#allocation2 + $0x48] sm:$0xff] }
  0x54   : > { %2044 = vmatpush3.bf16.msra.mxu1 %v2161_v31  ;;  %v445_v4 = vld [vmem:[#allocation2 + $0x50] sm:$0xff]  ;;  %v443_v5 = vld [vmem:[#allocation2 + $0x40] sm:$0xff]  ;;  %v446_v12 = vld [vmem:[#allocation2 + $0x58] sm:$0xff] }
  0x55   : > { %714 = vmatpush1.bf16.msra.mxu0 %v2145_v25  ;;  %2045 = vmatprep.subr.bf16.mxu1 %v2163_v34  ;;  %v437_v8 = vld [vmem:[#allocation2 + $0x10] sm:$0xff]  ;;  %v440_v16 = vld [vmem:[#allocation2 + $0x28] sm:$0xff]  ;;  %v450_v25 = vld [vmem:[#allocation2 + $0x78] sm:$0xff] }
  0x56   : > { %715 = vmatprep.subr.bf16.mxu0 %v2146_v26  ;;  %v448_v22 = vld [vmem:[#allocation2 + $0x68] sm:$0xff]  ;;  %v455_v29 = vld [vmem:[#allocation2 + $0xa0] sm:$0xff] }
  0x58   : > { %2046 = vmatpush3.bf16.msra.mxu1 %v2163_v34 }
  0x59   : > { %716 = vmatpush1.bf16.msra.mxu0 %v2148_v30  ;;  %2047 = vmatprep.subr.bf16.mxu1 %v2164_v37 }
  0x5a   : > { %717 = vmatprep.subr.bf16.mxu0 %v2149_v32  ;;  %v449_v32 = vld [vmem:[#allocation2 + $0x70] sm:$0xff] }
  0x5c   : > { %2048 = vmatpush3.bf16.msra.mxu1 %v2164_v37 }
  0x5d   : > { %718 = vmatpush1.bf16.msra.mxu0 %v2151_v33  ;;  %2049 = vmatprep.subr.bf16.mxu1 %v2166_v40 }
  0x5e   : > { %719 = vmatprep.subr.bf16.mxu0 %v2152_v35 }
  0x60   : > { %2050 = vmatpush3.bf16.msra.mxu1 %v2166_v40  ;;  %v452_v40 = vld [vmem:[#allocation2 + $0x88] sm:$0xff] }
  0x61   : > { %720 = vmatpush1.bf16.msra.mxu0 %v2154_v36  ;;  %2051 = vmatprep.subr.bf16.mxu1 %v2167_v41  ;;  %v458_v36 = vld [vmem:[#allocation2 + $0xb8] sm:$0xff] }
  0x62   : > { %721 = vmatprep.subr.bf16.mxu0 %v2155_v38 }
  0x64   : > { %2052 = vmatpush3.bf16.msra.mxu1 %v2167_v41 }
  0x65   : > { %722 = vmatpush1.bf16.msra.mxu0 %v2157_v39  ;;  %2053 = vmatprep.subr.bf16.mxu1 %v2169_v42 }
  0x68   : > { %740 = vmatmul.mubr.bf16.vlgmr.msra.gmra.mrb[0].mxu0 %v2159_v28  ;;  %2054 = vmatpush3.bf16.msra.mxu1 %v2169_v42  ;;  %v451_v28 = vld [vmem:[#allocation2 + $0x80] sm:$0xff] }
  0x69   : > { %749 = vmatprep.mubr.bf16.mxu0 %v2264_v19 }
  0x6b   : > { %2056 = vmatmul.mubr.bf16.vlgmr.msra.gmra.mrb[0].mxu1 %v2162_v43 }
  0x6c   : > { %2059 = vmatprep.mubr.bf16.mxu1 %v2165_v44 }
  0x70   : > { %750 = vmatmul.mubr.bf16.gmra.mrb[4].mxu0 %v2162_v43  ;;  %v453_v43 = vld [vmem:[#allocation2 + $0x90] sm:$0xff] }
  0x71   : > { %759 = vmatprep.mubr.bf16.mxu0 %v2264_v19 }
  0x73   : > { %2060 = vmatmul.mubr.bf16.gmra.mrb[4].mxu1 %v2168_v45 }
  0x74   : > { %2063 = vmatprep.mubr.bf16.mxu1 %v2170_v46 }
  0x78   : > { %760 = vmatmul.mubr.bf16.gmra.mrb[8].mxu0 %v2165_v44 }
  0x79   : > { %769 = vmatprep.mubr.bf16.mxu0 %v2264_v19 }
  0x7b   : > { %2064 = vmatmul.mubr.bf16.gmra.mrb[8].mxu1 %v2171_v47 }
  0x7c   : > { %2067 = vmatprep.mubr.bf16.mxu1 %v2172_v48 }
  0x80   : > { %770 = vmatmul.mubr.bf16.gmra.mrb[12].mxu0 %v2168_v45 }
  0x81   : > { %779 = vmatprep.mubr.bf16.mxu0 %v2264_v19 }
  0x83   : > { %2068 = vmatmul.mubr.bf16.gmra.mrb[12].mxu1 %v2173_v49 }
  0x88   : > { %780 = vmatmul.mubr.bf16.gmra.mrb[16].mxu0 %v2170_v46  ;;  %v454_v46 = vld [vmem:[#allocation2 + $0x98] sm:$0xff] }
  0x89   : > { %789 = vmatprep.mubr.bf16.mxu0 %v2264_v19 }
  0x90   : > { %790 = vmatmul.mubr.bf16.gmra.mrb[20].mxu0 %v2171_v47 }
  0x91   : > { %799 = vmatprep.mubr.bf16.mxu0 %v2264_v19 }
  0x98   : > { %800 = vmatmul.mubr.bf16.gmra.mrb[24].mxu0 %v2172_v48 }
  0x99   : > { %809 = vmatprep.mubr.bf16.mxu0 %v2264_v19  ;;  %v447_v19 = vld [vmem:[#allocation2 + $0x60] sm:$0xff] }
  0xa0   : > { %810 = vmatmul.mubr.bf16.gmra.mrb[28].mxu0 %v2173_v49  ;;  %v456_v49 = vld [vmem:[#allocation2 + $0xa8] sm:$0xff] }
 0x13b   : > { %v741_v52 = vpop.f32.mrb[0].mxu0 }
 0x13c   : > { %v917_v54 = vadd.f32 %v741_v52, %v435_v50  ;;  %v743_v55 = vpop.f32.mrb[1].mxu0  ;;  %v457_v52 = vld [vmem:[#allocation2 + $0xb0] sm:$0xff] }
 0x13d   : > { %v918_v57 = vadd.f32 %v743_v55, %v436_v51  ;;  %v745_v58 = vpop.f32.mrb[2].mxu0 }
 0x13e   : > { %965 = vst [vmem:[#allocation2] sm:$0xff] %v917_v54  ;;  %v920_v59 = vadd.f32 %v745_v58, %v438_v53  ;;  %v747_v60 = vpop.f32.mrb[3].mxu0  ;;  %v2057_v11 = vpop.f32.mrb[0].mxu1  ;;  %v467_v53 = vld [vmem:[#allocation2 + $0x100] sm:$0xff] }
 0x13f   : > { %966 = vst [vmem:[#allocation2 + $0x8] sm:$0xff] %v918_v57  ;;  %v921_v61 = vadd.f32 %v747_v60, %v439_v56  ;;  %v925_v14 = vadd.f32 %v2057_v11, %v443_v5  ;;  %v854_v15 = vpop.f32.mrb[1].mxu1  ;;  %v461_v56 = vld [vmem:[#allocation2 + $0xd0] sm:$0xff]  ;;  %v470_v60 = vld [vmem:[#allocation2 + $0x118] sm:$0xff] }
 0x140   : > { %968 = vst [vmem:[#allocation2 + $0x18] sm:$0xff] %v920_v59  ;;  %v919_v17 = vadd.f32 %v854_v15, %v437_v8  ;;  %v2058_v18 = vpop.f32.mrb[2].mxu1 }
 0x141   : > { %969 = vst [vmem:[#allocation2 + $0x20] sm:$0xff] %v921_v61  ;;  %973 = vst [vmem:[#allocation2 + $0x40] sm:$0xff] %v925_v14  ;;  %v928_v20 = vadd.f32 %v2058_v18, %v446_v12  ;;  %v857_v21 = vpop.f32.mrb[3].mxu1  ;;  %v463_v12 = vld [vmem:[#allocation2 + $0xe0] sm:$0xff] }
 0x142   : > { %967 = vst [vmem:[#allocation2 + $0x10] sm:$0xff] %v919_v17  ;;  %v922_v23 = vadd.f32 %v857_v21, %v440_v16  ;;  %v473_v16 = vld [vmem:[#allocation2 + $0x130] sm:$0xff] }
 0x143   : > { %v751_v0 = vpop.f32.mrb[4].mxu0  ;;  %976 = vst [vmem:[#allocation2 + $0x58] sm:$0xff] %v928_v20  ;;  %v482_v20 = vld [vmem:[#allocation2 + $0x178] sm:$0xff] }
 0x144   : > { %v923_v2 = vadd.f32 %v751_v0, %v441_v62  ;;  %v753_v3 = vpop.f32.mrb[5].mxu0  ;;  %970 = vst [vmem:[#allocation2 + $0x28] sm:$0xff] %v922_v23  ;;  %v464_v0 = vld [vmem:[#allocation2 + $0xe8] sm:$0xff] }
 0x145   : > { %v924_v6 = vadd.f32 %v753_v3, %v442_v63  ;;  %v755_v7 = vpop.f32.mrb[6].mxu0  ;;  %v459_v3 = vld [vmem:[#allocation2 + $0xc0] sm:$0xff] }
 0x146   : > { %971 = vst [vmem:[#allocation2 + $0x30] sm:$0xff] %v923_v2  ;;  %v926_v9 = vadd.f32 %v755_v7, %v444_v1  ;;  %v757_v10 = vpop.f32.mrb[7].mxu0  ;;  %v2061_v35 = vpop.f32.mrb[4].mxu1 }
 0x147   : > { %972 = vst [vmem:[#allocation2 + $0x38] sm:$0xff] %v924_v6  ;;  %v927_v13 = vadd.f32 %v757_v10, %v445_v4  ;;  %v937_v38 = vadd.f32 %v2061_v35, %v455_v29  ;;  %v870_v39 = vpop.f32.mrb[5].mxu1  ;;  %v460_v6 = vld [vmem:[#allocation2 + $0xc8] sm:$0xff] }
 0x148   : > { %974 = vst [vmem:[#allocation2 + $0x48] sm:$0xff] %v926_v9  ;;  %v931_v41 = vadd.f32 %v870_v39, %v449_v32  ;;  %v2062_v42 = vpop.f32.mrb[6].mxu1  ;;  %v462_v9 = vld [vmem:[#allocation2 + $0xd8] sm:$0xff] }
 0x149   : > { %975 = vst [vmem:[#allocation2 + $0x50] sm:$0xff] %v927_v13  ;;  %985 = vst [vmem:[#allocation2 + $0xa0] sm:$0xff] %v937_v38  ;;  %v940_v44 = vadd.f32 %v2062_v42, %v458_v36  ;;  %v873_v45 = vpop.f32.mrb[7].mxu1  ;;  %v479_v13 = vld [vmem:[#allocation2 + $0x160] sm:$0xff]  ;;  %v469_v36 = vld [vmem:[#allocation2 + $0x110] sm:$0xff] }
 0x14a   : > { %979 = vst [vmem:[#allocation2 + $0x70] sm:$0xff] %v931_v41  ;;  %v934_v47 = vadd.f32 %v873_v45, %v452_v40  ;;  %v471_v42 = vld [vmem:[#allocation2 + $0x120] sm:$0xff]  ;;  %v474_v45 = vld [vmem:[#allocation2 + $0x138] sm:$0xff] }
 0x14b   : > { %v761_v24 = vpop.f32.mrb[8].mxu0  ;;  %988 = vst [vmem:[#allocation2 + $0xb8] sm:$0xff] %v940_v44 }
 0x14c   : > { %v929_v26 = vadd.f32 %v761_v24, %v447_v19  ;;  %v763_v27 = vpop.f32.mrb[9].mxu0  ;;  %982 = vst [vmem:[#allocation2 + $0x88] sm:$0xff] %v934_v47  ;;  %v476_v24 = vld [vmem:[#allocation2 + $0x148] sm:$0xff] }
 0x14d   : > { %v930_v30 = vadd.f32 %v763_v27, %v448_v22  ;;  %v765_v31 = vpop.f32.mrb[10].mxu0  ;;  %v465_v27 = vld [vmem:[#allocation2 + $0xf0] sm:$0xff] }
 0x14e   : > { %977 = vst [vmem:[#allocation2 + $0x60] sm:$0xff] %v929_v26  ;;  %v932_v33 = vadd.f32 %v765_v31, %v450_v25  ;;  %v767_v34 = vpop.f32.mrb[11].mxu0  ;;  %v2065_v59 = vpop.f32.mrb[8].mxu1 }
 0x14f   : > { %978 = vst [vmem:[#allocation2 + $0x68] sm:$0xff] %v930_v30  ;;  %v933_v37 = vadd.f32 %v767_v34, %v451_v28  ;;  %v949_v62 = vadd.f32 %v2065_v59, %v467_v53  ;;  %v886_v63 = vpop.f32.mrb[9].mxu1  ;;  %v466_v30 = vld [vmem:[#allocation2 + $0xf8] sm:$0xff] }
 0x150   : > { %980 = vst [vmem:[#allocation2 + $0x78] sm:$0xff] %v932_v33  ;;  %v943_v1 = vadd.f32 %v886_v63, %v461_v56  ;;  %v2066_v2 = vpop.f32.mrb[10].mxu1  ;;  %v468_v33 = vld [vmem:[#allocation2 + $0x108] sm:$0xff] }
 0x151   : > { %981 = vst [vmem:[#allocation2 + $0x80] sm:$0xff] %v933_v37  ;;  %997 = vst [vmem:[#allocation2 + $0x100] sm:$0xff] %v949_v62  ;;  %v952_v4 = vadd.f32 %v2066_v2, %v470_v60  ;;  %v889_v5 = vpop.f32.mrb[11].mxu1  ;;  %v481_v60 = vld [vmem:[#allocation2 + $0x170] sm:$0xff] }
 0x152   : > { %991 = vst [vmem:[#allocation2 + $0xd0] sm:$0xff] %v943_v1  ;;  %v946_v7 = vadd.f32 %v889_v5, %v464_v0 }
 0x153   : > { %v771_v48 = vpop.f32.mrb[12].mxu0  ;;  %1000 = vst [vmem:[#allocation2 + $0x118] sm:$0xff] %v952_v4 }
 0x154   : > { %v935_v50 = vadd.f32 %v771_v48, %v453_v43  ;;  %v773_v51 = vpop.f32.mrb[13].mxu0  ;;  %994 = vst [vmem:[#allocation2 + $0xe8] sm:$0xff] %v946_v7  ;;  %v472_v43 = vld [vmem:[#allocation2 + $0x128] sm:$0xff]  ;;  %v475_v48 = vld [vmem:[#allocation2 + $0x140] sm:$0xff] }
 0x155   : > { %v936_v54 = vadd.f32 %v773_v51, %v454_v46  ;;  %v775_v55 = vpop.f32.mrb[14].mxu0 }
 0x156   : > { %983 = vst [vmem:[#allocation2 + $0x90] sm:$0xff] %v935_v50  ;;  %v938_v57 = vadd.f32 %v775_v55, %v456_v49  ;;  %v777_v58 = vpop.f32.mrb[15].mxu0  ;;  %v2069_v19 = vpop.f32.mrb[12].mxu1  ;;  %v478_v55 = vld [vmem:[#allocation2 + $0x158] sm:$0xff] }
 0x157   : > { %984 = vst [vmem:[#allocation2 + $0x98] sm:$0xff] %v936_v54  ;;  %v939_v61 = vadd.f32 %v777_v58, %v457_v52  ;;  %v961_v22 = vadd.f32 %v2069_v19, %v479_v13  ;;  %v902_v23 = vpop.f32.mrb[13].mxu1  ;;  %v477_v54 = vld [vmem:[#allocation2 + $0x150] sm:$0xff] }
 0x158   : > { %986 = vst [vmem:[#allocation2 + $0xa8] sm:$0xff] %v938_v57  ;;  %v955_v25 = vadd.f32 %v902_v23, %v473_v16  ;;  %v2070_v26 = vpop.f32.mrb[14].mxu1  ;;  %v480_v57 = vld [vmem:[#allocation2 + $0x168] sm:$0xff] }
 0x159   : > { %987 = vst [vmem:[#allocation2 + $0xb0] sm:$0xff] %v939_v61  ;;  %1009 = vst [vmem:[#allocation2 + $0x160] sm:$0xff] %v961_v22  ;;  %v964_v28 = vadd.f32 %v2070_v26, %v482_v20  ;;  %v905_v29 = vpop.f32.mrb[15].mxu1 }
 0x15a   : > { %1003 = vst [vmem:[#allocation2 + $0x130] sm:$0xff] %v955_v25  ;;  %v958_v31 = vadd.f32 %v905_v29, %v476_v24 }
 0x15b   : > { %v781_v8 = vpop.f32.mrb[16].mxu0  ;;  %1012 = vst [vmem:[#allocation2 + $0x178] sm:$0xff] %v964_v28 }
 0x15c   : > { %v941_v10 = vadd.f32 %v781_v8, %v459_v3  ;;  %v783_v11 = vpop.f32.mrb[17].mxu0  ;;  %1006 = vst [vmem:[#allocation2 + $0x148] sm:$0xff] %v958_v31 }
 0x15d   : > { %v942_v14 = vadd.f32 %v783_v11, %v460_v6  ;;  %v785_v15 = vpop.f32.mrb[18].mxu0 }
 0x15e   : > { %989 = vst [vmem:[#allocation2 + $0xc0] sm:$0xff] %v941_v10  ;;  %v944_v17 = vadd.f32 %v785_v15, %v462_v9  ;;  %v787_v18 = vpop.f32.mrb[19].mxu0 }
 0x15f   : > { %990 = vst [vmem:[#allocation2 + $0xc8] sm:$0xff] %v942_v14  ;;  %v945_v21 = vadd.f32 %v787_v18, %v463_v12 }
 0x160   : > { %992 = vst [vmem:[#allocation2 + $0xd8] sm:$0xff] %v944_v17 }
 0x161   : > { %993 = vst [vmem:[#allocation2 + $0xe0] sm:$0xff] %v945_v21 }
 0x163   : > { %v791_v32 = vpop.f32.mrb[20].mxu0 }
 0x164   : > { %v947_v34 = vadd.f32 %v791_v32, %v465_v27  ;;  %v793_v35 = vpop.f32.mrb[21].mxu0 }
 0x165   : > { %v948_v37 = vadd.f32 %v793_v35, %v466_v30  ;;  %v795_v38 = vpop.f32.mrb[22].mxu0 }
 0x166   : > { %995 = vst [vmem:[#allocation2 + $0xf0] sm:$0xff] %v947_v34  ;;  %v950_v39 = vadd.f32 %v795_v38, %v468_v33  ;;  %v797_v40 = vpop.f32.mrb[23].mxu0 }
 0x167   : > { %996 = vst [vmem:[#allocation2 + $0xf8] sm:$0xff] %v948_v37  ;;  %v951_v41 = vadd.f32 %v797_v40, %v469_v36 }
 0x168   : > { %998 = vst [vmem:[#allocation2 + $0x108] sm:$0xff] %v950_v39 }
 0x169   : > { %999 = vst [vmem:[#allocation2 + $0x110] sm:$0xff] %v951_v41 }
 0x16b   : > { %v801_v44 = vpop.f32.mrb[24].mxu0 }
 0x16c   : > { %v953_v46 = vadd.f32 %v801_v44, %v471_v42  ;;  %v803_v47 = vpop.f32.mrb[25].mxu0 }
 0x16d   : > { %v954_v49 = vadd.f32 %v803_v47, %v472_v43  ;;  %v805_v50 = vpop.f32.mrb[26].mxu0 }
 0x16e   : > { %1001 = vst [vmem:[#allocation2 + $0x120] sm:$0xff] %v953_v46  ;;  %v956_v51 = vadd.f32 %v805_v50, %v474_v45  ;;  %v807_v52 = vpop.f32.mrb[27].mxu0 }
 0x16f   : > { %1002 = vst [vmem:[#allocation2 + $0x128] sm:$0xff] %v954_v49  ;;  %v957_v53 = vadd.f32 %v807_v52, %v475_v48 }
 0x170   : > { %1004 = vst [vmem:[#allocation2 + $0x138] sm:$0xff] %v956_v51 }
 0x171   : > { %1005 = vst [vmem:[#allocation2 + $0x140] sm:$0xff] %v957_v53 }
 0x173   : > { %v811_v56 = vpop.f32.mrb[28].mxu0  ;;  %1016 = sbr.rel (%p2019_p13) target bundleno = 910 (0x38e), region = 81 }
 0x174   : > { %v959_v58 = vadd.f32 %v811_v56, %v477_v54  ;;  %v813_v59 = vpop.f32.mrb[29].mxu0 }
 0x175   : > { %v960_v61 = vadd.f32 %v813_v59, %v478_v55  ;;  %v815_v62 = vpop.f32.mrb[30].mxu0 }
 0x176   : > { %1007 = vst [vmem:[#allocation2 + $0x150] sm:$0xff] %v959_v58  ;;  %v962_v63 = vadd.f32 %v815_v62, %v480_v57  ;;  %v817_v0 = vpop.f32.mrb[31].mxu0 }
 0x177   : > { %1008 = vst [vmem:[#allocation2 + $0x158] sm:$0xff] %v960_v61  ;;  %v963_v1 = vadd.f32 %v817_v0, %v481_v60 }
 0x178   : > { %1010 = vst [vmem:[#allocation2 + $0x168] sm:$0xff] %v962_v63 }
 0x179   : > { %1011 = vst [vmem:[#allocation2 + $0x170] sm:$0xff] %v963_v1 }
 0x17a   : > { %v2441_v2 = vld [vmem:[%s2394_s12 + $0x40] sm:$0xff]  ;;  %v2444_v3 = vld [vmem:[%s2394_s12 + $0x10] sm:$0xff]  ;;  %s2265_s14 = smov 2   ;;  %v2451_v4 = vld [vmem:[%s2394_s12 + $0x58] sm:$0xff]  ;;  %s2266_s17 = smov 1   ;;  %vm1705_vm0 = vcmask 7168  }
 0x17b   : > { %1133 = vrot.lane.b32.xlu1 %v2441_v2, %s2265_s14  ;;  %1129 = vrot.lane.b32.xlu0 %v2444_v3, %s2265_s14  ;;  %v2454_v5 = vld [vmem:[%s2394_s12 + $0x28] sm:$0xff]  ;;  %v2464_v7 = vld [vmem:[%s2394_s12 + $0x70] sm:$0xff]  ;;  %v2528_v20 = vld [vmem:[#allocation2 + $0x58] sm:$0xff]  ;;  %s2267_s24 = smov 126  }
 0x17c   : > { %v2461_v6 = vld [vmem:[%s2394_s12 + $0x88] sm:$0xff]  ;;  %v2471_v8 = vld [vmem:[%s2394_s12 + $0xb8] sm:$0xff]  ;;  %v2474_v9 = vld [vmem:[%s2394_s12 + $0xa0] sm:$0xff] }
 0x17d   : > { %v2481_v10 = vld [vmem:[%s2394_s12 + $0xe8] sm:$0xff]  ;;  %v2484_v11 = vld [vmem:[%s2394_s12 + $0xd0] sm:$0xff]  ;;  %v2491_v12 = vld [vmem:[%s2394_s12 + $0x118] sm:$0xff] }
 0x17e   : > { %v2494_v13 = vld [vmem:[%s2394_s12 + $0x100] sm:$0xff]  ;;  %v2501_v14 = vld [vmem:[%s2394_s12 + $0x148] sm:$0xff]  ;;  %v2504_v15 = vld [vmem:[%s2394_s12 + $0x130] sm:$0xff] }
 0x17f   : > { %1135 = vrot.lane.b32.xlu1 %v2451_v4, %s2265_s14  ;;  %1131 = vrot.lane.b32.xlu0 %v2454_v5, %s2265_s14  ;;  %v2511_v16 = vld [vmem:[%s2394_s12 + $0x178] sm:$0xff]  ;;  %v2514_v17 = vld [vmem:[%s2394_s12 + $0x160] sm:$0xff]  ;;  %v2520_v18 = vld [vmem:[#allocation2 + $0x28] sm:$0xff] }
 0x180   : > { %v2522_v19 = vld [vmem:[#allocation2 + $0x10] sm:$0xff]  ;;  %v2530_v21 = vld [vmem:[#allocation2 + $0x40] sm:$0xff]  ;;  %v2536_v22 = vld [vmem:[#allocation2 + $0x88] sm:$0xff] }
 0x181   : > { %v2538_v23 = vld [vmem:[#allocation2 + $0x70] sm:$0xff]  ;;  %v2544_v24 = vld [vmem:[#allocation2 + $0xb8] sm:$0xff]  ;;  %v2546_v25 = vld [vmem:[#allocation2 + $0xa0] sm:$0xff] }
 0x182   : > { %v2552_v26 = vld [vmem:[#allocation2 + $0xe8] sm:$0xff]  ;;  %v2554_v27 = vld [vmem:[#allocation2 + $0xd0] sm:$0xff]  ;;  %v2560_v28 = vld [vmem:[#allocation2 + $0x118] sm:$0xff] }
 0x183   : > { %1139 = vrot.lane.b32.xlu1 %v2461_v6, %s2265_s14  ;;  %1137 = vrot.lane.b32.xlu0 %v2464_v7, %s2265_s14  ;;  %v2562_v29 = vld [vmem:[#allocation2 + $0x100] sm:$0xff]  ;;  %v2568_v30 = vld [vmem:[#allocation2 + $0x148] sm:$0xff]  ;;  %v2570_v31 = vld [vmem:[#allocation2 + $0x130] sm:$0xff] }
 0x184   : > { %v2576_v32 = vld [vmem:[#allocation2 + $0x178] sm:$0xff]  ;;  %v2578_v33 = vld [vmem:[#allocation2 + $0x160] sm:$0xff]  ;;  %v1023_v37 = vld [vmem:[#allocation2 + $0x30] sm:$0xff] }
 0x185   : > { %v1017_v34 = vld [vmem:[#allocation2] sm:$0xff]  ;;  %v1071_v38 = vld [vmem:[%s2394_s12 + $0x30] sm:$0xff]  ;;  %v1020_v39 = vld [vmem:[#allocation2 + $0x18] sm:$0xff] }
 0x186   : > { %v1065_v35 = vld [vmem:[%s2394_s12] sm:$0xff]  ;;  %v1068_v40 = vld [vmem:[%s2394_s12 + $0x18] sm:$0xff]  ;;  %v1275_v41 = vmul.f32 %v1071_v38, %v1023_v37  ;;  %v1026_v43 = vld [vmem:[#allocation2 + $0x48] sm:$0xff] }
 0x187   : > { %1143 = vrot.lane.b32.xlu1 %v2471_v8, %s2265_s14  ;;  %1141 = vrot.lane.b32.xlu0 %v2474_v9, %s2265_s14  ;;  %v1273_v36 = vmul.f32 %v1065_v35, %v1017_v34  ;;  %v1274_v42 = vmul.f32 %v1068_v40, %v1020_v39  ;;  %v1074_v44 = vld [vmem:[%s2394_s12 + $0x48] sm:$0xff]  ;;  %v1029_v45 = vld [vmem:[#allocation2 + $0x60] sm:$0xff]  ;;  %v1032_v49 = vld [vmem:[#allocation2 + $0x78] sm:$0xff] }
 0x188   : > { %v1077_v46 = vld [vmem:[%s2394_s12 + $0x60] sm:$0xff]  ;;  %v1276_v47 = vmul.f32 %v1074_v44, %v1026_v43  ;;  %v1080_v50 = vld [vmem:[%s2394_s12 + $0x78] sm:$0xff]  ;;  %v1035_v51 = vld [vmem:[#allocation2 + $0x90] sm:$0xff] }
 0x189   : > { %v1277_v48 = vmul.f32 %v1077_v46, %v1029_v45  ;;  %v1083_v52 = vld [vmem:[%s2394_s12 + $0x90] sm:$0xff]  ;;  %v1278_v53 = vmul.f32 %v1080_v50, %v1032_v49  ;;  %v1038_v55 = vld [vmem:[#allocation2 + $0xa8] sm:$0xff]  ;;  %v1041_v57 = vld [vmem:[#allocation2 + $0xc0] sm:$0xff] }
 0x18a   : > { %v1279_v54 = vmul.f32 %v1083_v52, %v1035_v51  ;;  %v1086_v56 = vld [vmem:[%s2394_s12 + $0xa8] sm:$0xff]  ;;  %v1089_v58 = vld [vmem:[%s2394_s12 + $0xc0] sm:$0xff]  ;;  %v1044_v61 = vld [vmem:[#allocation2 + $0xd8] sm:$0xff] }
 0x18b   : > { %1147 = vrot.lane.b32.xlu1 %v2481_v10, %s2265_s14  ;;  %1145 = vrot.lane.b32.xlu0 %v2484_v11, %s2265_s14  ;;  %v1280_v59 = vmul.f32 %v1086_v56, %v1038_v55  ;;  %v1281_v60 = vmul.f32 %v1089_v58, %v1041_v57  ;;  %v1092_v62 = vld [vmem:[%s2394_s12 + $0xd8] sm:$0xff]  ;;  %v1047_v63 = vld [vmem:[#allocation2 + $0xf0] sm:$0xff]  ;;  %v1050_v35 = vld [vmem:[#allocation2 + $0x108] sm:$0xff] }
 0x18c   : > { %v1095_v0 = vld [vmem:[%s2394_s12 + $0xf0] sm:$0xff]  ;;  %v1282_v1 = vmul.f32 %v1092_v62, %v1044_v61  ;;  %v1053_v37 = vld [vmem:[#allocation2 + $0x120] sm:$0xff]  ;;  %v1018_v57 = vld [vmem:[#allocation2 + $0x8] sm:$0xff] }
 0x18d   : > { %v1283_v34 = vmul.f32 %v1095_v0, %v1047_v63  ;;  %v1101_v38 = vld [vmem:[%s2394_s12 + $0x120] sm:$0xff]  ;;  %v1059_v43 = vld [vmem:[#allocation2 + $0x150] sm:$0xff]  ;;  %v1066_v58 = vld [vmem:[%s2394_s12 + $0x8] sm:$0xff] }
 0x18e   : > { %v1285_v40 = vmul.f32 %v1101_v38, %v1053_v37  ;;  %v1107_v44 = vld [vmem:[%s2394_s12 + $0x150] sm:$0xff]  ;;  %v1021_v55 = vld [vmem:[#allocation2 + $0x20] sm:$0xff]  ;;  %v1481_v62 = vmul.f32 %v1066_v58, %v1018_v57  ;;  %v1024_v63 = vld [vmem:[#allocation2 + $0x38] sm:$0xff] }
 0x18f   : > { %1151 = vrot.lane.b32.xlu1 %v2491_v12, %s2265_s14  ;;  %1149 = vrot.lane.b32.xlu0 %v2494_v13, %s2265_s14  ;;  %v1287_v46 = vmul.f32 %v1107_v44, %v1059_v43  ;;  %v1069_v56 = vld [vmem:[%s2394_s12 + $0x20] sm:$0xff]  ;;  %v1072_v0 = vld [vmem:[%s2394_s12 + $0x38] sm:$0xff]  ;;  %v1030_v38 = vld [vmem:[#allocation2 + $0x68] sm:$0xff] }
 0x190   : > { %v1482_v61 = vmul.f32 %v1069_v56, %v1021_v55  ;;  %v1042_v58 = vld [vmem:[#allocation2 + $0xc8] sm:$0xff] }
 0x193   : > { %1155 = vrot.lane.b32.xlu1 %v2501_v14, %s2265_s14  ;;  %1153 = vrot.lane.b32.xlu0 %v2504_v15, %s2265_s14 }
 0x197   : > { %1159 = vrot.lane.b32.xlu1 %v2511_v16, %s2265_s14  ;;  %1157 = vrot.lane.b32.xlu0 %v2514_v17, %s2265_s14 }
 0x19b   : > { %1211 = vrot.lane.b32.xlu1 %v2520_v18, %s2265_s14  ;;  %1209 = vrot.lane.b32.xlu0 %v2522_v19, %s2265_s14 }
 0x19f   : > { %1215 = vrot.lane.b32.xlu1 %v2528_v20, %s2265_s14  ;;  %1213 = vrot.lane.b32.xlu0 %v2530_v21, %s2265_s14 }
 0x1a3   : > { %1219 = vrot.lane.b32.xlu1 %v2536_v22, %s2265_s14  ;;  %1217 = vrot.lane.b32.xlu0 %v2538_v23, %s2265_s14 }
 0x1a7   : > { %1223 = vrot.lane.b32.xlu1 %v2544_v24, %s2265_s14  ;;  %1221 = vrot.lane.b32.xlu0 %v2546_v25, %s2265_s14 }
 0x1ab   : > { %1227 = vrot.lane.b32.xlu1 %v2552_v26, %s2265_s14  ;;  %1225 = vrot.lane.b32.xlu0 %v2554_v27, %s2265_s14 }
 0x1af   : > { %1231 = vrot.lane.b32.xlu1 %v2560_v28, %s2265_s14  ;;  %1229 = vrot.lane.b32.xlu0 %v2562_v29, %s2265_s14 }
 0x1b3   : > { %1235 = vrot.lane.b32.xlu1 %v2568_v30, %s2265_s14  ;;  %1233 = vrot.lane.b32.xlu0 %v2570_v31, %s2265_s14 }
 0x1b7   : > { %1239 = vrot.lane.b32.xlu1 %v2576_v32, %s2265_s14  ;;  %1237 = vrot.lane.b32.xlu0 %v2578_v33, %s2265_s14 }
 0x1d6   : > { %1289 = vadd.xlane.f32.xlu0 %v1273_v36  ;;  %v1098_v36 = vld [vmem:[%s2394_s12 + $0x108] sm:$0xff] }
 0x1d7   : > { %v1284_v39 = vmul.f32 %v1098_v36, %v1050_v35  ;;  %v1483_v35 = vmul.f32 %v1072_v0, %v1024_v63  ;;  %v1093_v63 = vld [vmem:[%s2394_s12 + $0xe0] sm:$0xff] }
 0x1da   : > { %1293 = vadd.xlane.f32.xlu0 %v1275_v41  ;;  %v1056_v41 = vld [vmem:[#allocation2 + $0x138] sm:$0xff] }
 0x1db   : > { %1291 = vadd.xlane.f32.xlu1 %v1274_v42  ;;  %v1104_v42 = vld [vmem:[%s2394_s12 + $0x138] sm:$0xff] }
 0x1dc   : > { %v1286_v45 = vmul.f32 %v1104_v42, %v1056_v41  ;;  %v1033_v41 = vld [vmem:[#allocation2 + $0x80] sm:$0xff] }
 0x1dd   : > { %v1081_v42 = vld [vmem:[%s2394_s12 + $0x80] sm:$0xff] }
 0x1de   : > { %1295 = vadd.xlane.f32.xlu0 %v1276_v47  ;;  %v1062_v47 = vld [vmem:[#allocation2 + $0x168] sm:$0xff]  ;;  %v1486_v44 = vmul.f32 %v1081_v42, %v1033_v41  ;;  %v1099_v41 = vld [vmem:[%s2394_s12 + $0x110] sm:$0xff] }
 0x1df   : > { %1297 = vadd.xlane.f32.xlu1 %v1277_v48  ;;  %v1110_v48 = vld [vmem:[%s2394_s12 + $0x168] sm:$0xff] }
 0x1e0   : > { %v1288_v49 = vmul.f32 %v1110_v48, %v1062_v47  ;;  %v1039_v47 = vld [vmem:[#allocation2 + $0xb0] sm:$0xff] }
 0x1e1   : > { %v1087_v48 = vld [vmem:[%s2394_s12 + $0xb0] sm:$0xff] }
 0x1e2   : > { %1299 = vadd.xlane.f32.xlu0 %v1278_v53  ;;  %v1488_v57 = vmul.f32 %v1087_v48, %v1039_v47  ;;  %v1105_v47 = vld [vmem:[%s2394_s12 + $0x140] sm:$0xff] }
 0x1e3   : > { %1301 = vadd.xlane.f32.xlu1 %v1279_v54 }
 0x1e6   : > { %1303 = vadd.xlane.f32.xlu0 %v1280_v59 }
 0x1e7   : > { %1305 = vadd.xlane.f32.xlu1 %v1281_v60 }
 0x1ea   : > { %1307 = vadd.xlane.f32.xlu0 %v1282_v1  ;;  %v1027_v1 = vld [vmem:[#allocation2 + $0x50] sm:$0xff] }
 0x1eb   : > { %1309 = vadd.xlane.f32.xlu1 %v1283_v34  ;;  %v1075_v34 = vld [vmem:[%s2394_s12 + $0x50] sm:$0xff] }
 0x1ec   : > { %v1484_v37 = vmul.f32 %v1075_v34, %v1027_v1 }
 0x1ed   : > { %v2604_v50 = vpop.permute.xlu0 %1129 }
 0x1ee   : > { %1311 = vadd.xlane.f32.xlu0 %v1284_v39  ;;  %v1078_v39 = vld [vmem:[%s2394_s12 + $0x68] sm:$0xff] }
 0x1ef   : > { %1313 = vadd.xlane.f32.xlu1 %v1285_v40  ;;  %v1485_v43 = vmul.f32 %v1078_v39, %v1030_v38  ;;  %v1051_v39 = vld [vmem:[#allocation2 + $0x110] sm:$0xff] }
 0x1f1   : > { %v2614_v51 = vpop.permute.xlu0 %1131 }
 0x1f2   : > { %1315 = vadd.xlane.f32.xlu0 %v1286_v45  ;;  %v1036_v45 = vld [vmem:[#allocation2 + $0x98] sm:$0xff] }
 0x1f3   : > { %1317 = vadd.xlane.f32.xlu1 %v1287_v46  ;;  %v1084_v46 = vld [vmem:[%s2394_s12 + $0x98] sm:$0xff] }
 0x1f4   : > { %v1487_v56 = vmul.f32 %v1084_v46, %v1036_v45  ;;  %v1102_v45 = vld [vmem:[%s2394_s12 + $0x128] sm:$0xff]  ;;  %v1057_v46 = vld [vmem:[#allocation2 + $0x140] sm:$0xff] }
 0x1f6   : > { %1319 = vadd.xlane.f32.xlu0 %v1288_v49 }
 0x204   : > { %1353 = vrot.lane.b32.xlu1 %v2444_v3, %s2266_s17  ;;  %v2616_v3 = vpop.permute.xlu1 %1133 }
 0x208   : > { %1357 = vrot.lane.b32.xlu1 %v2441_v2, %s2266_s17  ;;  %v2622_v2 = vpop.permute.xlu0 %1137 }
 0x20c   : > { %1359 = vrot.lane.b32.xlu1 %v2451_v4, %s2266_s17  ;;  %1355 = vrot.lane.b32.xlu0 %v2454_v5, %s2266_s17  ;;  %v2628_v4 = vpop.permute.xlu1 %1135  ;;  %v2634_v5 = vpop.permute.xlu0 %1141 }
 0x210   : > { %1363 = vrot.lane.b32.xlu1 %v2461_v6, %s2266_s17  ;;  %1361 = vrot.lane.b32.xlu0 %v2464_v7, %s2266_s17  ;;  %v2636_v6 = vpop.permute.xlu1 %1139  ;;  %v2642_v7 = vpop.permute.xlu0 %1145 }
 0x214   : > { %1367 = vrot.lane.b32.xlu1 %v2471_v8, %s2266_s17  ;;  %1365 = vrot.lane.b32.xlu0 %v2474_v9, %s2266_s17  ;;  %v2648_v8 = vpop.permute.xlu1 %1143  ;;  %v2654_v9 = vpop.permute.xlu0 %1149 }
 0x218   : > { %1371 = vrot.lane.b32.xlu1 %v2481_v10, %s2266_s17  ;;  %1369 = vrot.lane.b32.xlu0 %v2484_v11, %s2266_s17  ;;  %v2656_v10 = vpop.permute.xlu1 %1147  ;;  %v2662_v11 = vpop.permute.xlu0 %1153 }
 0x21c   : > { %1375 = vrot.lane.b32.xlu1 %v2491_v12, %s2266_s17  ;;  %1373 = vrot.lane.b32.xlu0 %v2494_v13, %s2266_s17  ;;  %v2668_v12 = vpop.permute.xlu1 %1151  ;;  %v2672_v13 = vpop.permute.xlu0 %1157 }
 0x21d   : > { %3077 = vst [vmem:[#allocation4_spill] sm:$0xff] %v2672_v13  ;;  %v1565_v13 = vmax.f32 %v2538_v23, 1.0 }
 0x220   : > { %1379 = vrot.lane.b32.xlu1 %v2501_v14, %s2266_s17  ;;  %1377 = vrot.lane.b32.xlu0 %v2504_v15, %s2266_s17  ;;  %v2674_v14 = vpop.permute.xlu1 %1155  ;;  %v2676_v15 = vpop.permute.xlu0 %1209 }
 0x224   : > { %1383 = vrot.lane.b32.xlu1 %v2511_v16, %s2266_s17  ;;  %1381 = vrot.lane.b32.xlu0 %v2514_v17, %s2266_s17  ;;  %v2678_v16 = vpop.permute.xlu1 %1159  ;;  %v2680_v17 = vpop.permute.xlu0 %1213 }
 0x225   : > { %3078 = vst [vmem:[#allocation5_spill] sm:$0xff] %v2678_v16 }
 0x228   : > { %1419 = vrot.lane.b32.xlu1 %v2520_v18, %s2266_s17  ;;  %1417 = vrot.lane.b32.xlu0 %v2522_v19, %s2266_s17  ;;  %v2682_v52 = vpop.permute.xlu1 %1211  ;;  %v2684_v53 = vpop.permute.xlu0 %1217 }
 0x22c   : > { %1423 = vrot.lane.b32.xlu1 %v2528_v20, %s2266_s17  ;;  %1421 = vrot.lane.b32.xlu0 %v2530_v21, %s2266_s17  ;;  %v2686_v54 = vpop.permute.xlu1 %1215  ;;  %v2690_v59 = vpop.permute.xlu0 %1221 }
 0x230   : > { %1427 = vrot.lane.b32.xlu1 %v2536_v22, %s2266_s17  ;;  %1425 = vrot.lane.b32.xlu0 %v2538_v23, %s2266_s17  ;;  %v2692_v60 = vpop.permute.xlu1 %1219  ;;  %v2696_v36 = vpop.permute.xlu0 %1225 }
 0x234   : > { %1429 = vrot.lane.b32.xlu0 %v2546_v25, %s2266_s17  ;;  %v2699_v40 = vpop.permute.xlu1 %1223  ;;  %v2704_v49 = vpop.permute.xlu0 %1229 }
 0x238   : > { %v2706_v55 = vpop.permute.xlu1 %1227  ;;  %v2710_v1 = vpop.permute.xlu0 %1233 }
 0x23c   : > { %v2713_v38 = vpop.permute.xlu1 %1231  ;;  %v2718_v48 = vpop.permute.xlu0 %1237 }
 0x23d   : > { %3079 = vst [vmem:[#allocation6_spill] sm:$0xff] %v2718_v48 }
 0x253   : > { %1499 = vadd.xlane.f32.xlu0 %v1482_v61  ;;  %v1090_v61 = vld [vmem:[%s2394_s12 + $0xc8] sm:$0xff] }
 0x254   : > { %1497 = vadd.xlane.f32.xlu1 %v1481_v62  ;;  %v1045_v62 = vld [vmem:[#allocation2 + $0xe0] sm:$0xff]  ;;  %v1489_v0 = vmul.f32 %v1090_v61, %v1042_v58  ;;  %v1494_v58 = vmul.f32 %v1105_v47, %v1057_v46  ;;  %v1060_v61 = vld [vmem:[#allocation2 + $0x158] sm:$0xff]  ;;  %v1561_v46 = vmax.f32 %v2522_v19, 1.0 }
 0x255   : > { %v1490_v34 = vmul.f32 %v1093_v63, %v1045_v62  ;;  %v1108_v62 = vld [vmem:[%s2394_s12 + $0x158] sm:$0xff]  ;;  %v1063_v63 = vld [vmem:[#allocation2 + $0x170] sm:$0xff] }
 0x257   : > { %1501 = vadd.xlane.f32.xlu0 %v1483_v35  ;;  %v1048_v35 = vld [vmem:[#allocation2 + $0xf8] sm:$0xff] }
 0x258   : > { %1503 = vadd.xlane.f32.xlu1 %v1484_v37  ;;  %v1096_v37 = vld [vmem:[%s2394_s12 + $0xf8] sm:$0xff] }
 0x259   : > { %v1491_v42 = vmul.f32 %v1096_v37, %v1048_v35 }
 0x25b   : > { %1505 = vadd.xlane.f32.xlu0 %v1485_v43  ;;  %v1492_v43 = vmul.f32 %v1099_v41, %v1051_v39 }
 0x25c   : > { %1507 = vadd.xlane.f32.xlu1 %v1486_v44  ;;  %v1054_v44 = vld [vmem:[#allocation2 + $0x128] sm:$0xff] }
 0x25f   : > { %1509 = vadd.xlane.f32.xlu0 %v1487_v56  ;;  %v2720_v56 = vpop.permute.xlu1 %1235 }
 0x260   : > { %1511 = vadd.xlane.f32.xlu1 %v1488_v57  ;;  %3080 = vst [vmem:[#allocation7_spill] sm:$0xff] %v2720_v56  ;;  %v1493_v57 = vmul.f32 %v1102_v45, %v1054_v44  ;;  %v1562_v45 = vmax.f32 %v2520_v18, 1.0 }
 0x262   : > { %2174 = vrcp.f32 %v1562_v45 }
 0x263   : > { %1513 = vadd.xlane.f32.xlu0 %v1489_v0  ;;  %v1111_v0 = vld [vmem:[%s2394_s12 + $0x170] sm:$0xff]  ;;  %v1290_v35 = vpop.xlane.xlu0 %1289  ;;  %v2724_v39 = vpop.permute.xlu1 %1239  ;;  %2176 = vrcp.f32 %v1561_v46 }
 0x264   : > { %1515 = vadd.xlane.f32.xlu1 %v1490_v34  ;;  %v1495_v34 = vmul.f32 %v1108_v62, %v1060_v61  ;;  %v1496_v37 = vmul.f32 %v1111_v0, %v1063_v63  ;;  %3081 = vst [vmem:[#allocation8_spill] sm:$0xff] %v2724_v39  ;;  %v1563_v61 = vmax.f32 %v2530_v21, 1.0  ;;  %v1177_v62 = vmul.f32 %v2604_v50, %v2522_v19 }
 0x265   : > { %v1178_v63 = vmul.f32 %v2614_v51, %v2520_v18  ;;  %v1321_v0 = vmul.f32 2.0, %v1290_v35  ;;  %v1179_v50 = vmul.f32 %v2616_v3, %v2530_v21 }
 0x266   : > { %v1257_v46 = vadd.f32 %v2676_v15, %v1177_v62  ;;  %v1180_v15 = vmul.f32 %v2628_v4, %v2528_v20  ;;  %v1567_v62 = vmax.f32 %v2546_v25, 1.0 }
 0x267   : > { %1517 = vadd.xlane.f32.xlu0 %v1491_v42  ;;  %v1294_v41 = vpop.xlane.xlu0 %1293  ;;  %v1258_v45 = vadd.f32 %v2682_v52, %v1178_v63  ;;  %v1181_v63 = vmul.f32 %v2622_v2, %v2538_v23  ;;  %v1182_v2 = vmul.f32 %v2636_v6, %v2536_v22 }
 0x268   : > { %1519 = vadd.xlane.f32.xlu1 %v1492_v43  ;;  %v1292_v48 = vpop.xlane.xlu1 %1291  ;;  %v1337_v51 = vsub.f32 %v1257_v46, %v1321_v0  ;;  %v1323_v52 = vmul.f32 2.0, %v1294_v41  ;;  %v1260_v3 = vadd.f32 %v2686_v54, %v1180_v15  ;;  %v1570_v46 = vmax.f32 %v2552_v26, 1.0 }
 0x269   : > { %v1262_v6 = vadd.f32 %v2692_v60, %v1182_v2 }
 0x26b   : > { %1521 = vadd.xlane.f32.xlu0 %v1493_v57  ;;  %v1296_v56 = vpop.xlane.xlu0 %1295 }
 0x26c   : > { %1523 = vadd.xlane.f32.xlu1 %v1494_v58  ;;  %v1298_v42 = vpop.xlane.xlu1 %1297  ;;  %v1564_v58 = vmax.f32 %v2528_v20, 1.0  ;;  %v1324_v35 = vmul.f32 2.0, %v1296_v56  ;;  %v2772_v4 = vpop.eup %2174  ;;  %v1609_v56 = vmax.f32 %v1337_v51, 0.0  ;;  %v1261_v51 = vadd.f32 %v2684_v53, %v1181_v63 }
 0x26d   : > { %v1571_v63 = vmax.f32 %v2562_v29, 1.0 }
 0x26e   : > { %2178 = vrcp.f32 %v1564_v58  ;;  %v1568_v58 = vmax.f32 %v2544_v24, 1.0  ;;  %v1340_v54 = vsub.f32 %v1260_v3, %v1324_v35  ;;  %v1186_v3 = vmul.f32 %v2656_v10, %v2552_v26 }
 0x26f   : > { %1525 = vadd.xlane.f32.xlu0 %v1495_v34  ;;  %v1300_v44 = vpop.xlane.xlu0 %1299  ;;  %v1322_v34 = vmul.f32 2.0, %v1292_v48  ;;  %2180 = vrcp.f32 %v1563_v61  ;;  %v1259_v61 = vadd.f32 %v2680_v17, %v1179_v50  ;;  %v1325_v17 = vmul.f32 2.0, %v1298_v42 }
 0x270   : > { %1527 = vadd.xlane.f32.xlu1 %v1496_v37  ;;  %v2726_v43 = vpop.xlane.xlu1 %1301  ;;  %v1566_v37 = vmax.f32 %v2536_v22, 1.0  ;;  %v1569_v50 = vmax.f32 %v2554_v27, 1.0  ;;  %v1184_v42 = vmul.f32 %v2648_v8, %v2544_v24 }
 0x271   : > { %v1338_v48 = vsub.f32 %v1258_v45, %v1322_v34  ;;  %v1339_v41 = vsub.f32 %v1259_v61, %v1323_v52  ;;  %v2776_v34 = vpop.eup %2176  ;;  %v1183_v52 = vmul.f32 %v2634_v5, %v2546_v25  ;;  %v1341_v15 = vsub.f32 %v1261_v51, %v1325_v17 }
 0x272   : > { %2182 = vrcp.f32 %v1566_v37  ;;  %v1326_v37 = vmul.f32 2.0, %v1300_v44  ;;  %v1625_v35 = vmul.f32 %v2776_v34, %v1609_v56  ;;  %v1327_v60 = vmul.f32 2.0, %v2726_v43 }
 0x273   : > { %v2732_v47 = vpop.xlane.xlu0 %1303  ;;  %2184 = vrcp.f32 %v1565_v13  ;;  %v1610_v0 = vmax.f32 %v1338_v48, 0.0  ;;  %v1611_v48 = vmax.f32 %v1339_v41, 0.0  ;;  %v1185_v56 = vmul.f32 %v2642_v7, %v2554_v27 }
 0x274   : > { %v2734_v57 = vpop.xlane.xlu1 %1305  ;;  %2186 = vrcp.f32 %v1568_v58  ;;  %v1612_v58 = vmax.f32 %v1340_v54, 0.0  ;;  %v1342_v5 = vsub.f32 %v1262_v6, %v1326_v37  ;;  %v1328_v61 = vmul.f32 2.0, %v2732_v47 }
 0x275   : > { %2188 = vrcp.f32 %v1567_v62  ;;  %v1626_v53 = vmul.f32 %v2772_v4, %v1610_v0  ;;  %v1572_v62 = vmax.f32 %v2560_v28, 1.0  ;;  %v1264_v0 = vadd.f32 %v2699_v40, %v1184_v42 }
 0x276   : > { %2190 = vrcp.f32 %v1570_v46  ;;  %v1263_v17 = vadd.f32 %v2690_v59, %v1183_v52  ;;  %v1613_v2 = vmax.f32 %v1341_v15, 0.0  ;;  %v1329_v54 = vmul.f32 2.0, %v2734_v57 }
 0x277   : > { %v2749_v39 = vpop.xlane.xlu0 %1307  ;;  %2192 = vrcp.f32 %v1569_v50  ;;  %v1614_v40 = vmax.f32 %v1342_v5, 0.0  ;;  %v1344_v50 = vsub.f32 %v1264_v0, %v1328_v61  ;;  %v1574_v51 = vmax.f32 %v2568_v30, 1.0 }
 0x278   : > { %v2752_v16 = vpop.xlane.xlu1 %1309  ;;  %v2794_v44 = vpop.eup %2178  ;;  %v1330_v7 = vmul.f32 2.0, %v2749_v39  ;;  %v1343_v46 = vsub.f32 %v1263_v17, %v1327_v60  ;;  %2194 = vrcp.f32 %v1572_v62  ;;  %v1266_v42 = vadd.f32 %v2706_v55, %v1186_v3 }
 0x279   : > { %v2798_v8 = vpop.eup %2180  ;;  %v1628_v59 = vmul.f32 %v2794_v44, %v1612_v58  ;;  %v1265_v52 = vadd.f32 %v2696_v36, %v1185_v56  ;;  %2196 = vrcp.f32 %v1571_v63  ;;  %v1573_v6 = vmax.f32 %v2570_v31, 1.0 }
 0x27a   : > { %v1627_v10 = vmul.f32 %v2798_v8, %v1611_v48  ;;  %v1188_v39 = vmul.f32 %v2668_v12, %v2560_v28  ;;  %v1187_v57 = vmul.f32 %v2654_v9, %v2562_v29  ;;  %v1331_v36 = vmul.f32 2.0, %v2752_v16 }
 0x27b   : > { %v2774_v13 = vpop.xlane.xlu0 %1311  ;;  %v1345_v55 = vsub.f32 %v1265_v52, %v1329_v54  ;;  %v1615_v5 = vmax.f32 %v1343_v46, 0.0  ;;  %v1616_v60 = vmax.f32 %v1344_v50, 0.0  ;;  %2198 = vrcp.f32 %v1574_v51  ;;  %v3082_v46 = vld [vmem:[#allocation5_spill] sm:$0xff]  ;;  %v3083_v51 = vld [vmem:[#allocation4_spill] sm:$0xff] }
 0x27c   : > { %v2780_v45 = vpop.xlane.xlu1 %1313  ;;  %v2814_v47 = vpop.eup %2182  ;;  %v1332_v9 = vmul.f32 2.0, %v2774_v13  ;;  %v1576_v62 = vmax.f32 %v2576_v32, 1.0  ;;  %v1575_v63 = vmax.f32 %v2578_v33, 1.0  ;;  %v1267_v3 = vadd.f32 %v2704_v49, %v1187_v57 }
 0x27d   : > { %v2819_v37 = vpop.eup %2184  ;;  %v1630_v12 = vmul.f32 %v2814_v47, %v1614_v40  ;;  %2200 = vrcp.f32 %v1573_v6  ;;  %v1190_v16 = vmul.f32 %v2674_v14, %v2568_v30  ;;  %v1189_v56 = vmul.f32 %v2662_v11, %v2570_v31 }
 0x27e   : > { %v2832_v48 = vpop.eup %2186  ;;  %v1629_v15 = vmul.f32 %v2819_v37, %v1613_v2  ;;  %v1268_v0 = vadd.f32 %v2713_v38, %v1188_v39  ;;  %v1617_v17 = vmax.f32 %v1345_v55, 0.0  ;;  %v1347_v2 = vsub.f32 %v1267_v3, %v1331_v36 }
 0x27f   : > { %v1316_v41 = vpop.xlane.xlu0 %1315  ;;  %v2836_v58 = vpop.eup %2188  ;;  %v1333_v49 = vmul.f32 2.0, %v2780_v45  ;;  %2202 = vrcp.f32 %v1576_v62  ;;  %v1269_v38 = vadd.f32 %v2710_v1, %v1189_v56  ;;  %v1192_v50 = vmul.f32 %v3082_v46, %v2576_v32 }
 0x280   : > { %v2810_v43 = vpop.xlane.xlu1 %1317  ;;  %v2852_v13 = vpop.eup %2190  ;;  %v1631_v14 = vmul.f32 %v2836_v58, %v1615_v5  ;;  %v1348_v11 = vsub.f32 %v1268_v0, %v1332_v9  ;;  %2204 = vrcp.f32 %v1575_v63  ;;  %v1191_v45 = vmul.f32 %v3083_v51, %v2578_v33  ;;  %v3086_v5 = vld [vmem:[#allocation8_spill] sm:$0xff]  ;;  %v3087_v9 = vld [vmem:[#allocation6_spill] sm:$0xff] }
 0x281   : > { %1433 = vrot.lane.b32.xlu1 %v2554_v27, %s2266_s17  ;;  %v2855_v54 = vpop.eup %2192  ;;  %v1619_v57 = vmax.f32 %v1347_v2, 0.0  ;;  %v1335_v36 = vmul.f32 2.0, %v2810_v43 }
 0x282   : > { %v1633_v1 = vmul.f32 %v2855_v54, %v1617_v17  ;;  %v1620_v55 = vmax.f32 %v1348_v11, 0.0  ;;  %v1271_v62 = vadd.f32 %v3087_v9, %v1191_v45 }
 0x284   : > { %v2840_v61 = vpop.permute.xlu1 %1353 }
 0x285   : > { %1435 = vrot.lane.b32.xlu1 %v2552_v26, %s2266_s17  ;;  %1431 = vrot.lane.b32.xlu0 %v2544_v24, %s2266_s17 }
 0x288   : > { %v2867_v6 = vpop.permute.xlu1 %1357 }
 0x289   : > { %1439 = vrot.lane.b32.xlu1 %v2560_v28, %s2266_s17  ;;  %1437 = vrot.lane.b32.xlu0 %v2562_v29, %s2266_s17 }
 0x28c   : > { %v1360_v2 = vpop.permute.xlu1 %1359 }
 0x28d   : > { %1443 = vrot.lane.b32.xlu1 %v2568_v30, %s2266_s17  ;;  %1441 = vrot.lane.b32.xlu0 %v2570_v31, %s2266_s17 }
 0x291   : > { %1447 = vrot.lane.b32.xlu1 %v2576_v32, %s2266_s17  ;;  %1445 = vrot.lane.b32.xlu0 %v2578_v33, %s2266_s17 }
 0x295   : > { %1659 = vrot.lane.b32.xlu1 %v1626_v53, %s2267_s24  ;;  %1657 = vrot.lane.b32.xlu0 %v1625_v35, %s2267_s24  ;;  %v1346_v53 = vsub.f32 %v1266_v42, %v1330_v7  ;;  %v1320_v35 = vpop.xlane.xlu0 %1319  ;;  %v1632_v7 = vmul.f32 %v2832_v48, %v1616_v60  ;;  %v3084_v42 = vld [vmem:[#allocation7_spill] sm:$0xff]  ;;  %v1272_v60 = vadd.f32 %v3086_v5, %v1192_v50  ;;  %v1364_v50 = vpop.permute.xlu1 %1363 }
 0x296   : > { %v1270_v52 = vadd.f32 %v3084_v42, %v1190_v16 }
 0x299   : > { %1661 = vrot.lane.b32.xlu0 %v1627_v10, %s2267_s24  ;;  %1663 = vrot.lane.b32.xlu1 %v1628_v59, %s2267_s24  ;;  %v1618_v10 = vmax.f32 %v1346_v53, 0.0  ;;  %v1334_v59 = vmul.f32 2.0, %v1316_v41  ;;  %v2860_v40 = vpop.permute.xlu0 %1355  ;;  %v2871_v41 = vpop.eup %2194 }
 0x29a   : > { %3085 = vst [vmem:[#allocation5_spill] sm:$0xff] %v2871_v41  ;;  %v2875_v32 = vpop.eup %2196  ;;  %v1636_v17 = vmul.f32 %v2871_v41, %v1620_v55 }
 0x29b   : > { %v1634_v39 = vmul.f32 %v2852_v13, %v1618_v10  ;;  %v1350_v53 = vsub.f32 %v1270_v52, %v1334_v59  ;;  %v2882_v63 = vpop.eup %2198  ;;  %v1635_v3 = vmul.f32 %v2875_v32, %v1619_v57  ;;  %v2904_v52 = vpop.permute.xlu1 %1367 }
 0x29c   : > { %3088 = vst [vmem:[#allocation4_spill] sm:$0xff] %v2882_v63  ;;  %v2885_v0 = vpop.eup %2200 }
 0x29d   : > { %1665 = vrot.lane.b32.xlu0 %v1629_v15, %s2267_s24  ;;  %1667 = vrot.lane.b32.xlu1 %v1630_v12, %s2267_s24  ;;  %v1349_v15 = vsub.f32 %v1269_v38, %v1333_v49  ;;  %v1336_v12 = vmul.f32 2.0, %v1320_v35  ;;  %v1362_v56 = vpop.permute.xlu0 %1361  ;;  %3089 = vst [vmem:[#allocation7_spill] sm:$0xff] %v2885_v0  ;;  %v1622_v43 = vmax.f32 %v1350_v53, 0.0  ;;  %v1351_v35 = vsub.f32 %v1271_v62, %v1335_v36  ;;  %v2890_v49 = vpop.eup %2202 }
 0x29e   : > { %3090 = vst [vmem:[#allocation8_spill] sm:$0xff] %v2890_v49 }
 0x29f   : > { %v1621_v16 = vmax.f32 %v1349_v15, 0.0  ;;  %v1352_v10 = vsub.f32 %v1272_v60, %v1336_v12  ;;  %v1638_v11 = vmul.f32 %v2882_v63, %v1622_v43  ;;  %v1623_v59 = vmax.f32 %v1351_v35, 0.0 }
 0x2a0   : > { %v1401_v43 = vmul.f32 %v2840_v61, %v2522_v19 }
 0x2a1   : > { %1669 = vrot.lane.b32.xlu0 %v1631_v14, %s2267_s24  ;;  %1671 = vrot.lane.b32.xlu1 %v1632_v7, %s2267_s24  ;;  %v2892_v14 = vpop.eup %2204  ;;  %v1637_v7 = vmul.f32 %v2885_v0, %v1621_v16  ;;  %v1624_v38 = vmax.f32 %v1352_v10, 0.0  ;;  %v1366_v46 = vpop.permute.xlu0 %1365 }
 0x2a2   : > { %3091 = vst [vmem:[#allocation6_spill] sm:$0xff] %v2892_v14  ;;  %v1639_v51 = vmul.f32 %v2892_v14, %v1623_v59 }
 0x2a3   : > { %v1640_v45 = vmul.f32 %v2890_v49, %v1624_v38  ;;  %v1404_v49 = vmul.f32 %v1360_v2, %v2528_v20 }
 0x2a5   : > { %1673 = vrot.lane.b32.xlu0 %v1633_v1, %s2267_s24  ;;  %1675 = vrot.lane.b32.xlu1 %v1634_v39, %s2267_s24  ;;  %v2902_v42 = vpop.permute.xlu0 %1369  ;;  %v2908_v39 = vpop.permute.xlu1 %1371 }
 0x2a9   : > { %1677 = vrot.lane.b32.xlu0 %v1635_v3, %s2267_s24  ;;  %1679 = vrot.lane.b32.xlu1 %v1636_v17, %s2267_s24  ;;  %v2906_v1 = vpop.permute.xlu0 %1373  ;;  %v2912_v15 = vpop.permute.xlu1 %1375  ;;  %v1402_v17 = vmul.f32 %v2860_v40, %v2520_v18 }
 0x2ad   : > { %1681 = vrot.lane.b32.xlu0 %v1637_v7, %s2267_s24  ;;  %1683 = vrot.lane.b32.xlu1 %v1638_v11, %s2267_s24  ;;  %v2910_v57 = vpop.permute.xlu0 %1377  ;;  %v2916_v53 = vpop.permute.xlu1 %1379 }
 0x2b1   : > { %1685 = vrot.lane.b32.xlu0 %v1639_v51, %s2267_s24  ;;  %1687 = vrot.lane.b32.xlu1 %v1640_v45, %s2267_s24  ;;  %v2914_v55 = vpop.permute.xlu0 %1381  ;;  %v2918_v12 = vpop.permute.xlu1 %1383  ;;  %v1403_v51 = vmul.f32 %v2867_v6, %v2530_v21 }
 0x2b2   : > { %3092 = vst [vmem:[#allocation9_spill] sm:$0xff] %v2918_v12 }
 0x2b5   : > { %v1418_v36 = vpop.permute.xlu0 %1417  ;;  %v1420_v60 = vpop.permute.xlu1 %1419 }
 0x2b6   : > { %v1466_v10 = vadd.f32 %v1420_v60, %v1402_v17  ;;  %v1465_v59 = vadd.f32 %v1418_v36, %v1401_v43  ;;  %v1405_v60 = vmul.f32 %v1362_v56, %v2538_v23  ;;  %v1406_v43 = vmul.f32 %v1364_v50, %v2536_v22 }
 0x2b7   : > { %v1407_v23 = vmul.f32 %v1366_v46, %v2546_v25 }
 0x2b9   : > { %v1422_v5 = vpop.permute.xlu0 %1421  ;;  %v1424_v62 = vpop.permute.xlu1 %1423 }
 0x2ba   : > { %v1467_v41 = vadd.f32 %v1422_v5, %v1403_v51  ;;  %v1468_v0 = vadd.f32 %v1424_v62, %v1404_v49 }
 0x2bd   : > { %v1426_v9 = vpop.permute.xlu0 %1425  ;;  %v1428_v16 = vpop.permute.xlu1 %1427 }
 0x2be   : > { %v1469_v2 = vadd.f32 %v1426_v9, %v1405_v60  ;;  %v1470_v49 = vadd.f32 %v1428_v16, %v1406_v43 }
 0x2c1   : > { %v1430_v3 = vpop.permute.xlu0 %1429 }
 0x2e0   : > { %v1500_v35 = vpop.xlane.xlu0 %1499 }
 0x2e1   : > { %v1530_v7 = vmul.f32 2.0, %v1500_v35  ;;  %v1498_v11 = vpop.xlane.xlu1 %1497 }
 0x2e2   : > { %v1529_v38 = vmul.f32 2.0, %v1498_v11 }
 0x2e3   : > { %v1546_v45 = vsub.f32 %v1466_v10, %v1530_v7 }
 0x2e4   : > { %v1545_v63 = vsub.f32 %v1465_v59, %v1529_v38  ;;  %v1502_v14 = vpop.xlane.xlu0 %1501 }
 0x2e5   : > { %v1723_v12 = vmax.f32 %v1546_v45, 0.0  ;;  %v1531_v18 = vmul.f32 2.0, %v1502_v14  ;;  %v1504_v40 = vpop.xlane.xlu1 %1503 }
 0x2e6   : > { %v1722_v19 = vmax.f32 %v1545_v63, 0.0  ;;  %v1532_v61 = vmul.f32 2.0, %v1504_v40 }
 0x2e7   : > { %v1739_v36 = vmul.f32 %v2772_v4, %v1723_v12  ;;  %v1547_v17 = vsub.f32 %v1467_v41, %v1531_v18  ;;  %v1409_v18 = vmul.f32 %v2902_v42, %v2554_v27 }
 0x2e8   : > { %v1738_v21 = vmul.f32 %v2776_v34, %v1722_v19  ;;  %v1548_v6 = vsub.f32 %v1468_v0, %v1532_v61  ;;  %v1506_v20 = vpop.xlane.xlu0 %1505  ;;  %v1471_v0 = vadd.f32 %v1430_v3, %v1407_v23 }
 0x2e9   : > { %v1724_v35 = vmax.f32 %v1547_v17, 0.0  ;;  %v1533_v5 = vmul.f32 2.0, %v1506_v20  ;;  %v1508_v10 = vpop.xlane.xlu1 %1507  ;;  %1772 = vrot.lane.b32.xlu1 %v1739_v36, %s2267_s24  ;;  %v1411_v17 = vmul.f32 %v2906_v1, %v2562_v29  ;;  %v1412_v29 = vmul.f32 %v2912_v15, %v2560_v28 }
 0x2ea   : > { %v1725_v63 = vmax.f32 %v1548_v6, 0.0  ;;  %v1534_v14 = vmul.f32 2.0, %v1508_v10  ;;  %1770 = vrot.lane.b32.xlu0 %v1738_v21, %s2267_s24  ;;  %v1410_v21 = vmul.f32 %v2908_v39, %v2552_v26  ;;  %v1413_v10 = vmul.f32 %v2910_v57, %v2570_v31 }
 0x2eb   : > { %v1740_v4 = vmul.f32 %v2798_v8, %v1724_v35  ;;  %v1549_v22 = vsub.f32 %v1469_v2, %v1533_v5  ;;  %v1415_v31 = vmul.f32 %v2914_v55, %v2578_v33  ;;  %v3093_v33 = vld [vmem:[#allocation7_spill] sm:$0xff] }
 0x2ec   : > { %v1741_v34 = vmul.f32 %v2794_v44, %v1725_v63  ;;  %v1550_v41 = vsub.f32 %v1470_v49, %v1534_v14  ;;  %v1510_v56 = vpop.xlane.xlu0 %1509  ;;  %v2206_v55 = vld [vmem:[#allocation2 + $0x178] sm:$0xff] }
 0x2ed   : > { %v1726_v50 = vmax.f32 %v1549_v22, 0.0  ;;  %v1535_v12 = vmul.f32 2.0, %v1510_v56  ;;  %v1512_v9 = vpop.xlane.xlu1 %1511 }
 0x2ee   : > { %v1727_v62 = vmax.f32 %v1550_v41, 0.0  ;;  %1776 = vrot.lane.b32.xlu1 %v1741_v34, %s2267_s24  ;;  %1774 = vrot.lane.b32.xlu0 %v1740_v4, %s2267_s24  ;;  %v1536_v19 = vmul.f32 2.0, %v1512_v9 }
 0x2ef   : > { %v1742_v16 = vmul.f32 %v2819_v37, %v1726_v50  ;;  %v1551_v7 = vsub.f32 %v1471_v0, %v1535_v12 }
 0x2f0   : > { %v1743_v25 = vmul.f32 %v2814_v47, %v1727_v62  ;;  %v1514_v8 = vpop.xlane.xlu0 %1513  ;;  %v1408_v47 = vmul.f32 %v2904_v52, %v2544_v24 }
 0x2f1   : > { %v1728_v46 = vmax.f32 %v1551_v7, 0.0  ;;  %v1516_v11 = vpop.xlane.xlu1 %1515 }
 0x2f2   : > { %1780 = vrot.lane.b32.xlu1 %v1743_v25, %s2267_s24  ;;  %1778 = vrot.lane.b32.xlu0 %v1742_v16, %s2267_s24  ;;  %v1538_v27 = vmul.f32 2.0, %v1516_v11 }
 0x2f3   : > { %v1744_v44 = vmul.f32 %v2836_v58, %v1728_v46  ;;  %v1537_v58 = vmul.f32 2.0, %v1514_v8  ;;  %v3095_v8 = vld [vmem:[#allocation5_spill] sm:$0xff] }
 0x2f4   : > { %v1518_v3 = vpop.xlane.xlu0 %1517 }
 0x2f5   : > { %v1520_v59 = vpop.xlane.xlu1 %1519  ;;  %v1539_v2 = vmul.f32 2.0, %v1518_v3 }
 0x2f6   : > { %1782 = vrot.lane.b32.xlu0 %v1744_v44, %s2267_s24  ;;  %v1540_v34 = vmul.f32 2.0, %v1520_v59 }
 0x2f8   : > { %v1522_v38 = vpop.xlane.xlu0 %1521 }
 0x2f9   : > { %v1524_v51 = vpop.xlane.xlu1 %1523  ;;  %v1541_v14 = vmul.f32 2.0, %v1522_v38 }
 0x2fa   : > { %v1542_v16 = vmul.f32 2.0, %v1524_v51 }
 0x2fc   : > { %v1526_v45 = vpop.xlane.xlu0 %1525 }
 0x2fd   : > { %v2944_v37 = vpop.xlane.xlu1 %1527  ;;  %v1543_v50 = vmul.f32 2.0, %v1526_v45 }
 0x2fe   : > { %v1544_v38 = vmul.f32 2.0, %v2944_v37 }
 0x300   : > { %v1432_v40 = vpop.permute.xlu0 %1431 }
 0x301   : > { %v1472_v61 = vadd.f32 %v1432_v40, %v1408_v47  ;;  %v1434_v60 = vpop.permute.xlu1 %1433  ;;  %v3096_v47 = vld [vmem:[#allocation6_spill] sm:$0xff]  ;;  %v3097_v40 = vld [vmem:[#allocation4_spill] sm:$0xff] }
 0x302   : > { %v1473_v36 = vadd.f32 %v1434_v60, %v1409_v18 }
 0x303   : > { %v1552_v43 = vsub.f32 %v1472_v61, %v1536_v19 }
 0x304   : > { %v1553_v6 = vsub.f32 %v1473_v36, %v1537_v58  ;;  %v1438_v20 = vpop.permute.xlu0 %1437  ;;  %v3098_v36 = vld [vmem:[#allocation8_spill] sm:$0xff] }
 0x305   : > { %v1729_v24 = vmax.f32 %v1552_v43, 0.0  ;;  %v1475_v52 = vadd.f32 %v1438_v20, %v1411_v17  ;;  %v1436_v35 = vpop.permute.xlu1 %1435 }
 0x306   : > { %v1730_v42 = vmax.f32 %v1553_v6, 0.0  ;;  %v1474_v5 = vadd.f32 %v1436_v35, %v1410_v21 }
 0x307   : > { %v1745_v49 = vmul.f32 %v2832_v48, %v1729_v24  ;;  %v1555_v63 = vsub.f32 %v1475_v52, %v1539_v2 }
 0x308   : > { %v1746_v26 = vmul.f32 %v2855_v54, %v1730_v42  ;;  %v1554_v1 = vsub.f32 %v1474_v5, %v1538_v27  ;;  %v1442_v39 = vpop.permute.xlu0 %1441  ;;  %v1414_v54 = vmul.f32 %v2916_v53, %v2568_v30 }
 0x309   : > { %v1732_v23 = vmax.f32 %v1555_v63, 0.0  ;;  %v1477_v4 = vadd.f32 %v1442_v39, %v1413_v10  ;;  %v1440_v22 = vpop.permute.xlu1 %1439  ;;  %1784 = vrot.lane.b32.xlu1 %v1745_v49, %s2267_s24 }
 0x30a   : > { %v1731_v41 = vmax.f32 %v1554_v1, 0.0  ;;  %v1476_v56 = vadd.f32 %v1440_v22, %v1412_v29  ;;  %1786 = vrot.lane.b32.xlu0 %v1746_v26, %s2267_s24 }
 0x30b   : > { %v1748_v28 = vmul.f32 %v2875_v32, %v1732_v23  ;;  %v1557_v48 = vsub.f32 %v1477_v4, %v1541_v14 }
 0x30c   : > { %v1747_v57 = vmul.f32 %v2852_v13, %v1731_v41  ;;  %v1556_v15 = vsub.f32 %v1476_v56, %v1540_v34  ;;  %v1446_v0 = vpop.permute.xlu0 %1445  ;;  %v3094_v13 = vld [vmem:[#allocation9_spill] sm:$0xff] }
 0x30d   : > { %v1734_v12 = vmax.f32 %v1557_v48, 0.0  ;;  %v1479_v9 = vadd.f32 %v1446_v0, %v1415_v31  ;;  %v1444_v62 = vpop.permute.xlu1 %1443  ;;  %v1416_v53 = vmul.f32 %v2206_v55, %v3094_v13 }
 0x30e   : > { %v1733_v7 = vmax.f32 %v1556_v15, 0.0  ;;  %v1478_v25 = vadd.f32 %v1444_v62, %v1414_v54  ;;  %1788 = vrot.lane.b32.xlu1 %v1747_v57, %s2267_s24  ;;  %1790 = vrot.lane.b32.xlu0 %v1748_v28, %s2267_s24 }
 0x30f   : > { %v1750_v32 = vmul.f32 %v3093_v33, %v1734_v12  ;;  %v1559_v30 = vsub.f32 %v1479_v9, %v1543_v50 }
 0x310   : > { %v1749_v46 = vmul.f32 %v3095_v8, %v1733_v7  ;;  %v1558_v11 = vsub.f32 %v1478_v25, %v1542_v16  ;;  %v1658_v44 = vpop.permute.xlu0 %1657 }
 0x311   : > { %v1736_v3 = vmax.f32 %v1559_v30, 0.0  ;;  %1706 = vst.msk [vmem:[%s2384_s8] sm:$0xff] %vm1705_vm0, %v1658_v44  ;;  %v1448_v59 = vpop.permute.xlu1 %1447 }
 0x312   : > { %v1735_v51 = vmax.f32 %v1558_v11, 0.0  ;;  %v1480_v45 = vadd.f32 %v1448_v59, %v1416_v53  ;;  %1792 = vrot.lane.b32.xlu1 %v1749_v46, %s2267_s24  ;;  %1794 = vrot.lane.b32.xlu0 %v1750_v32, %s2267_s24 }
 0x313   : > { %v1752_v18 = vmul.f32 %v3096_v47, %v1736_v3 }
 0x314   : > { %v1751_v19 = vmul.f32 %v3097_v40, %v1735_v51  ;;  %v1560_v61 = vsub.f32 %v1480_v45, %v1544_v38  ;;  %v1662_v60 = vpop.permute.xlu0 %1661 }
 0x315   : > { %1708 = vst.msk [vmem:[%s2384_s8 + $0x10] sm:$0xff] %vm1705_vm0, %v1662_v60  ;;  %v1660_v58 = vpop.permute.xlu1 %1659 }
 0x316   : > { %v1737_v37 = vmax.f32 %v1560_v61, 0.0  ;;  %1707 = vst.msk [vmem:[%s2384_s8 + $0x8] sm:$0xff] %vm1705_vm0, %v1660_v58  ;;  %1796 = vrot.lane.b32.xlu1 %v1751_v19, %s2267_s24  ;;  %1798 = vrot.lane.b32.xlu0 %v1752_v18, %s2267_s24 }
 0x318   : > { %v1753_v17 = vmul.f32 %v3098_v36, %v1737_v37  ;;  %v1666_v43 = vpop.permute.xlu0 %1665 }
 0x319   : > { %1710 = vst.msk [vmem:[%s2384_s8 + $0x20] sm:$0xff] %vm1705_vm0, %v1666_v43  ;;  %v1664_v21 = vpop.permute.xlu1 %1663 }
 0x31a   : > { %1709 = vst.msk [vmem:[%s2384_s8 + $0x18] sm:$0xff] %vm1705_vm0, %v1664_v21  ;;  %1800 = vrot.lane.b32.xlu1 %v1753_v17, %s2267_s24 }
 0x31c   : > { %v1670_v6 = vpop.permute.xlu0 %1669 }
 0x31d   : > { %1712 = vst.msk [vmem:[%s2384_s8 + $0x30] sm:$0xff] %vm1705_vm0, %v1670_v6  ;;  %v1668_v20 = vpop.permute.xlu1 %1667 }
 0x31e   : > { %1711 = vst.msk [vmem:[%s2384_s8 + $0x28] sm:$0xff] %vm1705_vm0, %v1668_v20 }
 0x320   : > { %v1674_v2 = vpop.permute.xlu0 %1673 }
 0x321   : > { %1714 = vst.msk [vmem:[%s2384_s8 + $0x40] sm:$0xff] %vm1705_vm0, %v1674_v2  ;;  %v1672_v24 = vpop.permute.xlu1 %1671 }
 0x322   : > { %1713 = vst.msk [vmem:[%s2384_s8 + $0x38] sm:$0xff] %vm1705_vm0, %v1672_v24 }
 0x324   : > { %v1678_v52 = vpop.permute.xlu0 %1677 }
 0x325   : > { %1716 = vst.msk [vmem:[%s2384_s8 + $0x50] sm:$0xff] %vm1705_vm0, %v1678_v52  ;;  %v1676_v35 = vpop.permute.xlu1 %1675 }
 0x326   : > { %1715 = vst.msk [vmem:[%s2384_s8 + $0x48] sm:$0xff] %vm1705_vm0, %v1676_v35 }
 0x328   : > { %v1682_v27 = vpop.permute.xlu0 %1681 }
 0x329   : > { %1718 = vst.msk [vmem:[%s2384_s8 + $0x60] sm:$0xff] %vm1705_vm0, %v1682_v27  ;;  %v1680_v42 = vpop.permute.xlu1 %1679 }
 0x32a   : > { %1717 = vst.msk [vmem:[%s2384_s8 + $0x58] sm:$0xff] %vm1705_vm0, %v1680_v42 }
 0x32c   : > { %v1686_v5 = vpop.permute.xlu0 %1685 }
 0x32d   : > { %1720 = vst.msk [vmem:[%s2384_s8 + $0x70] sm:$0xff] %vm1705_vm0, %v1686_v5  ;;  %v1684_v10 = vpop.permute.xlu1 %1683 }
 0x32e   : > { %1719 = vst.msk [vmem:[%s2384_s8 + $0x68] sm:$0xff] %vm1705_vm0, %v1684_v10 }
 0x331   : > { %v1688_v49 = vpop.permute.xlu1 %1687 }
 0x332   : > { %1721 = vst.msk [vmem:[%s2384_s8 + $0x78] sm:$0xff] %vm1705_vm0, %v1688_v49 }
 0x35b   : > { %v1773_v63 = vpop.permute.xlu1 %1772 }
 0x35c   : > { %1819 = vst.msk [vmem:[%s2389_s18 + $0x8] sm:$0xff] %vm1705_vm0, %v1773_v63  ;;  %v1771_v29 = vpop.permute.xlu0 %1770 }
 0x35d   : > { %1818 = vst.msk [vmem:[%s2389_s18] sm:$0xff] %vm1705_vm0, %v1771_v29 }
 0x360   : > { %v1777_v26 = vpop.permute.xlu1 %1776  ;;  %v1775_v1 = vpop.permute.xlu0 %1774 }
 0x361   : > { %1821 = vst.msk [vmem:[%s2389_s18 + $0x18] sm:$0xff] %vm1705_vm0, %v1777_v26  ;;  %1820 = vst.msk [vmem:[%s2389_s18 + $0x10] sm:$0xff] %vm1705_vm0, %v1775_v1 }
 0x364   : > { %v1781_v39 = vpop.permute.xlu1 %1780  ;;  %v1779_v14 = vpop.permute.xlu0 %1778 }
 0x365   : > { %1823 = vst.msk [vmem:[%s2389_s18 + $0x28] sm:$0xff] %vm1705_vm0, %v1781_v39  ;;  %1822 = vst.msk [vmem:[%s2389_s18 + $0x20] sm:$0xff] %vm1705_vm0, %v1779_v14 }
 0x368   : > { %v1783_v23 = vpop.permute.xlu0 %1782 }
 0x369   : > { %1824 = vst.msk [vmem:[%s2389_s18 + $0x30] sm:$0xff] %vm1705_vm0, %v1783_v23 }
 0x37b   : > { %v1785_v4 = vpop.permute.xlu1 %1784 }
 0x37c   : > { %1825 = vst.msk [vmem:[%s2389_s18 + $0x38] sm:$0xff] %vm1705_vm0, %v1785_v4  ;;  %v1787_v22 = vpop.permute.xlu0 %1786 }
 0x37d   : > { %1826 = vst.msk [vmem:[%s2389_s18 + $0x40] sm:$0xff] %vm1705_vm0, %v1787_v22 }
 0x380   : > { %v1789_v34 = vpop.permute.xlu1 %1788  ;;  %v1791_v41 = vpop.permute.xlu0 %1790 }
 0x381   : > { %1827 = vst.msk [vmem:[%s2389_s18 + $0x48] sm:$0xff] %vm1705_vm0, %v1789_v34  ;;  %1828 = vst.msk [vmem:[%s2389_s18 + $0x50] sm:$0xff] %vm1705_vm0, %v1791_v41 }
 0x384   : > { %v1793_v56 = vpop.permute.xlu1 %1792  ;;  %v1795_v31 = vpop.permute.xlu0 %1794 }
 0x385   : > { %1829 = vst.msk [vmem:[%s2389_s18 + $0x58] sm:$0xff] %vm1705_vm0, %v1793_v56  ;;  %1830 = vst.msk [vmem:[%s2389_s18 + $0x60] sm:$0xff] %vm1705_vm0, %v1795_v31 }
 0x388   : > { %v1797_v28 = vpop.permute.xlu1 %1796  ;;  %v1799_v48 = vpop.permute.xlu0 %1798 }
 0x389   : > { %1831 = vst.msk [vmem:[%s2389_s18 + $0x68] sm:$0xff] %vm1705_vm0, %v1797_v28  ;;  %1832 = vst.msk [vmem:[%s2389_s18 + $0x70] sm:$0xff] %vm1705_vm0, %v1799_v48 }
 0x38c   : > { %v1801_v54 = vpop.permute.xlu1 %1800 }
 0x38d   : > { %1833 = vst.msk [vmem:[%s2389_s18 + $0x78] sm:$0xff] %vm1705_vm0, %v1801_v54 }
 0x38e PF: > { %s15_s21 = sadd.s32 1, %s2261_s21   ;;  %s3099_s15 = smov %s2241_s16 }
 0x38f   : > { %p12_p0 = scmp.ge.s32.totalorder %s15_s21, 6   ;;  %s3100_s16 = smov %s2344_s28 }
 0x390   : > { %s3101_s17 = smov %s2253_s19  ;;  %s3102_s18 = smov %s2257_s20 }
 0x391   : > { %s3103_s19 = smov %s3106_s22  ;;  %s3104_s20 = smov %s3110_s23 }
 0x392   :  { %14 = sbr.rel (!%p12_p0) target bundleno = 4 (0x4), region = 134 }

</bundles_post_ra>
